<compile_context>
chip_gen: v7x
topology: tpu7x:2x2x1
jax: 0.10.0
libtpu: 0.0.40
codegen_flags: <defaults>
</compile_context>

<pallas_src>
import functools

import jax
import jax.numpy as jnp
from jax.experimental import pallas as pl
from jax.experimental.pallas import tpu as pltpu

LANE = 128          # TPU lane width  (last-dim tiling unit)
SUBLANE = 8         # TPU sublane width (second-to-last-dim tiling unit)
TILE_M_CAP = 256    # patch-matrix rows per matmul grid step
TILE_K_CAP = 512    # reduction depth streamed per matmul grid step
TILE_HW_CAP = 128   # spatial rows per grid step in the SE pool / combine passes


def _round_up(n, m):
    return ((n + m - 1) // m) * m


def _pad_axis(x, axis, target):
    if x.shape[axis] == target:
        return x
    cfg = [(0, 0)] * x.ndim
    cfg[axis] = (0, target - x.shape[axis])
    return jnp.pad(x, cfg)


# -------------------- fused matmul + BN-affine + activation -----------------
# out = act((x @ w) * scale + bias), grid = (M tiles "parallel", K "arbitrary")


def _mm_affine_act_kernel(act, x_ref, w_ref, s_ref, b_ref, o_ref, acc_ref):
    @pl.when(pl.program_id(1) == 0)
    def _init():
        acc_ref[...] = jnp.zeros_like(acc_ref)

    acc_ref[...] += jnp.dot(x_ref[...], w_ref[...],
                            preferred_element_type=jnp.float32)

    @pl.when(pl.program_id(1) == pl.num_programs(1) - 1)
    def _finalize():
        y = acc_ref[...] * s_ref[...] + b_ref[...]
        if act == "relu":
            y = jnp.maximum(y, 0.0)
        o_ref[...] = y.astype(o_ref.dtype)


def matmul_affine_act(x, w, scale, bias, act="none"):
    """Returns (Mpad, Cpad) f32 with M/K/C zero-padded; callers slice."""
    M, K = x.shape
    Kw, C = w.shape
    assert K == Kw
    cpad = _round_up(C, LANE)

    kpad = _round_up(K, LANE)
    tile_k = min(TILE_K_CAP, kpad)
    while kpad % tile_k:            # keep tile_k a divisor of kpad (no K waste)
        tile_k -= LANE

    tile_m = min(TILE_M_CAP, _round_up(M, SUBLANE))
    mpad = _round_up(M, tile_m)

    xp = _pad_axis(_pad_axis(x, 1, kpad), 0, mpad).astype(jnp.bfloat16)
    wp = _pad_axis(_pad_axis(w, 0, kpad), 1, cpad).astype(jnp.bfloat16)
    sp = _pad_axis(scale.reshape(1, C).astype(jnp.float32), 1, cpad)
    bp = _pad_axis(bias.reshape(1, C).astype(jnp.float32), 1, cpad)

    cost = pl.CostEstimate(
        flops=2 * mpad * kpad * cpad, transcendentals=0,
        bytes_accessed=xp.size * 2 + wp.size * 2 + mpad * cpad * 4)

    return pl.pallas_call(
        functools.partial(_mm_affine_act_kernel, act),
        out_shape=jax.ShapeDtypeStruct((mpad, cpad), jnp.float32),
        grid_spec=pltpu.PrefetchScalarGridSpec(
            num_scalar_prefetch=0,
            grid=(mpad // tile_m, kpad // tile_k),
            in_specs=[
                pl.BlockSpec((tile_m, tile_k), lambda i, k: (i, k)),
                pl.BlockSpec((tile_k, cpad), lambda i, k: (k, 0)),
                pl.BlockSpec((1, cpad), lambda i, k: (0, 0)),
                pl.BlockSpec((1, cpad), lambda i, k: (0, 0)),
            ],
            out_specs=pl.BlockSpec((tile_m, cpad), lambda i, k: (i, 0)),
            scratch_shapes=[pltpu.VMEM((tile_m, cpad), jnp.float32)],
        ),
        compiler_params=pltpu.CompilerParams(
            dimension_semantics=("parallel", "arbitrary")),
        cost_estimate=cost,
    )(xp, wp, sp, bp)


# -------------------- SE squeeze: tiled global average pool -----------------


def _pool_kernel(inv_hw, x_ref, o_ref):
    @pl.when(pl.program_id(0) == 0)
    def _init():
        o_ref[...] = jnp.zeros_like(o_ref)

    o_ref[...] += jnp.sum(x_ref[...], axis=1)

    @pl.when(pl.program_id(0) == pl.num_programs(0) - 1)
    def _finalize():
        o_ref[...] = o_ref[...] * inv_hw


def global_avg_pool(res, tile_hw, hw_real):
    """res: (N, HWpad, Cpad) f32 -> (N, Cpad) mean over the *real* HW extent."""
    N, HWp, Cp = res.shape
    return pl.pallas_call(
        functools.partial(_pool_kernel, 1.0 / float(hw_real)),
        out_shape=jax.ShapeDtypeStruct((N, Cp), jnp.float32),
        grid=(HWp // tile_hw,),
        in_specs=[pl.BlockSpec((N, tile_hw, Cp), lambda j: (0, j, 0))],
        out_specs=pl.BlockSpec((N, Cp), lambda j: (0, 0)),
        compiler_params=pltpu.CompilerParams(
            dimension_semantics=("arbitrary",)),
    )(res)


# --------------- SE excitation: FC -> ReLU -> FC -> Sigmoid -----------------
# Tiny (N, C) x (C, C/r) matmuls: a single whole-array kernel is appropriate.


def _excite_kernel(s_ref, w1_ref, b1_ref, w2_ref, b2_ref, o_ref):
    h = jnp.dot(s_ref[...], w1_ref[...], preferred_element_type=jnp.float32)
    h = jnp.maximum(h + b1_ref[...], 0.0)
    e = jnp.dot(h, w2_ref[...], preferred_element_type=jnp.float32) + b2_ref[...]
    o_ref[...] = jax.nn.sigmoid(e)


def excitation(pooled, w1, b1, w2, b2):
    N, Cp = pooled.shape
    Crp = w1.shape[1]
    return pl.pallas_call(
        _excite_kernel,
        out_shape=jax.ShapeDtypeStruct((N, Cp), jnp.float32),
    )(pooled, w1, b1.reshape(1, Crp), w2, b2.reshape(1, Cp))


# --------- final combine: relu(res * excitation + shortcut), HW-tiled -------


def _combine_kernel(res_ref, sc_ref, e_ref, o_ref):
    e = e_ref[...][:, None, :]          # (N, 1, Cpad) resident, broadcast once
    o_ref[...] = jnp.maximum(res_ref[...] * e + sc_ref[...], 0.0)


def scale_add_relu(res, sc, e, tile_hw):
    N, HWp, Cp = res.shape
    return pl.pallas_call(
        _combine_kernel,
        out_shape=jax.ShapeDtypeStruct((N, HWp, Cp), jnp.float32),
        grid=(HWp // tile_hw,),
        in_specs=[
            pl.BlockSpec((N, tile_hw, Cp), lambda j: (0, j, 0)),
            pl.BlockSpec((N, tile_hw, Cp), lambda j: (0, j, 0)),
            pl.BlockSpec((N, Cp), lambda j: (0, 0)),
        ],
        out_specs=pl.BlockSpec((N, tile_hw, Cp), lambda j: (0, j, 0)),
        compiler_params=pltpu.CompilerParams(
            dimension_semantics=("parallel",)),
    )(res, sc, e)


# ------------------------------ glue (plain JAX) ----------------------------


def im2col(x, k, stride, pad):
    """x: NHWC -> (N*Ho*Wo, k*k*Cin) patch matrix (ordering: ky, kx, cin)."""
    # TODO(synk): replace HBM-materialized im2col with an in-kernel direct conv
    # (9 shifted streamed matmuls) to eliminate the ~9x activation re-read.
    N, H, W, Cin = x.shape
    xp = jnp.pad(x, ((0, 0), (pad, pad), (pad, pad), (0, 0)))
    Ho = (H + 2 * pad - k) // stride + 1
    Wo = (W + 2 * pad - k) // stride + 1
    cols = []
    for ky in range(k):
        for kx in range(k):
            cols.append(xp[:, ky:ky + Ho * stride:stride,
                           kx:kx + Wo * stride:stride, :])
    patches = jnp.concatenate(cols, axis=-1)
    return patches.reshape(N * Ho * Wo, k * k * Cin), (N, Ho, Wo)


def bn_fold(gamma, beta, mean, var, eps=1e-5):
    scale = gamma / jnp.sqrt(var + eps)
    shift = beta - mean * scale
    return scale, shift


# -------------------------------- the block ---------------------------------


def basic_residual_se_block(x_nchw, p, stride):
    """Forward pass of BasicResidualSEBlock (expansion = 1), eval-mode BN."""
    x = jnp.transpose(x_nchw, (0, 2, 3, 1)).astype(jnp.float32)   # NCHW->NHWC
    N, H, W, in_c = x.shape
    out_c = p["conv1_w"].shape[-1]
    cpad = _round_up(out_c, LANE)

    # residual: conv3x3(stride) + BN + ReLU
    patches1, (_, Ho, Wo) = im2col(x.astype(jnp.bfloat16), 3, stride, 1)
    s1, sh1 = bn_fold(*p["bn1"])
    r1 = matmul_affine_act(patches1, p["conv1_w"].reshape(-1, out_c),
                           s1, p["conv1_b"] * s1 + sh1, "relu")
    M = N * Ho * Wo
    r1 = r1[:M, :out_c].reshape(N, Ho, Wo, out_c)

    # residual: conv3x3(1) + BN + ReLU (keep the 128-padded channels for SE)
    patches2, _ = im2col(r1.astype(jnp.bfloat16), 3, 1, 1)
    s2, sh2 = bn_fold(*p["bn2"])
    r2 = matmul_affine_act(patches2, p["conv2_w"].reshape(-1, out_c),
                           s2, p["conv2_b"] * s2 + sh2, "relu")
    HW = Ho * Wo
    res = r2[:M].reshape(N, HW, cpad)

    # shortcut: a 1x1 conv is just a strided slice + matmul (no im2col)
    if stride != 1 or in_c != out_c:
        xs = x[:, ::stride, ::stride, :].reshape(M, in_c)
        ss, shs = bn_fold(*p["bn_sc"])
        sc = matmul_affine_act(xs.astype(jnp.bfloat16),
                               p["sc_w"].reshape(in_c, out_c),
                               ss, p["sc_b"] * ss + shs, "none")
        sc = sc[:M].reshape(N, HW, cpad)
    else:
        sc = _pad_axis(x.reshape(N, HW, in_c), 2, cpad)

    # SE: squeeze (tiled cross-HW reduction) -> excitation MLP -> combine
    tile_hw = min(TILE_HW_CAP, _round_up(HW, SUBLANE))
    hwpad = _round_up(HW, tile_hw)
    res_p = _pad_axis(res, 1, hwpad)
    sc_p = _pad_axis(sc, 1, hwpad)

    pooled = global_avg_pool(res_p, tile_hw, HW)             # (N, cpad)

    crpad = _round_up(p["fc1_w"].shape[1], LANE)
    w1 = _pad_axis(_pad_axis(p["fc1_w"].astype(jnp.float32), 0, cpad), 1, crpad)
    b1 = _pad_axis(p["fc1_b"].astype(jnp.float32), 0, crpad)
    w2 = _pad_axis(_pad_axis(p["fc2_w"].astype(jnp.float32), 0, crpad), 1, cpad)
    b2 = _pad_axis(p["fc2_b"].astype(jnp.float32), 0, cpad)
    e = excitation(pooled, w1, b1, w2, b2)                   # (N, cpad)

    out = scale_add_relu(res_p, sc_p, e, tile_hw)            # (N, hwpad, cpad)
    out = out[:, :HW, :out_c].reshape(N, Ho, Wo, out_c)
    return jnp.transpose(out, (0, 3, 1, 2))                  # NHWC -> NCHW


# ---------------------------- pure-JAX reference -----------------------------


def reference_forward(x_nchw, p, stride, eps=1e-5):
    x = jnp.transpose(x_nchw, (0, 2, 3, 1)).astype(jnp.float32)
    in_c = x.shape[-1]
    out_c = p["conv1_w"].shape[-1]

    def conv(inp, w, b, s, pad):
        y = jax.lax.conv_general_dilated(
            inp.astype(jnp.bfloat16), w.astype(jnp.bfloat16), (s, s),
            [(pad, pad), (pad, pad)],
            dimension_numbers=("NHWC", "HWIO", "NHWC"),
            preferred_element_type=jnp.float32)
        return y + b

    def bn(y, stats):
        g, be, m, v = stats
        return (y - m) / jnp.sqrt(v + eps) * g + be

    r = jax.nn.relu(bn(conv(x, p["conv1_w"], p["conv1_b"], stride, 1), p["bn1"]))
    r = jax.nn.relu(bn(conv(r, p["conv2_w"], p["conv2_b"], 1, 1), p["bn2"]))
    if stride != 1 or in_c != out_c:
        sc = bn(conv(x, p["sc_w"], p["sc_b"], stride, 0), p["bn_sc"])
    else:
        sc = x
    s = jnp.mean(r, axis=(1, 2))
    h = jax.nn.relu(s @ p["fc1_w"] + p["fc1_b"])
    e = jax.nn.sigmoid(h @ p["fc2_w"] + p["fc2_b"])
    out = jax.nn.relu(r * e[:, None, None, :] + sc)
    return jnp.transpose(out, (0, 3, 1, 2))


# ---------------------------------- params -----------------------------------


def init_params(key, in_c, out_c, r):
    cr = out_c // r
    ks = jax.random.split(key, 16)

    def bn_stats(k, c):
        k1, k2, k3, k4 = jax.random.split(k, 4)
        return (1.0 + 0.1 * jax.random.normal(k1, (c,)),        # gamma
                0.1 * jax.random.normal(k2, (c,)),               # beta
                0.1 * jax.random.normal(k3, (c,)),               # running_mean
                0.5 + 0.5 * jax.random.uniform(k4, (c,)))        # running_var

    return {
        "conv1_w": 0.1 * jax.random.normal(ks[0], (3, 3, in_c, out_c)),
        "conv1_b": 0.1 * jax.random.normal(ks[1], (out_c,)),
        "bn1": bn_stats(ks[2], out_c),
        "conv2_w": 0.1 * jax.random.normal(ks[3], (3, 3, out_c, out_c)),
        "conv2_b": 0.1 * jax.random.normal(ks[4], (out_c,)),
        "bn2": bn_stats(ks[5], out_c),
        "sc_w": 0.1 * jax.random.normal(ks[6], (1, 1, in_c, out_c)),
        "sc_b": 0.1 * jax.random.normal(ks[7], (out_c,)),
        "bn_sc": bn_stats(ks[8], out_c),
        "fc1_w": 0.3 * jax.random.normal(ks[9], (out_c, cr)),
        "fc1_b": 0.1 * jax.random.normal(ks[10], (cr,)),
        "fc2_w": 0.3 * jax.random.normal(ks[11], (cr, out_c)),
        "fc2_b": 0.1 * jax.random.normal(ks[12], (out_c,)),
    }


# ----------------------------------- main ------------------------------------


if __name__ == "__main__":
    IN_C, OUT_C, STRIDE, R = 4, 64, 2, 16    # r=16 matches the PyTorch default
    N, H, W = 2, 32, 32                      # big enough to exercise >1 tile

    key = jax.random.PRNGKey(0)
    kx, kp = jax.random.split(key)
    x = jax.random.normal(kx, (N, IN_C, H, W), dtype=jnp.float32)
    params = init_params(kp, IN_C, OUT_C, R)

    fwd = jax.jit(functools.partial(basic_residual_se_block, stride=STRIDE))
    out = jax.block_until_ready(fwd(x, params))

    ref = jax.block_until_ready(reference_forward(x, params, STRIDE))
    assert out.shape == (N, OUT_C, H // STRIDE, W // STRIDE), out.shape
    max_err = float(jnp.max(jnp.abs(out - ref)))
    # bf16 MXU inputs (same cast points in kernel and reference) -> loose-ish tol
    assert jnp.allclose(out, ref, atol=5e-2, rtol=5e-2), max_err

    print("KERNEL_OK")
</pallas_src>

<mosaic_0001>
module attributes {stable_mosaic.version = 11 : i64} {
  func.func @_mm_affine_act_kernel(%arg0: i32, %arg1: i32, %arg2: memref<256x128xbf16, #tpu.memory_space<vmem>>, %arg3: memref<128x128xbf16, #tpu.memory_space<vmem>>, %arg4: memref<1x128xf32, #tpu.memory_space<vmem>>, %arg5: memref<1x128xf32, #tpu.memory_space<vmem>>, %arg6: memref<256x128xf32, #tpu.memory_space<vmem>>, %arg7: memref<256x128xf32, #tpu.memory_space<vmem>>) attributes {dimension_semantics = [#tpu.dimension_semantics<parallel>, #tpu.dimension_semantics<arbitrary>], iteration_bounds = array<i64: 2, 1>, scalar_prefetch = 0 : i64, scratch_operands = 1 : i64, tpu.core_type = #tpu.core_type<tc>, window_params = [{transform_indices = @transform_0, window_bounds = array<i64: 256, 128>}, {transform_indices = @transform_1, window_bounds = array<i64: 128, 128>}, {pipeline_mode = #tpu.pipeline_mode<synchronous>, transform_indices = @transform_2, window_bounds = array<i64: 1, 128>}, {pipeline_mode = #tpu.pipeline_mode<synchronous>, transform_indices = @transform_3, window_bounds = array<i64: 1, 128>}, {transform_indices = @transform_4, window_bounds = array<i64: 256, 128>}]} {
    %c0_i32 = arith.constant 0 : i32
    %0 = arith.cmpi eq, %arg1, %c0_i32 : i32
    %1 = arith.extui %0 : i1 to i32
    %c0_i32_0 = arith.constant 0 : i32
    %2 = arith.cmpi ne, %1, %c0_i32_0 : i32
    scf.if %2 {
      %cst_10 = arith.constant 0.000000e+00 : f32
      %12 = vector.broadcast %cst_10 : f32 to vector<256x128xf32>
      %c0_11 = arith.constant 0 : index
      %c0_12 = arith.constant 0 : index
      %13 = vector.load %arg7[%c0_11, %c0_12] : memref<256x128xf32, #tpu.memory_space<vmem>>, vector<256x128xf32>
      tpu.vector_store %arg7[%c0_11, %c0_12], %12 {strides = array<i32>} : memref<256x128xf32, #tpu.memory_space<vmem>>, vector<256x128xf32>,
    } else {
    }
    %c0 = arith.constant 0 : index
    %c0_1 = arith.constant 0 : index
    %3 = vector.load %arg7[%c0, %c0_1] : memref<256x128xf32, #tpu.memory_space<vmem>>, vector<256x128xf32>
    %c0_2 = arith.constant 0 : index
    %c0_3 = arith.constant 0 : index
    %4 = vector.load %arg2[%c0_2, %c0_3] : memref<256x128xbf16, #tpu.memory_space<vmem>>, vector<256x128xbf16>
    %c0_4 = arith.constant 0 : index
    %c0_5 = arith.constant 0 : index
    %5 = vector.load %arg3[%c0_4, %c0_5] : memref<128x128xbf16, #tpu.memory_space<vmem>>, vector<128x128xbf16>
    %cst = arith.constant dense<0.000000e+00> : vector<256x128xf32>
    %6 = tpu.matmul %4, %5, %cst {dimension_numbers = #tpu.dot_dimension_numbers<[1], [0], [0], [1], [0, 0, 1, 1], [], []>} : vector<256x128xbf16>, vector<128x128xbf16>, vector<256x128xf32> -> vector<256x128xf32>
    %7 = arith.addf %3, %6 : vector<256x128xf32>
    %c0_6 = arith.constant 0 : index
    %c0_7 = arith.constant 0 : index
    %8 = vector.load %arg7[%c0_6, %c0_7] : memref<256x128xf32, #tpu.memory_space<vmem>>, vector<256x128xf32>
    tpu.vector_store %arg7[%c0_6, %c0_7], %7 {strides = array<i32>} : memref<256x128xf32, #tpu.memory_space<vmem>>, vector<256x128xf32>,
    %c0_i32_8 = arith.constant 0 : i32
    %9 = arith.cmpi eq, %arg1, %c0_i32_8 : i32
    %10 = arith.extui %9 : i1 to i32
    %c0_i32_9 = arith.constant 0 : i32
    %11 = arith.cmpi ne, %10, %c0_i32_9 : i32
    scf.if %11 {
      %c0_10 = arith.constant 0 : index
      %c0_11 = arith.constant 0 : index
      %12 = vector.load %arg7[%c0_10, %c0_11] : memref<256x128xf32, #tpu.memory_space<vmem>>, vector<256x128xf32>
      %c0_12 = arith.constant 0 : index
      %c0_13 = arith.constant 0 : index
      %13 = vector.load %arg4[%c0_12, %c0_13] : memref<1x128xf32, #tpu.memory_space<vmem>>, vector<1x128xf32>
      %14 = vector.broadcast %13 : vector<1x128xf32> to vector<256x128xf32>
      %15 = arith.mulf %12, %14 : vector<256x128xf32>
      %c0_14 = arith.constant 0 : index
      %c0_15 = arith.constant 0 : index
      %16 = vector.load %arg5[%c0_14, %c0_15] : memref<1x128xf32, #tpu.memory_space<vmem>>, vector<1x128xf32>
      %17 = vector.broadcast %16 : vector<1x128xf32> to vector<256x128xf32>
      %18 = arith.addf %15, %17 : vector<256x128xf32>
      %cst_16 = arith.constant 0.000000e+00 : f32
      %19 = vector.broadcast %cst_16 : f32 to vector<256x128xf32>
      %20 = arith.maximumf %18, %19 : vector<256x128xf32>
      %c0_17 = arith.constant 0 : index
      %c0_18 = arith.constant 0 : index
      %21 = vector.load %arg6[%c0_17, %c0_18] : memref<256x128xf32, #tpu.memory_space<vmem>>, vector<256x128xf32>
      tpu.vector_store %arg6[%c0_17, %c0_18], %20 {strides = array<i32>} : memref<256x128xf32, #tpu.memory_space<vmem>>, vector<256x128xf32>,
    } else {
    }
    return
  }
  func.func @transform_0(%arg0: i32, %arg1: i32) -> (i32, i32) {
    %c0_i32 = arith.constant 0 : i32
    return %arg0, %arg1 : i32, i32
  }
  func.func @transform_1(%arg0: i32, %arg1: i32) -> (i32, i32) {
    %c0_i32 = arith.constant 0 : i32
    %c0_i32_0 = arith.constant 0 : i32
    return %arg1, %c0_i32 : i32, i32
  }
  func.func @transform_2(%arg0: i32, %arg1: i32) -> (i32, i32) {
    %c0_i32 = arith.constant 0 : i32
    %c0_i32_0 = arith.constant 0 : i32
    %c0_i32_1 = arith.constant 0 : i32
    return %c0_i32, %c0_i32_0 : i32, i32
  }
  func.func @transform_3(%arg0: i32, %arg1: i32) -> (i32, i32) {
    %c0_i32 = arith.constant 0 : i32
    %c0_i32_0 = arith.constant 0 : i32
    %c0_i32_1 = arith.constant 0 : i32
    return %c0_i32, %c0_i32_0 : i32, i32
  }
  func.func @transform_4(%arg0: i32, %arg1: i32) -> (i32, i32) {
    %c0_i32 = arith.constant 0 : i32
    %c0_i32_0 = arith.constant 0 : i32
    return %arg0, %c0_i32 : i32, i32
  }
}

module attributes {stable_mosaic.version = 11 : i64} {
  func.func @_mm_affine_act_kernel(%arg0: i32, %arg1: i32, %arg2: memref<256x128xbf16, #tpu.memory_space<vmem>>, %arg3: memref<128x128xbf16, #tpu.memory_space<vmem>>, %arg4: memref<1x128xf32, #tpu.memory_space<vmem>>, %arg5: memref<1x128xf32, #tpu.memory_space<vmem>>, %arg6: memref<256x128xf32, #tpu.memory_space<vmem>>, %arg7: memref<256x128xf32, #tpu.memory_space<vmem>>) attributes {dimension_semantics = [#tpu.dimension_semantics<parallel>, #tpu.dimension_semantics<arbitrary>], iteration_bounds = array<i64: 2, 5>, scalar_prefetch = 0 : i64, scratch_operands = 1 : i64, tpu.core_type = #tpu.core_type<tc>, window_params = [{transform_indices = @transform_0, window_bounds = array<i64: 256, 128>}, {transform_indices = @transform_1, window_bounds = array<i64: 128, 128>}, {pipeline_mode = #tpu.pipeline_mode<synchronous>, transform_indices = @transform_2, window_bounds = array<i64: 1, 128>}, {pipeline_mode = #tpu.pipeline_mode<synchronous>, transform_indices = @transform_3, window_bounds = array<i64: 1, 128>}, {transform_indices = @transform_4, window_bounds = array<i64: 256, 128>}]} {
    %c0_i32 = arith.constant 0 : i32
    %0 = arith.cmpi eq, %arg1, %c0_i32 : i32
    %1 = arith.extui %0 : i1 to i32
    %c0_i32_0 = arith.constant 0 : i32
    %2 = arith.cmpi ne, %1, %c0_i32_0 : i32
    scf.if %2 {
      %cst_9 = arith.constant 0.000000e+00 : f32
      %12 = vector.broadcast %cst_9 : f32 to vector<256x128xf32>
      %c0_10 = arith.constant 0 : index
      %c0_11 = arith.constant 0 : index
      %13 = vector.load %arg7[%c0_10, %c0_11] : memref<256x128xf32, #tpu.memory_space<vmem>>, vector<256x128xf32>
      tpu.vector_store %arg7[%c0_10, %c0_11], %12 {strides = array<i32>} : memref<256x128xf32, #tpu.memory_space<vmem>>, vector<256x128xf32>,
    } else {
    }
    %c0 = arith.constant 0 : index
    %c0_1 = arith.constant 0 : index
    %3 = vector.load %arg7[%c0, %c0_1] : memref<256x128xf32, #tpu.memory_space<vmem>>, vector<256x128xf32>
    %c0_2 = arith.constant 0 : index
    %c0_3 = arith.constant 0 : index
    %4 = vector.load %arg2[%c0_2, %c0_3] : memref<256x128xbf16, #tpu.memory_space<vmem>>, vector<256x128xbf16>
    %c0_4 = arith.constant 0 : index
    %c0_5 = arith.constant 0 : index
    %5 = vector.load %arg3[%c0_4, %c0_5] : memref<128x128xbf16, #tpu.memory_space<vmem>>, vector<128x128xbf16>
    %cst = arith.constant dense<0.000000e+00> : vector<256x128xf32>
    %6 = tpu.matmul %4, %5, %cst {dimension_numbers = #tpu.dot_dimension_numbers<[1], [0], [0], [1], [0, 0, 1, 1], [], []>} : vector<256x128xbf16>, vector<128x128xbf16>, vector<256x128xf32> -> vector<256x128xf32>
    %7 = arith.addf %3, %6 : vector<256x128xf32>
    %c0_6 = arith.constant 0 : index
    %c0_7 = arith.constant 0 : index
    %8 = vector.load %arg7[%c0_6, %c0_7] : memref<256x128xf32, #tpu.memory_space<vmem>>, vector<256x128xf32>
    tpu.vector_store %arg7[%c0_6, %c0_7], %7 {strides = array<i32>} : memref<256x128xf32, #tpu.memory_space<vmem>>, vector<256x128xf32>,
    %c4_i32 = arith.constant 4 : i32
    %9 = arith.cmpi eq, %arg1, %c4_i32 : i32
    %10 = arith.extui %9 : i1 to i32
    %c0_i32_8 = arith.constant 0 : i32
    %11 = arith.cmpi ne, %10, %c0_i32_8 : i32
    scf.if %11 {
      %c0_9 = arith.constant 0 : index
      %c0_10 = arith.constant 0 : index
      %12 = vector.load %arg7[%c0_9, %c0_10] : memref<256x128xf32, #tpu.memory_space<vmem>>, vector<256x128xf32>
      %c0_11 = arith.constant 0 : index
      %c0_12 = arith.constant 0 : index
      %13 = vector.load %arg4[%c0_11, %c0_12] : memref<1x128xf32, #tpu.memory_space<vmem>>, vector<1x128xf32>
      %14 = vector.broadcast %13 : vector<1x128xf32> to vector<256x128xf32>
      %15 = arith.mulf %12, %14 : vector<256x128xf32>
      %c0_13 = arith.constant 0 : index
      %c0_14 = arith.constant 0 : index
      %16 = vector.load %arg5[%c0_13, %c0_14] : memref<1x128xf32, #tpu.memory_space<vmem>>, vector<1x128xf32>
      %17 = vector.broadcast %16 : vector<1x128xf32> to vector<256x128xf32>
      %18 = arith.addf %15, %17 : vector<256x128xf32>
      %cst_15 = arith.constant 0.000000e+00 : f32
      %19 = vector.broadcast %cst_15 : f32 to vector<256x128xf32>
      %20 = arith.maximumf %18, %19 : vector<256x128xf32>
      %c0_16 = arith.constant 0 : index
      %c0_17 = arith.constant 0 : index
      %21 = vector.load %arg6[%c0_16, %c0_17] : memref<256x128xf32, #tpu.memory_space<vmem>>, vector<256x128xf32>
      tpu.vector_store %arg6[%c0_16, %c0_17], %20 {strides = array<i32>} : memref<256x128xf32, #tpu.memory_space<vmem>>, vector<256x128xf32>,
    } else {
    }
    return
  }
  func.func @transform_0(%arg0: i32, %arg1: i32) -> (i32, i32) {
    %c0_i32 = arith.constant 0 : i32
    return %arg0, %arg1 : i32, i32
  }
  func.func @transform_1(%arg0: i32, %arg1: i32) -> (i32, i32) {
    %c0_i32 = arith.constant 0 : i32
    %c0_i32_0 = arith.constant 0 : i32
    return %arg1, %c0_i32 : i32, i32
  }
  func.func @transform_2(%arg0: i32, %arg1: i32) -> (i32, i32) {
    %c0_i32 = arith.constant 0 : i32
    %c0_i32_0 = arith.constant 0 : i32
    %c0_i32_1 = arith.constant 0 : i32
    return %c0_i32, %c0_i32_0 : i32, i32
  }
  func.func @transform_3(%arg0: i32, %arg1: i32) -> (i32, i32) {
    %c0_i32 = arith.constant 0 : i32
    %c0_i32_0 = arith.constant 0 : i32
    %c0_i32_1 = arith.constant 0 : i32
    return %c0_i32, %c0_i32_0 : i32, i32
  }
  func.func @transform_4(%arg0: i32, %arg1: i32) -> (i32, i32) {
    %c0_i32 = arith.constant 0 : i32
    %c0_i32_0 = arith.constant 0 : i32
    return %arg0, %c0_i32 : i32, i32
  }
}

module attributes {stable_mosaic.version = 11 : i64} {
  func.func @_pool_kernel(%arg0: i32, %arg1: memref<2x128x128xf32, #tpu.memory_space<vmem>>, %arg2: memref<2x128xf32, #tpu.memory_space<vmem>>) attributes {dimension_semantics = [#tpu.dimension_semantics<arbitrary>], iteration_bounds = array<i64: 2>, scalar_prefetch = 0 : i64, scratch_operands = 0 : i64, tpu.core_type = #tpu.core_type<tc>, window_params = [{transform_indices = @transform_0, window_bounds = array<i64: 2, 128, 128>}, {pipeline_mode = #tpu.pipeline_mode<synchronous>, transform_indices = @transform_1, window_bounds = array<i64: 2, 128>}]} {
    %c0_i32 = arith.constant 0 : i32
    %0 = arith.cmpi eq, %arg0, %c0_i32 : i32
    %1 = arith.extui %0 : i1 to i32
    %c0_i32_0 = arith.constant 0 : i32
    %2 = arith.cmpi ne, %1, %c0_i32_0 : i32
    scf.if %2 {
      %cst_8 = arith.constant 0.000000e+00 : f32
      %11 = vector.broadcast %cst_8 : f32 to vector<2x128xf32>
      %c0_9 = arith.constant 0 : index
      %c0_10 = arith.constant 0 : index
      %12 = vector.load %arg2[%c0_9, %c0_10] : memref<2x128xf32, #tpu.memory_space<vmem>>, vector<2x128xf32>
      tpu.vector_store %arg2[%c0_9, %c0_10], %11 {strides = array<i32>} : memref<2x128xf32, #tpu.memory_space<vmem>>, vector<2x128xf32>,
    } else {
    }
    %c0 = arith.constant 0 : index
    %c0_1 = arith.constant 0 : index
    %3 = vector.load %arg2[%c0, %c0_1] : memref<2x128xf32, #tpu.memory_space<vmem>>, vector<2x128xf32>
    %c0_2 = arith.constant 0 : index
    %c0_3 = arith.constant 0 : index
    %c0_4 = arith.constant 0 : index
    %4 = vector.load %arg1[%c0_2, %c0_3, %c0_4] : memref<2x128x128xf32, #tpu.memory_space<vmem>>, vector<2x128x128xf32>
    %cst = arith.constant dense<0.000000e+00> : vector<2x128xf32>
    %5 = vector.multi_reduction <add>, %4, %cst [1] : vector<2x128x128xf32> to vector<2x128xf32>
    %6 = arith.addf %3, %5 : vector<2x128xf32>
    %c0_5 = arith.constant 0 : index
    %c0_6 = arith.constant 0 : index
    %7 = vector.load %arg2[%c0_5, %c0_6] : memref<2x128xf32, #tpu.memory_space<vmem>>, vector<2x128xf32>
    tpu.vector_store %arg2[%c0_5, %c0_6], %6 {strides = array<i32>} : memref<2x128xf32, #tpu.memory_space<vmem>>, vector<2x128xf32>,
    %c1_i32 = arith.constant 1 : i32
    %8 = arith.cmpi eq, %arg0, %c1_i32 : i32
    %9 = arith.extui %8 : i1 to i32
    %c0_i32_7 = arith.constant 0 : i32
    %10 = arith.cmpi ne, %9, %c0_i32_7 : i32
    scf.if %10 {
      %c0_8 = arith.constant 0 : index
      %c0_9 = arith.constant 0 : index
      %11 = vector.load %arg2[%c0_8, %c0_9] : memref<2x128xf32, #tpu.memory_space<vmem>>, vector<2x128xf32>
      %cst_10 = arith.constant 3.906250e-03 : f32
      %12 = vector.broadcast %cst_10 : f32 to vector<2x128xf32>
      %13 = arith.mulf %11, %12 : vector<2x128xf32>
      %c0_11 = arith.constant 0 : index
      %c0_12 = arith.constant 0 : index
      %14 = vector.load %arg2[%c0_11, %c0_12] : memref<2x128xf32, #tpu.memory_space<vmem>>, vector<2x128xf32>
      tpu.vector_store %arg2[%c0_11, %c0_12], %13 {strides = array<i32>} : memref<2x128xf32, #tpu.memory_space<vmem>>, vector<2x128xf32>,
    } else {
    }
    return
  }
  func.func @transform_0(%arg0: i32) -> (i32, i32, i32) {
    %c0_i32 = arith.constant 0 : i32
    %c0_i32_0 = arith.constant 0 : i32
    %c0_i32_1 = arith.constant 0 : i32
    return %c0_i32, %arg0, %c0_i32_0 : i32, i32, i32
  }
  func.func @transform_1(%arg0: i32) -> (i32, i32) {
    %c0_i32 = arith.constant 0 : i32
    %c0_i32_0 = arith.constant 0 : i32
    %c0_i32_1 = arith.constant 0 : i32
    return %c0_i32, %c0_i32_0 : i32, i32
  }
}

module attributes {stable_mosaic.version = 11 : i64} {
  func.func @_excite_kernel(%arg0: memref<2x128xf32, #tpu.memory_space<vmem>>, %arg1: memref<128x128xf32, #tpu.memory_space<vmem>>, %arg2: memref<1x128xf32, #tpu.memory_space<vmem>>, %arg3: memref<128x128xf32, #tpu.memory_space<vmem>>, %arg4: memref<1x128xf32, #tpu.memory_space<vmem>>, %arg5: memref<2x128xf32, #tpu.memory_space<vmem>>) attributes {dimension_semantics = [], scalar_prefetch = 0 : i64, scratch_operands = 0 : i64, tpu.core_type = #tpu.core_type<tc>} {
    %c0 = arith.constant 0 : index
    %c0_0 = arith.constant 0 : index
    %0 = vector.load %arg0[%c0, %c0_0] : memref<2x128xf32, #tpu.memory_space<vmem>>, vector<2x128xf32>
    %c0_1 = arith.constant 0 : index
    %c0_2 = arith.constant 0 : index
    %1 = vector.load %arg1[%c0_1, %c0_2] : memref<128x128xf32, #tpu.memory_space<vmem>>, vector<128x128xf32>
    %cst = arith.constant dense<0.000000e+00> : vector<2x128xf32>
    %2 = tpu.matmul %0, %1, %cst {dimension_numbers = #tpu.dot_dimension_numbers<[1], [0], [0], [1], [0, 0, 1, 1], [], []>} : vector<2x128xf32>, vector<128x128xf32>, vector<2x128xf32> -> vector<2x128xf32>
    %c0_3 = arith.constant 0 : index
    %c0_4 = arith.constant 0 : index
    %3 = vector.load %arg2[%c0_3, %c0_4] : memref<1x128xf32, #tpu.memory_space<vmem>>, vector<1x128xf32>
    %4 = vector.broadcast %3 : vector<1x128xf32> to vector<2x128xf32>
    %5 = arith.addf %2, %4 : vector<2x128xf32>
    %cst_5 = arith.constant 0.000000e+00 : f32
    %6 = vector.broadcast %cst_5 : f32 to vector<2x128xf32>
    %7 = arith.maximumf %5, %6 : vector<2x128xf32>
    %c0_6 = arith.constant 0 : index
    %c0_7 = arith.constant 0 : index
    %8 = vector.load %arg3[%c0_6, %c0_7] : memref<128x128xf32, #tpu.memory_space<vmem>>, vector<128x128xf32>
    %cst_8 = arith.constant dense<0.000000e+00> : vector<2x128xf32>
    %9 = tpu.matmul %7, %8, %cst_8 {dimension_numbers = #tpu.dot_dimension_numbers<[1], [0], [0], [1], [0, 0, 1, 1], [], []>} : vector<2x128xf32>, vector<128x128xf32>, vector<2x128xf32> -> vector<2x128xf32>
    %c0_9 = arith.constant 0 : index
    %c0_10 = arith.constant 0 : index
    %10 = vector.load %arg4[%c0_9, %c0_10] : memref<1x128xf32, #tpu.memory_space<vmem>>, vector<1x128xf32>
    %11 = vector.broadcast %10 : vector<1x128xf32> to vector<2x128xf32>
    %12 = arith.addf %9, %11 : vector<2x128xf32>
    %13 = arith.negf %12 : vector<2x128xf32>
    %14 = math.exp %13 : vector<2x128xf32>
    %cst_11 = arith.constant 1.000000e+00 : f32
    %15 = vector.broadcast %cst_11 : f32 to vector<2x128xf32>
    %16 = arith.addf %15, %14 : vector<2x128xf32>
    %17 = arith.divf %15, %16 : vector<2x128xf32>
    %c0_12 = arith.constant 0 : index
    %c0_13 = arith.constant 0 : index
    %18 = vector.load %arg5[%c0_12, %c0_13] : memref<2x128xf32, #tpu.memory_space<vmem>>, vector<2x128xf32>
    tpu.vector_store %arg5[%c0_12, %c0_13], %17 {strides = array<i32>} : memref<2x128xf32, #tpu.memory_space<vmem>>, vector<2x128xf32>,
    return
  }
}

module attributes {stable_mosaic.version = 11 : i64} {
  func.func @_mm_affine_act_kernel(%arg0: i32, %arg1: i32, %arg2: memref<256x128xbf16, #tpu.memory_space<vmem>>, %arg3: memref<128x128xbf16, #tpu.memory_space<vmem>>, %arg4: memref<1x128xf32, #tpu.memory_space<vmem>>, %arg5: memref<1x128xf32, #tpu.memory_space<vmem>>, %arg6: memref<256x128xf32, #tpu.memory_space<vmem>>, %arg7: memref<256x128xf32, #tpu.memory_space<vmem>>) attributes {dimension_semantics = [#tpu.dimension_semantics<parallel>, #tpu.dimension_semantics<arbitrary>], iteration_bounds = array<i64: 2, 1>, scalar_prefetch = 0 : i64, scratch_operands = 1 : i64, tpu.core_type = #tpu.core_type<tc>, window_params = [{transform_indices = @transform_0, window_bounds = array<i64: 256, 128>}, {transform_indices = @transform_1, window_bounds = array<i64: 128, 128>}, {pipeline_mode = #tpu.pipeline_mode<synchronous>, transform_indices = @transform_2, window_bounds = array<i64: 1, 128>}, {pipeline_mode = #tpu.pipeline_mode<synchronous>, transform_indices = @transform_3, window_bounds = array<i64: 1, 128>}, {transform_indices = @transform_4, window_bounds = array<i64: 256, 128>}]} {
    %c0_i32 = arith.constant 0 : i32
    %0 = arith.cmpi eq, %arg1, %c0_i32 : i32
    %1 = arith.extui %0 : i1 to i32
    %c0_i32_0 = arith.constant 0 : i32
    %2 = arith.cmpi ne, %1, %c0_i32_0 : i32
    scf.if %2 {
      %cst_10 = arith.constant 0.000000e+00 : f32
      %12 = vector.broadcast %cst_10 : f32 to vector<256x128xf32>
      %c0_11 = arith.constant 0 : index
      %c0_12 = arith.constant 0 : index
      %13 = vector.load %arg7[%c0_11, %c0_12] : memref<256x128xf32, #tpu.memory_space<vmem>>, vector<256x128xf32>
      tpu.vector_store %arg7[%c0_11, %c0_12], %12 {strides = array<i32>} : memref<256x128xf32, #tpu.memory_space<vmem>>, vector<256x128xf32>,
    } else {
    }
    %c0 = arith.constant 0 : index
    %c0_1 = arith.constant 0 : index
    %3 = vector.load %arg7[%c0, %c0_1] : memref<256x128xf32, #tpu.memory_space<vmem>>, vector<256x128xf32>
    %c0_2 = arith.constant 0 : index
    %c0_3 = arith.constant 0 : index
    %4 = vector.load %arg2[%c0_2, %c0_3] : memref<256x128xbf16, #tpu.memory_space<vmem>>, vector<256x128xbf16>
    %c0_4 = arith.constant 0 : index
    %c0_5 = arith.constant 0 : index
    %5 = vector.load %arg3[%c0_4, %c0_5] : memref<128x128xbf16, #tpu.memory_space<vmem>>, vector<128x128xbf16>
    %cst = arith.constant dense<0.000000e+00> : vector<256x128xf32>
    %6 = tpu.matmul %4, %5, %cst {dimension_numbers = #tpu.dot_dimension_numbers<[1], [0], [0], [1], [0, 0, 1, 1], [], []>} : vector<256x128xbf16>, vector<128x128xbf16>, vector<256x128xf32> -> vector<256x128xf32>
    %7 = arith.addf %3, %6 : vector<256x128xf32>
    %c0_6 = arith.constant 0 : index
    %c0_7 = arith.constant 0 : index
    %8 = vector.load %arg7[%c0_6, %c0_7] : memref<256x128xf32, #tpu.memory_space<vmem>>, vector<256x128xf32>
    tpu.vector_store %arg7[%c0_6, %c0_7], %7 {strides = array<i32>} : memref<256x128xf32, #tpu.memory_space<vmem>>, vector<256x128xf32>,
    %c0_i32_8 = arith.constant 0 : i32
    %9 = arith.cmpi eq, %arg1, %c0_i32_8 : i32
    %10 = arith.extui %9 : i1 to i32
    %c0_i32_9 = arith.constant 0 : i32
    %11 = arith.cmpi ne, %10, %c0_i32_9 : i32
    scf.if %11 {
      %c0_10 = arith.constant 0 : index
      %c0_11 = arith.constant 0 : index
      %12 = vector.load %arg7[%c0_10, %c0_11] : memref<256x128xf32, #tpu.memory_space<vmem>>, vector<256x128xf32>
      %c0_12 = arith.constant 0 : index
      %c0_13 = arith.constant 0 : index
      %13 = vector.load %arg4[%c0_12, %c0_13] : memref<1x128xf32, #tpu.memory_space<vmem>>, vector<1x128xf32>
      %14 = vector.broadcast %13 : vector<1x128xf32> to vector<256x128xf32>
      %15 = arith.mulf %12, %14 : vector<256x128xf32>
      %c0_14 = arith.constant 0 : index
      %c0_15 = arith.constant 0 : index
      %16 = vector.load %arg5[%c0_14, %c0_15] : memref<1x128xf32, #tpu.memory_space<vmem>>, vector<1x128xf32>
      %17 = vector.broadcast %16 : vector<1x128xf32> to vector<256x128xf32>
      %18 = arith.addf %15, %17 : vector<256x128xf32>
      %c0_16 = arith.constant 0 : index
      %c0_17 = arith.constant 0 : index
      %19 = vector.load %arg6[%c0_16, %c0_17] : memref<256x128xf32, #tpu.memory_space<vmem>>, vector<256x128xf32>
      tpu.vector_store %arg6[%c0_16, %c0_17], %18 {strides = array<i32>} : memref<256x128xf32, #tpu.memory_space<vmem>>, vector<256x128xf32>,
    } else {
    }
    return
  }
  func.func @transform_0(%arg0: i32, %arg1: i32) -> (i32, i32) {
    %c0_i32 = arith.constant 0 : i32
    return %arg0, %arg1 : i32, i32
  }
  func.func @transform_1(%arg0: i32, %arg1: i32) -> (i32, i32) {
    %c0_i32 = arith.constant 0 : i32
    %c0_i32_0 = arith.constant 0 : i32
    return %arg1, %c0_i32 : i32, i32
  }
  func.func @transform_2(%arg0: i32, %arg1: i32) -> (i32, i32) {
    %c0_i32 = arith.constant 0 : i32
    %c0_i32_0 = arith.constant 0 : i32
    %c0_i32_1 = arith.constant 0 : i32
    return %c0_i32, %c0_i32_0 : i32, i32
  }
  func.func @transform_3(%arg0: i32, %arg1: i32) -> (i32, i32) {
    %c0_i32 = arith.constant 0 : i32
    %c0_i32_0 = arith.constant 0 : i32
    %c0_i32_1 = arith.constant 0 : i32
    return %c0_i32, %c0_i32_0 : i32, i32
  }
  func.func @transform_4(%arg0: i32, %arg1: i32) -> (i32, i32) {
    %c0_i32 = arith.constant 0 : i32
    %c0_i32_0 = arith.constant 0 : i32
    return %arg0, %c0_i32 : i32, i32
  }
}

module attributes {stable_mosaic.version = 11 : i64} {
  func.func @_combine_kernel(%arg0: i32, %arg1: memref<2x128x128xf32, #tpu.memory_space<vmem>>, %arg2: memref<2x128x128xf32, #tpu.memory_space<vmem>>, %arg3: memref<2x128xf32, #tpu.memory_space<vmem>>, %arg4: memref<2x128x128xf32, #tpu.memory_space<vmem>>) attributes {dimension_semantics = [#tpu.dimension_semantics<parallel>], iteration_bounds = array<i64: 2>, scalar_prefetch = 0 : i64, scratch_operands = 0 : i64, tpu.core_type = #tpu.core_type<tc>, window_params = [{transform_indices = @transform_0, window_bounds = array<i64: 2, 128, 128>}, {transform_indices = @transform_1, window_bounds = array<i64: 2, 128, 128>}, {pipeline_mode = #tpu.pipeline_mode<synchronous>, transform_indices = @transform_2, window_bounds = array<i64: 2, 128>}, {transform_indices = @transform_3, window_bounds = array<i64: 2, 128, 128>}]} {
    %c0 = arith.constant 0 : index
    %c0_0 = arith.constant 0 : index
    %0 = vector.load %arg3[%c0, %c0_0] : memref<2x128xf32, #tpu.memory_space<vmem>>, vector<2x128xf32>
    %1 = vector.shape_cast %0 : vector<2x128xf32> to vector<2x1x128xf32>
    %c0_1 = arith.constant 0 : index
    %c0_2 = arith.constant 0 : index
    %c0_3 = arith.constant 0 : index
    %2 = vector.load %arg1[%c0_1, %c0_2, %c0_3] : memref<2x128x128xf32, #tpu.memory_space<vmem>>, vector<2x128x128xf32>
    %3 = vector.broadcast %1 : vector<2x1x128xf32> to vector<2x128x128xf32>
    %4 = arith.mulf %2, %3 : vector<2x128x128xf32>
    %c0_4 = arith.constant 0 : index
    %c0_5 = arith.constant 0 : index
    %c0_6 = arith.constant 0 : index
    %5 = vector.load %arg2[%c0_4, %c0_5, %c0_6] : memref<2x128x128xf32, #tpu.memory_space<vmem>>, vector<2x128x128xf32>
    %6 = arith.addf %4, %5 : vector<2x128x128xf32>
    %cst = arith.constant 0.000000e+00 : f32
    %7 = vector.broadcast %cst : f32 to vector<2x128x128xf32>
    %8 = arith.maximumf %6, %7 : vector<2x128x128xf32>
    %c0_7 = arith.constant 0 : index
    %c0_8 = arith.constant 0 : index
    %c0_9 = arith.constant 0 : index
    %9 = vector.load %arg4[%c0_7, %c0_8, %c0_9] : memref<2x128x128xf32, #tpu.memory_space<vmem>>, vector<2x128x128xf32>
    tpu.vector_store %arg4[%c0_7, %c0_8, %c0_9], %8 {strides = array<i32>} : memref<2x128x128xf32, #tpu.memory_space<vmem>>, vector<2x128x128xf32>,
    return
  }
  func.func @transform_0(%arg0: i32) -> (i32, i32, i32) {
    %c0_i32 = arith.constant 0 : i32
    %c0_i32_0 = arith.constant 0 : i32
    %c0_i32_1 = arith.constant 0 : i32
    return %c0_i32, %arg0, %c0_i32_0 : i32, i32, i32
  }
  func.func @transform_1(%arg0: i32) -> (i32, i32, i32) {
    %c0_i32 = arith.constant 0 : i32
    %c0_i32_0 = arith.constant 0 : i32
    %c0_i32_1 = arith.constant 0 : i32
    return %c0_i32, %arg0, %c0_i32_0 : i32, i32, i32
  }
  func.func @transform_2(%arg0: i32) -> (i32, i32) {
    %c0_i32 = arith.constant 0 : i32
    %c0_i32_0 = arith.constant 0 : i32
    %c0_i32_1 = arith.constant 0 : i32
    return %c0_i32, %c0_i32_0 : i32, i32
  }
  func.func @transform_3(%arg0: i32) -> (i32, i32, i32) {
    %c0_i32 = arith.constant 0 : i32
    %c0_i32_0 = arith.constant 0 : i32
    %c0_i32_1 = arith.constant 0 : i32
    return %c0_i32, %arg0, %c0_i32_0 : i32, i32, i32
  }
}

</mosaic_0001>

<bundles_post_ra>
// kernel: basic_residual_se_block.6
= control target key start
LH: loop header
LB: loop body
LE: loop exit
PB: predicated region body
PF: predicated region fallthrough
CT: control target
= control target key end

     0   :  { %s1215_s15 = smov 0   ;;  %s1217_s16 = smov 0   ;;  %s1402_s0 = inlined_call_operand.vmem [shape: bf16[512,128], index: 0, kind: input, shape index: {}]   ;;  %s1403_s1 = inlined_call_operand.vmem [shape: bf16[128,128], index: 1, kind: input, shape index: {}]   ;;  %s1404_s2 = inlined_call_operand.vmem [shape: f32[1,128], index: 2, kind: input, shape index: {}]   ;;  %s1405_s3 = inlined_call_operand.vmem [shape: f32[1,128], index: 3, kind: input, shape index: {}]   ;;  %s1406_s4 = inlined_call_operand.vmem [shape: f32[512,128], index: 4, kind: output, shape index: {}]  }
   0x1   :  { %s1219_s17 = smov 0  }
   0x2 LB: > { %s26_s18 = sadd.s32 1, %s1184_s16  ;;  %p997_p0 = scmp.ge.s32.totalorder %s1188_s17, 1  ;;  %s1188_s17 = sphi %s1219_s17, %s14_s17   ;;  %s1184_s16 = sphi %s1217_s16, %s1408_s16   ;;  %s1180_s15 = sphi %s1215_s15, %s1407_s15  }
   0x3   : > { %p28_p1 = scmp.ge.s32.totalorder %s26_s18, 2  ;;  %p191_p2 = scmp.lt.s32.totalorder %s1188_s17, 3 }
   0x5   : > { %s1410_s18 = smov (%p28_p1, %s26_s18), 0  ;;  %p192_p3 = pnand %p997_p0, %p191_p2 }
   0x6   : > { %v1142_v0 = vld [vmem:[%s1403_s1] sm:$0xff] (!%p192_p3)   ;;  %s998_s21 = sshll.u32 (!%p192_p3), %s1180_s15, 5  ;;  %v1143_v1 = vld [vmem:[%s1403_s1 + $0x8] sm:$0xff] (!%p192_p3)   ;;  %v1144_v2 = vld [vmem:[%s1403_s1 + $0x10] sm:$0xff] (!%p192_p3)  }
   0x7   : > { %195 = sbr.rel (%p192_p3) target bundleno = 285 (0x11d), region = 36  ;;  %p226_p4 = scmp.lt.s32.totalorder (!%p192_p3), %s998_s21, 63  ;;  %1054 = vmatprep.subr.bf16.mxu0 (!%p192_p3), %v1142_v0  ;;  %1102 = vmatprep.subr.bf16.mxu1 (!%p192_p3), %v1142_v0  ;;  %v1145_v3 = vld [vmem:[%s1403_s1 + $0x18] sm:$0xff] (!%p192_p3)   ;;  %v1146_v6 = vld [vmem:[%s1403_s1 + $0x20] sm:$0xff] (!%p192_p3)   ;;  %v1147_v7 = vld [vmem:[%s1403_s1 + $0x28] sm:$0xff] (!%p192_p3)  }
   0x8   : > { %1055 = vmatpush3.bf16.msra.mxu0 (!%p192_p3), %v1142_v0  ;;  %1110 = vmatpush3.bf16.msra.mxu1 (!%p192_p3), %v1142_v0  ;;  %v1148_v8 = vld [vmem:[%s1403_s1 + $0x30] sm:$0xff] (!%p192_p3)   ;;  %v1149_v9 = vld [vmem:[%s1403_s1 + $0x38] sm:$0xff] (!%p192_p3)   ;;  %v1284_v24 = vld [vmem:[%s1404_s2] ss:$0 sm:$0xff] (!%p192_p3) }
   0x9   : > { %1056 = vmatprep.subr.bf16.mxu0 (!%p192_p3), %v1143_v1  ;;  %1103 = vmatprep.subr.bf16.mxu1 (!%p192_p3), %v1143_v1  ;;  %v1289_v26 = vld [vmem:[%s1405_s3] ss:$0 sm:$0xff] (!%p192_p3) }
   0xc   : > { %1057 = vmatpush3.bf16.msra.mxu0 (!%p192_p3), %v1143_v1  ;;  %1111 = vmatpush3.bf16.msra.mxu1 (!%p192_p3), %v1143_v1 }
   0xd   : > { %1058 = vmatprep.subr.bf16.mxu0 (!%p192_p3), %v1144_v2  ;;  %1104 = vmatprep.subr.bf16.mxu1 (!%p192_p3), %v1144_v2 }
   0xe   : > { %s1412_s21 = smov (!%p226_p4, %s998_s21), 63 }
   0xf   : > { %s999_s26 = sshll.u32 %s1412_s21, 2  ;;  %s1001_s22 = sshll.u32 %s1412_s21, 3 }
  0x10   : > { %s1248_s29 = scalar_lea.vmem %s1402_s0, %s999_s26  ;;  %1059 = vmatpush3.bf16.msra.mxu0 %v1144_v2  ;;  %1112 = vmatpush3.bf16.msra.mxu1 %v1144_v2  ;;  %s1303_s24 = scalar_lea.vmem %s1406_s4, %s1001_s22 }
  0x11   : > { %v1150_v4 = vld [vmem:[%s1248_s29] sm:$0xff]   ;;  %1060 = vmatprep.subr.bf16.mxu0 %v1145_v3  ;;  %1105 = vmatprep.subr.bf16.mxu1 %v1145_v3  ;;  %v1152_v10 = vld [vmem:[%s1248_s29 + $0x8] sm:$0xff]   ;;  %v1154_v12 = vld [vmem:[%s1248_s29 + $0x10] sm:$0xff]  }
  0x12   : > { %v1151_v5 = vld [vmem:[%s1248_s29 + $0x40] sm:$0xff]   ;;  %1070 = vmatprep.mubr.bf16.mxu0 %v1150_v4  ;;  %v1153_v11 = vld [vmem:[%s1248_s29 + $0x48] sm:$0xff]   ;;  %v1155_v13 = vld [vmem:[%s1248_s29 + $0x50] sm:$0xff]  }
  0x13   : > { %1086 = vmatprep.mubr.bf16.mxu1 %v1151_v5  ;;  %v1156_v14 = vld [vmem:[%s1248_s29 + $0x18] sm:$0xff]   ;;  %v1158_v16 = vld [vmem:[%s1248_s29 + $0x20] sm:$0xff]   ;;  %v1160_v18 = vld [vmem:[%s1248_s29 + $0x28] sm:$0xff]  }
  0x14   : > { %1061 = vmatpush3.bf16.msra.mxu0 %v1145_v3  ;;  %1113 = vmatpush3.bf16.msra.mxu1 %v1145_v3  ;;  %v1157_v15 = vld [vmem:[%s1248_s29 + $0x58] sm:$0xff]   ;;  %v1159_v17 = vld [vmem:[%s1248_s29 + $0x60] sm:$0xff]   ;;  %v1161_v19 = vld [vmem:[%s1248_s29 + $0x68] sm:$0xff]  }
  0x15   : > { %1062 = vmatprep.subr.bf16.mxu0 %v1146_v6  ;;  %1106 = vmatprep.subr.bf16.mxu1 %v1146_v6  ;;  %v1162_v20 = vld [vmem:[%s1248_s29 + $0x30] sm:$0xff]   ;;  %v1164_v22 = vld [vmem:[%s1248_s29 + $0x38] sm:$0xff]  }
  0x16   : > { %v1163_v21 = vld [vmem:[%s1248_s29 + $0x70] sm:$0xff]   ;;  %v1165_v23 = vld [vmem:[%s1248_s29 + $0x78] sm:$0xff]  }
  0x18   : > { %1063 = vmatpush3.bf16.msra.mxu0 %v1146_v6  ;;  %1114 = vmatpush3.bf16.msra.mxu1 %v1146_v6 }
  0x19   : > { %1064 = vmatprep.subr.bf16.mxu0 %v1147_v7  ;;  %1107 = vmatprep.subr.bf16.mxu1 %v1147_v7 }
  0x1c   : > { %1065 = vmatpush3.bf16.msra.mxu0 %v1147_v7  ;;  %1115 = vmatpush3.bf16.msra.mxu1 %v1147_v7 }
  0x1d   : > { %1066 = vmatprep.subr.bf16.mxu0 %v1148_v8  ;;  %1108 = vmatprep.subr.bf16.mxu1 %v1148_v8 }
  0x20   : > { %1067 = vmatpush3.bf16.msra.mxu0 %v1148_v8  ;;  %1116 = vmatpush3.bf16.msra.mxu1 %v1148_v8 }
  0x21   : > { %1068 = vmatprep.subr.bf16.mxu0 %v1149_v9  ;;  %1109 = vmatprep.subr.bf16.mxu1 %v1149_v9 }
  0x24   : > { %1069 = vmatpush3.bf16.msra.mxu0 %v1149_v9  ;;  %1117 = vmatpush3.bf16.msra.mxu1 %v1149_v9 }
  0x27   : > { %1071 = vmatmul.mubr.bf16.vlgmr.msra.gmra.mrb[0].mxu0 %v1152_v10  ;;  %1087 = vmatmul.mubr.bf16.vlgmr.msra.gmra.mrb[0].mxu1 %v1153_v11 }
  0x28   : > { %1074 = vmatprep.mubr.bf16.mxu0 %v1154_v12  ;;  %1090 = vmatprep.mubr.bf16.mxu1 %v1155_v13 }
  0x2f   : > { %1075 = vmatmul.mubr.bf16.gmra.mrb[4].mxu0 %v1156_v14  ;;  %1091 = vmatmul.mubr.bf16.gmra.mrb[4].mxu1 %v1157_v15 }
  0x30   : > { %1078 = vmatprep.mubr.bf16.mxu0 %v1158_v16  ;;  %1094 = vmatprep.mubr.bf16.mxu1 %v1159_v17 }
  0x37   : > { %1079 = vmatmul.mubr.bf16.gmra.mrb[8].mxu0 %v1160_v18  ;;  %1095 = vmatmul.mubr.bf16.gmra.mrb[8].mxu1 %v1161_v19 }
  0x38   : > { %1082 = vmatprep.mubr.bf16.mxu0 %v1162_v20  ;;  %1098 = vmatprep.mubr.bf16.mxu1 %v1163_v21 }
  0x3f   : > { %1083 = vmatmul.mubr.bf16.gmra.mrb[12].mxu0 %v1164_v22  ;;  %1099 = vmatmul.mubr.bf16.gmra.mrb[12].mxu1 %v1165_v23 }
  0xfa   : > { %v1072_v25 = vpop.f32.mrb[0].mxu0  ;;  %v1088_v27 = vpop.f32.mrb[0].mxu1 }
  0xfb   : > { %v776_v28 = vmul.f32 %v1072_v25, %v1284_v24  ;;  %v792_v29 = vmul.f32 %v1088_v27, %v1284_v24  ;;  %v541_v30 = vpop.f32.mrb[1].mxu0  ;;  %v605_v31 = vpop.f32.mrb[1].mxu1 }
  0xfc   : > { %v774_v32 = vmul.f32 %v1284_v24, %v541_v30  ;;  %v790_v33 = vmul.f32 %v1284_v24, %v605_v31  ;;  %v1073_v34 = vpop.f32.mrb[2].mxu0  ;;  %v1089_v35 = vpop.f32.mrb[2].mxu1 }
  0xfd   : > { %v815_v36 = vadd.f32 %v1289_v26, %v776_v28  ;;  %v831_v37 = vadd.f32 %v1289_v26, %v792_v29  ;;  %v777_v38 = vmul.f32 %v1073_v34, %v1284_v24  ;;  %v793_v39 = vmul.f32 %v1089_v35, %v1284_v24  ;;  %v544_v40 = vpop.f32.mrb[3].mxu0  ;;  %v608_v41 = vpop.f32.mrb[3].mxu1 }
  0xfe   : > { %v813_v42 = vadd.f32 %v1289_v26, %v774_v32  ;;  %v829_v43 = vadd.f32 %v1289_v26, %v790_v33  ;;  %v775_v44 = vmul.f32 %v1284_v24, %v544_v40  ;;  %v791_v45 = vmul.f32 %v1284_v24, %v608_v41 }
  0xff   : > { %v847_v46 = vmax.f32 %v815_v36, 0.0  ;;  %v863_v47 = vmax.f32 %v831_v37, 0.0  ;;  %v816_v48 = vadd.f32 %v1289_v26, %v777_v38  ;;  %v832_v49 = vadd.f32 %v1289_v26, %v793_v39 }
 0x100   : > { %v845_v50 = vmax.f32 %v813_v42, 0.0  ;;  %v861_v51 = vmax.f32 %v829_v43, 0.0  ;;  %v814_v52 = vadd.f32 %v1289_v26, %v775_v44  ;;  %v830_v53 = vadd.f32 %v1289_v26, %v791_v45 }
 0x101   : > { %879 = vst [vmem:[%s1303_s24 + $0x10] sm:$0xff] %v847_v46  ;;  %895 = vst [vmem:[%s1303_s24 + $0x90] sm:$0xff] %v863_v47  ;;  %v848_v54 = vmax.f32 %v816_v48, 0.0  ;;  %v864_v55 = vmax.f32 %v832_v49, 0.0 }
 0x102   : > { %877 = vst [vmem:[%s1303_s24] sm:$0xff] %v845_v50  ;;  %893 = vst [vmem:[%s1303_s24 + $0x80] sm:$0xff] %v861_v51  ;;  %v846_v56 = vmax.f32 %v814_v52, 0.0  ;;  %v862_v57 = vmax.f32 %v830_v53, 0.0  ;;  %v1076_v58 = vpop.f32.mrb[4].mxu0  ;;  %v1092_v59 = vpop.f32.mrb[4].mxu1 }
 0x103   : > { %880 = vst [vmem:[%s1303_s24 + $0x18] sm:$0xff] %v848_v54  ;;  %896 = vst [vmem:[%s1303_s24 + $0x98] sm:$0xff] %v864_v55  ;;  %v780_v60 = vmul.f32 %v1076_v58, %v1284_v24  ;;  %v796_v61 = vmul.f32 %v1092_v59, %v1284_v24  ;;  %v557_v62 = vpop.f32.mrb[5].mxu0  ;;  %v621_v63 = vpop.f32.mrb[5].mxu1 }
 0x104   : > { %878 = vst [vmem:[%s1303_s24 + $0x8] sm:$0xff] %v846_v56  ;;  %894 = vst [vmem:[%s1303_s24 + $0x88] sm:$0xff] %v862_v57  ;;  %v778_v0 = vmul.f32 %v1284_v24, %v557_v62  ;;  %v794_v1 = vmul.f32 %v1284_v24, %v621_v63  ;;  %v1077_v2 = vpop.f32.mrb[6].mxu0  ;;  %v1093_v3 = vpop.f32.mrb[6].mxu1 }
 0x105   : > { %v819_v4 = vadd.f32 %v1289_v26, %v780_v60  ;;  %v835_v5 = vadd.f32 %v1289_v26, %v796_v61  ;;  %v781_v6 = vmul.f32 %v1077_v2, %v1284_v24  ;;  %v797_v7 = vmul.f32 %v1093_v3, %v1284_v24  ;;  %v560_v8 = vpop.f32.mrb[7].mxu0  ;;  %v624_v9 = vpop.f32.mrb[7].mxu1 }
 0x106   : > { %v817_v10 = vadd.f32 %v1289_v26, %v778_v0  ;;  %v833_v11 = vadd.f32 %v1289_v26, %v794_v1  ;;  %v779_v12 = vmul.f32 %v1284_v24, %v560_v8  ;;  %v795_v13 = vmul.f32 %v1284_v24, %v624_v9 }
 0x107   : > { %v851_v14 = vmax.f32 %v819_v4, 0.0  ;;  %v867_v15 = vmax.f32 %v835_v5, 0.0  ;;  %v820_v16 = vadd.f32 %v1289_v26, %v781_v6  ;;  %v836_v17 = vadd.f32 %v1289_v26, %v797_v7 }
 0x108   : > { %v849_v18 = vmax.f32 %v817_v10, 0.0  ;;  %v865_v19 = vmax.f32 %v833_v11, 0.0  ;;  %v818_v20 = vadd.f32 %v1289_v26, %v779_v12  ;;  %v834_v21 = vadd.f32 %v1289_v26, %v795_v13 }
 0x109   : > { %883 = vst [vmem:[%s1303_s24 + $0x30] sm:$0xff] %v851_v14  ;;  %899 = vst [vmem:[%s1303_s24 + $0xb0] sm:$0xff] %v867_v15  ;;  %v852_v22 = vmax.f32 %v820_v16, 0.0  ;;  %v868_v23 = vmax.f32 %v836_v17, 0.0 }
 0x10a   : > { %881 = vst [vmem:[%s1303_s24 + $0x20] sm:$0xff] %v849_v18  ;;  %897 = vst [vmem:[%s1303_s24 + $0xa0] sm:$0xff] %v865_v19  ;;  %v850_v25 = vmax.f32 %v818_v20, 0.0  ;;  %v866_v27 = vmax.f32 %v834_v21, 0.0  ;;  %v1080_v28 = vpop.f32.mrb[8].mxu0  ;;  %v1096_v29 = vpop.f32.mrb[8].mxu1 }
 0x10b   : > { %884 = vst [vmem:[%s1303_s24 + $0x38] sm:$0xff] %v852_v22  ;;  %900 = vst [vmem:[%s1303_s24 + $0xb8] sm:$0xff] %v868_v23  ;;  %v784_v30 = vmul.f32 %v1080_v28, %v1284_v24  ;;  %v800_v31 = vmul.f32 %v1096_v29, %v1284_v24  ;;  %v573_v32 = vpop.f32.mrb[9].mxu0  ;;  %v637_v33 = vpop.f32.mrb[9].mxu1 }
 0x10c   : > { %882 = vst [vmem:[%s1303_s24 + $0x28] sm:$0xff] %v850_v25  ;;  %898 = vst [vmem:[%s1303_s24 + $0xa8] sm:$0xff] %v866_v27  ;;  %v782_v34 = vmul.f32 %v1284_v24, %v573_v32  ;;  %v798_v35 = vmul.f32 %v1284_v24, %v637_v33  ;;  %v1081_v36 = vpop.f32.mrb[10].mxu0  ;;  %v1097_v37 = vpop.f32.mrb[10].mxu1 }
 0x10d   : > { %v823_v38 = vadd.f32 %v1289_v26, %v784_v30  ;;  %v839_v39 = vadd.f32 %v1289_v26, %v800_v31  ;;  %v785_v40 = vmul.f32 %v1081_v36, %v1284_v24  ;;  %v801_v41 = vmul.f32 %v1097_v37, %v1284_v24  ;;  %v576_v42 = vpop.f32.mrb[11].mxu0  ;;  %v640_v43 = vpop.f32.mrb[11].mxu1 }
 0x10e   : > { %v821_v44 = vadd.f32 %v1289_v26, %v782_v34  ;;  %v837_v45 = vadd.f32 %v1289_v26, %v798_v35  ;;  %v783_v46 = vmul.f32 %v1284_v24, %v576_v42  ;;  %v799_v47 = vmul.f32 %v1284_v24, %v640_v43 }
 0x10f   : > { %v855_v48 = vmax.f32 %v823_v38, 0.0  ;;  %v871_v49 = vmax.f32 %v839_v39, 0.0  ;;  %v824_v50 = vadd.f32 %v1289_v26, %v785_v40  ;;  %v840_v51 = vadd.f32 %v1289_v26, %v801_v41 }
 0x110   : > { %v853_v52 = vmax.f32 %v821_v44, 0.0  ;;  %v869_v53 = vmax.f32 %v837_v45, 0.0  ;;  %v822_v54 = vadd.f32 %v1289_v26, %v783_v46  ;;  %v838_v55 = vadd.f32 %v1289_v26, %v799_v47 }
 0x111   : > { %887 = vst [vmem:[%s1303_s24 + $0x50] sm:$0xff] %v855_v48  ;;  %903 = vst [vmem:[%s1303_s24 + $0xd0] sm:$0xff] %v871_v49  ;;  %v856_v56 = vmax.f32 %v824_v50, 0.0  ;;  %v872_v57 = vmax.f32 %v840_v51, 0.0 }
 0x112   : > { %885 = vst [vmem:[%s1303_s24 + $0x40] sm:$0xff] %v853_v52  ;;  %901 = vst [vmem:[%s1303_s24 + $0xc0] sm:$0xff] %v869_v53  ;;  %v854_v58 = vmax.f32 %v822_v54, 0.0  ;;  %v870_v59 = vmax.f32 %v838_v55, 0.0  ;;  %v1084_v60 = vpop.f32.mrb[12].mxu0  ;;  %v1100_v61 = vpop.f32.mrb[12].mxu1 }
 0x113   : > { %888 = vst [vmem:[%s1303_s24 + $0x58] sm:$0xff] %v856_v56  ;;  %904 = vst [vmem:[%s1303_s24 + $0xd8] sm:$0xff] %v872_v57  ;;  %v788_v62 = vmul.f32 %v1084_v60, %v1284_v24  ;;  %v804_v63 = vmul.f32 %v1100_v61, %v1284_v24  ;;  %v589_v0 = vpop.f32.mrb[13].mxu0  ;;  %v653_v1 = vpop.f32.mrb[13].mxu1 }
 0x114   : > { %886 = vst [vmem:[%s1303_s24 + $0x48] sm:$0xff] %v854_v58  ;;  %902 = vst [vmem:[%s1303_s24 + $0xc8] sm:$0xff] %v870_v59  ;;  %v786_v2 = vmul.f32 %v1284_v24, %v589_v0  ;;  %v802_v3 = vmul.f32 %v1284_v24, %v653_v1  ;;  %v1085_v4 = vpop.f32.mrb[14].mxu0  ;;  %v1101_v5 = vpop.f32.mrb[14].mxu1 }
 0x115   : > { %v827_v6 = vadd.f32 %v1289_v26, %v788_v62  ;;  %v843_v7 = vadd.f32 %v1289_v26, %v804_v63  ;;  %v789_v8 = vmul.f32 %v1085_v4, %v1284_v24  ;;  %v805_v9 = vmul.f32 %v1101_v5, %v1284_v24  ;;  %v592_v10 = vpop.f32.mrb[15].mxu0  ;;  %v656_v11 = vpop.f32.mrb[15].mxu1 }
 0x116   : > { %v825_v12 = vadd.f32 %v1289_v26, %v786_v2  ;;  %v841_v13 = vadd.f32 %v1289_v26, %v802_v3  ;;  %v787_v14 = vmul.f32 %v1284_v24, %v592_v10  ;;  %v803_v15 = vmul.f32 %v1284_v24, %v656_v11 }
 0x117   : > { %v859_v16 = vmax.f32 %v827_v6, 0.0  ;;  %v875_v17 = vmax.f32 %v843_v7, 0.0  ;;  %v828_v18 = vadd.f32 %v1289_v26, %v789_v8  ;;  %v844_v19 = vadd.f32 %v1289_v26, %v805_v9 }
 0x118   : > { %v857_v20 = vmax.f32 %v825_v12, 0.0  ;;  %v873_v21 = vmax.f32 %v841_v13, 0.0  ;;  %v826_v22 = vadd.f32 %v1289_v26, %v787_v14  ;;  %v842_v23 = vadd.f32 %v1289_v26, %v803_v15 }
 0x119   : > { %891 = vst [vmem:[%s1303_s24 + $0x70] sm:$0xff] %v859_v16  ;;  %907 = vst [vmem:[%s1303_s24 + $0xf0] sm:$0xff] %v875_v17  ;;  %v860_v25 = vmax.f32 %v828_v18, 0.0  ;;  %v876_v24 = vmax.f32 %v844_v19, 0.0 }
 0x11a   : > { %889 = vst [vmem:[%s1303_s24 + $0x60] sm:$0xff] %v857_v20  ;;  %905 = vst [vmem:[%s1303_s24 + $0xe0] sm:$0xff] %v873_v21  ;;  %v858_v27 = vmax.f32 %v826_v22, 0.0  ;;  %v874_v28 = vmax.f32 %v842_v23, 0.0 }
 0x11b   : > { %892 = vst [vmem:[%s1303_s24 + $0x78] sm:$0xff] %v860_v25  ;;  %908 = vst [vmem:[%s1303_s24 + $0xf8] sm:$0xff] %v876_v24 }
 0x11c   : > { %890 = vst [vmem:[%s1303_s24 + $0x68] sm:$0xff] %v858_v27  ;;  %906 = vst [vmem:[%s1303_s24 + $0xe8] sm:$0xff] %v874_v28 }
 0x11d PF: > { %s14_s17 = sadd.s32 1, %s1188_s17   ;;  %s1407_s15 = smov %s1184_s16 }
 0x11e   : > { %p11_p5 = scmp.ge.s32.totalorder %s14_s17, 4   ;;  %s1408_s16 = smov %s1410_s18 }
 0x120   :  { %13 = sbr.rel (!%p11_p5) target bundleno = 2 (0x2), region = 77 }

// kernel: basic_residual_se_block.9
= control target key start
LH: loop header
LB: loop body
LE: loop exit
PB: predicated region body
PF: predicated region fallthrough
CT: control target
= control target key end

     0   :  { %s463_s6 = smov 0   ;;  %s465_s7 = smov 0   ;;  %s631_s0 = inlined_call_operand.vmem [shape: f32[2,256,128], index: 0, kind: input, shape index: {}]   ;;  %s632_s1 = inlined_call_operand.vmem [shape: f32[2,128], index: 1, kind: output, shape index: {}]  }
   0x1   :  { %s467_s8 = smov 0  }
   0x2 LB: > { %s390_s9 = sadd.s32 4294967295, %s450_s8   ;;  %s480_s10 = sadd.s32 1, %s450_s8   ;;  %s450_s8 = sphi %s467_s8, %s635_s8   ;;  %s446_s7 = sphi %s465_s7, %s634_s7   ;;  %s442_s6 = sphi %s463_s6, %s633_s6  }
   0x3   : > { %s15_s11 = ssub.s32 %s450_s8, %s480_s10  ;;  %s18_s12 = sadd.s32 1, %s446_s7 }
   0x4   : > { %p16_p0 = scmp.eq.s32.totalorder %s15_s11, 0  ;;  %p25_p1 = scmp.ne.s32.totalorder %s446_s7, %s442_s6 }
   0x5   : > { %p26_p2 = scmp.eq.s32.totalorder %s450_s8, 0  ;;  %p392_p4 = scmp.ge.s32.totalorder %s450_s8, 2 }
   0x6   : > { %s489_s13 = scalar_select %p16_p0, %s446_s7, %s18_s12  }
   0x7   : > { %p27_p3 = por %p26_p2, %p25_p1  ;;  %72 = sbr.rel (%p392_p4) target bundleno = 34 (0x22), region = 16 }
   0xe   : > { %75 = sbr.rel (!%p27_p3) target bundleno = 34 (0x22), region = 20  ;;  %s77_s14 = sand.u32 (%p27_p3), 1, %s446_s7  }
   0xf   : > { %s402_s15 = sshll.u32 (%p27_p3), %s450_s8, 7  ;;  %s393_s16 = sshll.u32 (%p27_p3), %s77_s14, 8 }
  0x10   : > { %s497_s19 = scalar_lea.vmem (%p27_p3), %s631_s0, %s402_s15  ;;  %s502_s20 = scalar_lea.vmem (%p27_p3), [#allocation2], %s393_s16 }
  0x11   : > { %v172_v0 = vld [vmem:[%s497_s19] sm:$0xff] (%p27_p3)  ;;  %v174_v1 = vld [vmem:[%s497_s19 + $0x8] sm:$0xff] (%p27_p3)  ;;  %v176_v2 = vld [vmem:[%s497_s19 + $0x10] sm:$0xff] (%p27_p3) }
  0x12   : > { %173 = vst [vmem:[%s502_s20] sm:$0xff] (%p27_p3), %v172_v0  ;;  %175 = vst [vmem:[%s502_s20 + $0x8] sm:$0xff] (%p27_p3), %v174_v1  ;;  %v178_v3 = vld [vmem:[%s497_s19 + $0x18] sm:$0xff] (%p27_p3)  ;;  %v180_v4 = vld [vmem:[%s497_s19 + $0x20] sm:$0xff] (%p27_p3) }
  0x13   : > { %177 = vst [vmem:[%s502_s20 + $0x10] sm:$0xff] (%p27_p3), %v176_v2  ;;  %v182_v5 = vld [vmem:[%s497_s19 + $0x28] sm:$0xff] (%p27_p3)  ;;  %179 = vst [vmem:[%s502_s20 + $0x18] sm:$0xff] (%p27_p3), %v178_v3  ;;  %v184_v6 = vld [vmem:[%s497_s19 + $0x30] sm:$0xff] (%p27_p3) }
  0x14   : > { %181 = vst [vmem:[%s502_s20 + $0x20] sm:$0xff] (%p27_p3), %v180_v4  ;;  %183 = vst [vmem:[%s502_s20 + $0x28] sm:$0xff] (%p27_p3), %v182_v5  ;;  %v186_v7 = vld [vmem:[%s497_s19 + $0x38] sm:$0xff] (%p27_p3)  ;;  %v188_v8 = vld [vmem:[%s497_s19 + $0x40] sm:$0xff] (%p27_p3) }
  0x15   : > { %185 = vst [vmem:[%s502_s20 + $0x30] sm:$0xff] %v184_v6  ;;  %187 = vst [vmem:[%s502_s20 + $0x38] sm:$0xff] %v186_v7  ;;  %v190_v9 = vld [vmem:[%s497_s19 + $0x48] sm:$0xff]  ;;  %v192_v10 = vld [vmem:[%s497_s19 + $0x50] sm:$0xff] }
  0x16   : > { %189 = vst [vmem:[%s502_s20 + $0x40] sm:$0xff] %v188_v8  ;;  %v194_v11 = vld [vmem:[%s497_s19 + $0x58] sm:$0xff]  ;;  %191 = vst [vmem:[%s502_s20 + $0x48] sm:$0xff] %v190_v9  ;;  %v196_v12 = vld [vmem:[%s497_s19 + $0x60] sm:$0xff] }
  0x17   : > { %193 = vst [vmem:[%s502_s20 + $0x50] sm:$0xff] %v192_v10  ;;  %195 = vst [vmem:[%s502_s20 + $0x58] sm:$0xff] %v194_v11  ;;  %v198_v13 = vld [vmem:[%s497_s19 + $0x68] sm:$0xff]  ;;  %v200_v14 = vld [vmem:[%s497_s19 + $0x70] sm:$0xff] }
  0x18   : > { %197 = vst [vmem:[%s502_s20 + $0x60] sm:$0xff] %v196_v12  ;;  %199 = vst [vmem:[%s502_s20 + $0x68] sm:$0xff] %v198_v13  ;;  %v202_v15 = vld [vmem:[%s497_s19 + $0x78] sm:$0xff]  ;;  %v204_v16 = vld [vmem:[%s497_s19 + $0x100] sm:$0xff] }
  0x19   : > { %201 = vst [vmem:[%s502_s20 + $0x70] sm:$0xff] %v200_v14  ;;  %v206_v17 = vld [vmem:[%s497_s19 + $0x108] sm:$0xff]  ;;  %203 = vst [vmem:[%s502_s20 + $0x78] sm:$0xff] %v202_v15  ;;  %v208_v18 = vld [vmem:[%s497_s19 + $0x110] sm:$0xff] }
  0x1a   : > { %205 = vst [vmem:[%s502_s20 + $0x80] sm:$0xff] %v204_v16  ;;  %207 = vst [vmem:[%s502_s20 + $0x88] sm:$0xff] %v206_v17  ;;  %v210_v19 = vld [vmem:[%s497_s19 + $0x118] sm:$0xff]  ;;  %v212_v20 = vld [vmem:[%s497_s19 + $0x120] sm:$0xff] }
  0x1b   : > { %209 = vst [vmem:[%s502_s20 + $0x90] sm:$0xff] %v208_v18  ;;  %211 = vst [vmem:[%s502_s20 + $0x98] sm:$0xff] %v210_v19  ;;  %v214_v21 = vld [vmem:[%s497_s19 + $0x128] sm:$0xff]  ;;  %v216_v22 = vld [vmem:[%s497_s19 + $0x130] sm:$0xff] }
  0x1c   : > { %213 = vst [vmem:[%s502_s20 + $0xa0] sm:$0xff] %v212_v20  ;;  %v218_v23 = vld [vmem:[%s497_s19 + $0x138] sm:$0xff]  ;;  %215 = vst [vmem:[%s502_s20 + $0xa8] sm:$0xff] %v214_v21  ;;  %v220_v24 = vld [vmem:[%s497_s19 + $0x140] sm:$0xff] }
  0x1d   : > { %217 = vst [vmem:[%s502_s20 + $0xb0] sm:$0xff] %v216_v22  ;;  %219 = vst [vmem:[%s502_s20 + $0xb8] sm:$0xff] %v218_v23  ;;  %v222_v25 = vld [vmem:[%s497_s19 + $0x148] sm:$0xff]  ;;  %v224_v26 = vld [vmem:[%s497_s19 + $0x150] sm:$0xff] }
  0x1e   : > { %221 = vst [vmem:[%s502_s20 + $0xc0] sm:$0xff] %v220_v24  ;;  %223 = vst [vmem:[%s502_s20 + $0xc8] sm:$0xff] %v222_v25  ;;  %v226_v27 = vld [vmem:[%s497_s19 + $0x158] sm:$0xff]  ;;  %v228_v28 = vld [vmem:[%s497_s19 + $0x160] sm:$0xff] }
  0x1f   : > { %225 = vst [vmem:[%s502_s20 + $0xd0] sm:$0xff] %v224_v26  ;;  %v230_v29 = vld [vmem:[%s497_s19 + $0x168] sm:$0xff]  ;;  %227 = vst [vmem:[%s502_s20 + $0xd8] sm:$0xff] %v226_v27  ;;  %v232_v30 = vld [vmem:[%s497_s19 + $0x170] sm:$0xff] }
  0x20   : > { %229 = vst [vmem:[%s502_s20 + $0xe0] sm:$0xff] %v228_v28  ;;  %231 = vst [vmem:[%s502_s20 + $0xe8] sm:$0xff] %v230_v29  ;;  %v234_v31 = vld [vmem:[%s497_s19 + $0x178] sm:$0xff] }
  0x21   : > { %233 = vst [vmem:[%s502_s20 + $0xf0] sm:$0xff] %v232_v30  ;;  %235 = vst [vmem:[%s502_s20 + $0xf8] sm:$0xff] %v234_v31 }
  0x22 PF: > { %p396_p5 = scmp.ge.s32.totalorder %s450_s8, 1  ;;  %p240_p6 = scmp.lt.s32.totalorder %s450_s8, 3 }
  0x24   : > { %p241_p7 = pnand %p396_p5, %p240_p6 }
  0x25   : > { %s247_s21 = sand.u32 (!%p241_p7), 1, %s442_s6   ;;  %p398_p8 = scmp.ne.s32.totalorder (!%p241_p7), %s390_s9, 0 }
  0x26   : > { %244 = sbr.rel (%p241_p7) target bundleno = 111 (0x6f), region = 58  ;;  %s397_s22 = sshll.u32 (!%p241_p7), %s247_s21, 8 }
  0x27   : > { %s568_s23 = scalar_lea.vmem (!%p241_p7), [#allocation2], %s397_s22 }
  0x2d   : > { %265 = sbr.rel (%p398_p8) target bundleno = 52 (0x34), region = 66  ;;  %v452_v32 = vmov (!%p398_p8), 0.0  }
  0x2e   : > { %266 = vst [vmem:[%s632_s1] sm:$0x3] (!%p398_p8), %v452_v32 }
  0x34 PF: > { %v268_v33 = vld [vmem:[%s568_s23] sm:$0xff]  ;;  %v269_v34 = vld [vmem:[%s568_s23 + $0x8] sm:$0xff]  ;;  %v270_v35 = vld [vmem:[%s568_s23 + $0x10] sm:$0xff]  ;;  %vm344_vm0 = vcmask 1041409   ;;  %p399_p9 = scmp.ne.s32.totalorder %s390_s9, 1 }
  0x35   : > { %v300_v36 = vadd.f32 %v269_v34, %v268_v33  ;;  %v271_v37 = vld [vmem:[%s568_s23 + $0x18] sm:$0xff]  ;;  %v272_v39 = vld [vmem:[%s568_s23 + $0x20] sm:$0xff]  ;;  %v273_v42 = vld [vmem:[%s568_s23 + $0x28] sm:$0xff] }
  0x36   : > { %v284_v40 = vld [vmem:[%s568_s23 + $0x80] sm:$0xff]  ;;  %v285_v43 = vld [vmem:[%s568_s23 + $0x88] sm:$0xff]  ;;  %v286_v44 = vld [vmem:[%s568_s23 + $0x90] sm:$0xff] }
  0x37   : > { %v301_v38 = vadd.f32 %v300_v36, %v270_v35  ;;  %v321_v46 = vadd.f32 %v285_v43, %v284_v40  ;;  %v274_v47 = vld [vmem:[%s568_s23 + $0x30] sm:$0xff]  ;;  %v287_v48 = vld [vmem:[%s568_s23 + $0x98] sm:$0xff]  ;;  %v288_v52 = vld [vmem:[%s568_s23 + $0xa0] sm:$0xff] }
  0x38   : > { %v275_v51 = vld [vmem:[%s568_s23 + $0x38] sm:$0xff]  ;;  %v276_v55 = vld [vmem:[%s568_s23 + $0x40] sm:$0xff]  ;;  %v289_v56 = vld [vmem:[%s568_s23 + $0xa8] sm:$0xff] }
  0x39   : > { %v302_v41 = vadd.f32 %v301_v38, %v271_v37  ;;  %v322_v50 = vadd.f32 %v321_v46, %v286_v44  ;;  %v277_v59 = vld [vmem:[%s568_s23 + $0x48] sm:$0xff]  ;;  %v290_v60 = vld [vmem:[%s568_s23 + $0xb0] sm:$0xff]  ;;  %v291_v0 = vld [vmem:[%s568_s23 + $0xb8] sm:$0xff] }
  0x3a   : > { %v278_v63 = vld [vmem:[%s568_s23 + $0x50] sm:$0xff]  ;;  %v279_v3 = vld [vmem:[%s568_s23 + $0x58] sm:$0xff]  ;;  %v292_v4 = vld [vmem:[%s568_s23 + $0xc0] sm:$0xff] }
  0x3b   : > { %v303_v45 = vadd.f32 %v302_v41, %v272_v39  ;;  %v323_v54 = vadd.f32 %v322_v50, %v287_v48  ;;  %v280_v7 = vld [vmem:[%s568_s23 + $0x60] sm:$0xff]  ;;  %v293_v8 = vld [vmem:[%s568_s23 + $0xc8] sm:$0xff]  ;;  %v294_v12 = vld [vmem:[%s568_s23 + $0xd0] sm:$0xff] }
  0x3c   : > { %v281_v11 = vld [vmem:[%s568_s23 + $0x68] sm:$0xff]  ;;  %v282_v15 = vld [vmem:[%s568_s23 + $0x70] sm:$0xff]  ;;  %v295_v16 = vld [vmem:[%s568_s23 + $0xd8] sm:$0xff] }
  0x3d   : > { %v304_v49 = vadd.f32 %v303_v45, %v273_v42  ;;  %v324_v58 = vadd.f32 %v323_v54, %v288_v52  ;;  %v283_v19 = vld [vmem:[%s568_s23 + $0x78] sm:$0xff]  ;;  %v296_v20 = vld [vmem:[%s568_s23 + $0xe0] sm:$0xff]  ;;  %v297_v23 = vld [vmem:[%s568_s23 + $0xe8] sm:$0xff] }
  0x3e   : > { %v298_v26 = vld [vmem:[%s568_s23 + $0xf0] sm:$0xff]  ;;  %v299_v29 = vld [vmem:[%s568_s23 + $0xf8] sm:$0xff]  ;;  %v267_v42 = vld [vmem:[%s632_s1] sm:$0x3] }
  0x3f   : > { %v305_v53 = vadd.f32 %v304_v49, %v274_v47  ;;  %v325_v62 = vadd.f32 %v324_v58, %v289_v56 }
  0x41   : > { %v306_v57 = vadd.f32 %v305_v53, %v275_v51  ;;  %v326_v2 = vadd.f32 %v325_v62, %v290_v60 }
  0x43   : > { %v307_v61 = vadd.f32 %v306_v57, %v276_v55  ;;  %v327_v6 = vadd.f32 %v326_v2, %v291_v0 }
  0x45   : > { %v308_v1 = vadd.f32 %v307_v61, %v277_v59  ;;  %v328_v10 = vadd.f32 %v327_v6, %v292_v4 }
  0x47   : > { %v309_v5 = vadd.f32 %v308_v1, %v278_v63  ;;  %v329_v14 = vadd.f32 %v328_v10, %v293_v8 }
  0x49   : > { %v310_v9 = vadd.f32 %v309_v5, %v279_v3  ;;  %v330_v18 = vadd.f32 %v329_v14, %v294_v12 }
  0x4b   : > { %v311_v13 = vadd.f32 %v310_v9, %v280_v7  ;;  %v331_v22 = vadd.f32 %v330_v18, %v295_v16 }
  0x4d   : > { %v312_v17 = vadd.f32 %v311_v13, %v281_v11  ;;  %v332_v25 = vadd.f32 %v331_v22, %v296_v20 }
  0x4f   : > { %v313_v21 = vadd.f32 %v312_v17, %v282_v15  ;;  %v333_v28 = vadd.f32 %v332_v25, %v297_v23 }
  0x51   : > { %v314_v24 = vadd.f32 %v313_v21, %v283_v19  ;;  %v334_v31 = vadd.f32 %v333_v28, %v298_v26 }
  0x53   : > { %v315_v27 = vrot.slane %v314_v24, 4  ;;  %v335_v33 = vadd.f32 %v334_v31, %v299_v29 }
  0x55   : > { %v316_v30 = vadd.f32 %v315_v27, %v314_v24  ;;  %v336_v35 = vrot.slane %v335_v33, 4 }
  0x57   : > { %v317_v32 = vrot.slane %v316_v30, 2  ;;  %v337_v36 = vadd.f32 %v336_v35, %v335_v33 }
  0x59   : > { %v318_v34 = vadd.f32 %v317_v32, %v316_v30  ;;  %v338_v38 = vrot.slane %v337_v36, 2 }
  0x5b   : > { %v319_v37 = vrot.slane %v318_v34, 1  ;;  %v339_v39 = vadd.f32 %v338_v38, %v337_v36 }
  0x5d   : > { %v320_v40 = vadd.f32 %v319_v37, %v318_v34  ;;  %v340_v41 = vrot.slane %v339_v39, 1 }
  0x5e   : > { %352 = sbr.rel (%p399_p9) target bundleno = 111 (0x6f), region = 70 }
  0x5f   : > { %v341_v43 = vadd.f32 %v340_v41, %v339_v39 }
  0x61   : > { %v345_v44 = vsel %vm344_vm0, %v341_v43, %v320_v40 }
  0x62   : > { %v347_v45 = vadd.f32 %v345_v44, %v267_v42 }
  0x64   : > { %348 = vst [vmem:[%s632_s1] sm:$0x3] %v347_v45 }
  0x6b   : > { %v353_v46 = vld [vmem:[%s632_s1] sm:$0x3] }
  0x6c   : > { %v354_v47 = vmul.f32 0.00390625, %v353_v46 }
  0x6e   : > { %355 = vst [vmem:[%s632_s1] sm:$0x3] %v354_v47 }
  0x6f PF: > { %p8_p10 = scmp.ge.s32.totalorder %s480_s10, 4   ;;  %s633_s6 = smov %s446_s7 }
  0x70   : > { %s634_s7 = smov %s489_s13  ;;  %s635_s8 = smov %s480_s10 }
  0x71   :  { %10 = sbr.rel (!%p8_p10) target bundleno = 2 (0x2), region = 101 }

// kernel: basic_residual_se_block.7
= control target key start
LH: loop header
LB: loop body
LE: loop exit
PB: predicated region body
PF: predicated region fallthrough
CT: control target
= control target key end

     0   :  { %s1452_s15 = smov 0   ;;  %s1454_s16 = smov 0   ;;  %s1750_s0 = inlined_call_operand.vmem [shape: bf16[512,640], index: 0, kind: input, shape index: {}]   ;;  %s1751_s1 = inlined_call_operand.vmem [shape: bf16[640,128], index: 1, kind: input, shape index: {}]   ;;  %s1752_s2 = inlined_call_operand.vmem [shape: f32[1,128], index: 2, kind: input, shape index: {}]   ;;  %s1753_s3 = inlined_call_operand.vmem [shape: f32[1,128], index: 3, kind: input, shape index: {}]   ;;  %s1754_s4 = inlined_call_operand.vmem [shape: f32[512,128], index: 4, kind: output, shape index: {}]  }
   0x1   :  { %s1456_s17 = smov 0   ;;  %s1458_s18 = smov 0  }
   0x2   :  { %s1460_s19 = smov 0   ;;  %s1462_s20 = smov 0  }
   0x3   :  { %s1464_s21 = smov 0  }
   0x4 LB: > { %s23_s22 = sadd.s32 1, %s1416_s19  ;;  %s26_s23 = sadd.s32 1, %s1420_s20  ;;  %s1424_s21 = sphi %s1464_s21, %s14_s21   ;;  %s1420_s20 = sphi %s1462_s20, %s1760_s20   ;;  %s1416_s19 = sphi %s1460_s19, %s1759_s19   ;;  %s1412_s18 = sphi %s1458_s18, %s1758_s18   ;;  %s1408_s17 = sphi %s1456_s17, %s1757_s17   ;;  %s1404_s16 = sphi %s1454_s16, %s1756_s16   ;;  %s1400_s15 = sphi %s1452_s15, %s1755_s15  }
   0x5   : > { %p24_p0 = scmp.ge.s32.totalorder %s23_s22, 5  ;;  %p42_p1 = scmp.ne.s32.totalorder %s1404_s16, %s1400_s15 }
   0x6   : > { %p43_p2 = scmp.eq.s32.totalorder %s1424_s21, 0  ;;  %s35_s27 = sadd.s32 1, %s1404_s16 }
   0x7   : > { %s1762_s22 = smov (%p24_p0, %s23_s22), 0  ;;  %s1764_s23 = smov (!%p24_p0, %s26_s23), %s1420_s20 }
   0x8   : > { %p44_p3 = por %p43_p2, %p42_p1  ;;  %p28_p4 = scmp.ge.s32.totalorder %s1764_s23, 2 }
   0x9   : > { %s31_s24 = ssub.s32 %s1416_s19, %s1762_s22  ;;  %p1159_p6 = scmp.ge.s32.totalorder %s1424_s21, 10 }
   0xa   : > { %s1766_s23 = smov (%p28_p4, %s1764_s23), 0 }
   0xb   : > { %s30_s25 = ssub.s32 %s1420_s20, %s1766_s23  ;;  %168 = sbr.rel (%p1159_p6) target bundleno = 46 (0x2e), region = 24 }
   0xc   : > { %s32_s26 = sor.u32 %s31_s24, %s30_s25 }
   0xd   : > { %p33_p5 = scmp.eq.s32.totalorder %s32_s26, 0 }
   0xf   : > { %s1503_s28 = scalar_select %p33_p5, %s1404_s16, %s35_s27  }
  0x12   : > { %171 = sbr.rel (!%p44_p3) target bundleno = 46 (0x2e), region = 28  ;;  %s173_s29 = sand.u32 (%p44_p3), 1, %s1404_s16  }
  0x13   : > { %s1288_s30 = smul.u32 (%p44_p3), 160, %s1420_s20  ;;  %s1160_s5 = sshll.u32 (%p44_p3), %s173_s29, 7 }
  0x14   : > { %s1517_s11 = scalar_lea.vmem (%p44_p3), [#allocation3], %s1160_s5 }
  0x15   : > { %s178_s6 = sadd.s32 (%p44_p3), %s1416_s19, %s1288_s30 }
  0x16   : > { %s1163_s7 = sshll.u32 (%p44_p3), %s178_s6, 2 }
  0x17   : > { %s1512_s10 = scalar_lea.vmem (%p44_p3), %s1750_s0, %s1163_s7 }
  0x18   : > { %v196_v0 = vld [vmem:[%s1512_s10] sm:$0xf] (%p44_p3)  ;;  %v198_v1 = vld [vmem:[%s1512_s10 + $0x14] sm:$0xf] (%p44_p3)  ;;  %v200_v2 = vld [vmem:[%s1512_s10 + $0x28] sm:$0xf] (%p44_p3) }
  0x19   : > { %197 = vst [vmem:[%s1517_s11] sm:$0xf] %v196_v0  ;;  %199 = vst [vmem:[%s1517_s11 + $0x4] sm:$0xf] %v198_v1  ;;  %v202_v3 = vld [vmem:[%s1512_s10 + $0x3c] sm:$0xf] }
  0x1a   : > { %201 = vst [vmem:[%s1517_s11 + $0x8] sm:$0xf] %v200_v2  ;;  %v204_v4 = vld [vmem:[%s1512_s10 + $0x50] sm:$0xf]  ;;  %v206_v5 = vld [vmem:[%s1512_s10 + $0x64] sm:$0xf] }
  0x1b   : > { %203 = vst [vmem:[%s1517_s11 + $0xc] sm:$0xf] %v202_v3  ;;  %205 = vst [vmem:[%s1517_s11 + $0x10] sm:$0xf] %v204_v4  ;;  %v208_v6 = vld [vmem:[%s1512_s10 + $0x78] sm:$0xf] }
  0x1c   : > { %207 = vst [vmem:[%s1517_s11 + $0x14] sm:$0xf] %v206_v5  ;;  %v210_v7 = vld [vmem:[%s1512_s10 + $0x8c] sm:$0xf]  ;;  %v212_v8 = vld [vmem:[%s1512_s10 + $0xa0] sm:$0xf] }
  0x1d   : > { %209 = vst [vmem:[%s1517_s11 + $0x18] sm:$0xf] %v208_v6  ;;  %211 = vst [vmem:[%s1517_s11 + $0x1c] sm:$0xf] %v210_v7  ;;  %v214_v9 = vld [vmem:[%s1512_s10 + $0xb4] sm:$0xf] }
  0x1e   : > { %213 = vst [vmem:[%s1517_s11 + $0x20] sm:$0xf] %v212_v8  ;;  %v216_v10 = vld [vmem:[%s1512_s10 + $0xc8] sm:$0xf]  ;;  %v218_v11 = vld [vmem:[%s1512_s10 + $0xdc] sm:$0xf] }
  0x1f   : > { %215 = vst [vmem:[%s1517_s11 + $0x24] sm:$0xf] %v214_v9  ;;  %217 = vst [vmem:[%s1517_s11 + $0x28] sm:$0xf] %v216_v10  ;;  %v220_v12 = vld [vmem:[%s1512_s10 + $0xf0] sm:$0xf] }
  0x20   : > { %219 = vst [vmem:[%s1517_s11 + $0x2c] sm:$0xf] %v218_v11  ;;  %v222_v13 = vld [vmem:[%s1512_s10 + $0x104] sm:$0xf]  ;;  %v224_v14 = vld [vmem:[%s1512_s10 + $0x118] sm:$0xf] }
  0x21   : > { %221 = vst [vmem:[%s1517_s11 + $0x30] sm:$0xf] %v220_v12  ;;  %223 = vst [vmem:[%s1517_s11 + $0x34] sm:$0xf] %v222_v13  ;;  %v226_v15 = vld [vmem:[%s1512_s10 + $0x12c] sm:$0xf] }
  0x22   : > { %225 = vst [vmem:[%s1517_s11 + $0x38] sm:$0xf] %v224_v14  ;;  %v228_v16 = vld [vmem:[%s1512_s10 + $0x140] sm:$0xf]  ;;  %v230_v17 = vld [vmem:[%s1512_s10 + $0x154] sm:$0xf] }
  0x23   : > { %227 = vst [vmem:[%s1517_s11 + $0x3c] sm:$0xf] %v226_v15  ;;  %229 = vst [vmem:[%s1517_s11 + $0x40] sm:$0xf] %v228_v16  ;;  %v232_v18 = vld [vmem:[%s1512_s10 + $0x168] sm:$0xf] }
  0x24   : > { %231 = vst [vmem:[%s1517_s11 + $0x44] sm:$0xf] %v230_v17  ;;  %v234_v19 = vld [vmem:[%s1512_s10 + $0x17c] sm:$0xf]  ;;  %v236_v20 = vld [vmem:[%s1512_s10 + $0x190] sm:$0xf] }
  0x25   : > { %233 = vst [vmem:[%s1517_s11 + $0x48] sm:$0xf] %v232_v18  ;;  %235 = vst [vmem:[%s1517_s11 + $0x4c] sm:$0xf] %v234_v19  ;;  %v238_v21 = vld [vmem:[%s1512_s10 + $0x1a4] sm:$0xf] }
  0x26   : > { %237 = vst [vmem:[%s1517_s11 + $0x50] sm:$0xf] %v236_v20  ;;  %v240_v22 = vld [vmem:[%s1512_s10 + $0x1b8] sm:$0xf]  ;;  %v242_v23 = vld [vmem:[%s1512_s10 + $0x1cc] sm:$0xf] }
  0x27   : > { %239 = vst [vmem:[%s1517_s11 + $0x54] sm:$0xf] %v238_v21  ;;  %241 = vst [vmem:[%s1517_s11 + $0x58] sm:$0xf] %v240_v22  ;;  %v244_v24 = vld [vmem:[%s1512_s10 + $0x1e0] sm:$0xf] }
  0x28   : > { %243 = vst [vmem:[%s1517_s11 + $0x5c] sm:$0xf] %v242_v23  ;;  %v246_v25 = vld [vmem:[%s1512_s10 + $0x1f4] sm:$0xf]  ;;  %v248_v26 = vld [vmem:[%s1512_s10 + $0x208] sm:$0xf] }
  0x29   : > { %245 = vst [vmem:[%s1517_s11 + $0x60] sm:$0xf] %v244_v24  ;;  %247 = vst [vmem:[%s1517_s11 + $0x64] sm:$0xf] %v246_v25  ;;  %v250_v27 = vld [vmem:[%s1512_s10 + $0x21c] sm:$0xf] }
  0x2a   : > { %249 = vst [vmem:[%s1517_s11 + $0x68] sm:$0xf] %v248_v26  ;;  %v252_v28 = vld [vmem:[%s1512_s10 + $0x230] sm:$0xf]  ;;  %v254_v29 = vld [vmem:[%s1512_s10 + $0x244] sm:$0xf] }
  0x2b   : > { %251 = vst [vmem:[%s1517_s11 + $0x6c] sm:$0xf] %v250_v27  ;;  %253 = vst [vmem:[%s1517_s11 + $0x70] sm:$0xf] %v252_v28  ;;  %v256_v30 = vld [vmem:[%s1512_s10 + $0x258] sm:$0xf] }
  0x2c   : > { %255 = vst [vmem:[%s1517_s11 + $0x74] sm:$0xf] %v254_v29  ;;  %v258_v31 = vld [vmem:[%s1512_s10 + $0x26c] sm:$0xf]  ;;  %257 = vst [vmem:[%s1517_s11 + $0x78] sm:$0xf] %v256_v30 }
  0x2d   : > { %259 = vst [vmem:[%s1517_s11 + $0x7c] sm:$0xf] %v258_v31 }
  0x2e PF: > { %p1164_p7 = scmp.ge.s32.totalorder %s1424_s21, 1  ;;  %p354_p8 = scmp.lt.s32.totalorder %s1424_s21, 11 }
  0x30   : > { %p355_p9 = pnand %p1164_p7, %p354_p8 }
  0x31   : > { %s361_s12 = sand.u32 (!%p355_p9), 1, %s1400_s15   ;;  %s1166_s13 = sshll.u32 (!%p355_p9), %s1408_s17, 4 }
  0x32   : > { %358 = sbr.rel (%p355_p9) target bundleno = 368 (0x170), region = 73  ;;  %s1165_s14 = sshll.u32 (!%p355_p9), %s361_s12, 7 }
  0x33   : > { %p393_p10 = scmp.lt.s32.totalorder (!%p355_p9), %s1166_s13, 79  ;;  %s1168_s24 = sshll.u32 (!%p355_p9), %s1412_s18, 5 }
  0x34   : > { %p399_p11 = scmp.lt.s32.totalorder (!%p355_p9), %s1168_s24, 63  ;;  %s1595_s15 = scalar_lea.vmem (!%p355_p9), [#allocation3], %s1165_s14 }
  0x35   : > { %p1170_p12 = scmp.ne.s32.totalorder (!%p355_p9), %s1408_s17, 0 }
  0x39   : > { %s1768_s13 = smov (!%p393_p10, %s1166_s13), 79  ;;  %s1770_s24 = smov (!%p399_p11, %s1168_s24), 63 }
  0x3a   : > { %s1167_s25 = sshll.u32 %s1768_s13, 2  ;;  %s1169_s30 = sshll.u32 %s1770_s24, 3  ;;  %v1426_v32 = vmov (!%p1170_p12), 0.0  }
  0x3b   : > { %s1588_s29 = scalar_lea.vmem %s1751_s1, %s1167_s25  ;;  %s1593_s7 = scalar_lea.vmem %s1754_s4, %s1169_s30  ;;  %409 = vst [vmem:[#allocation2] sm:$0xff] (!%p1170_p12), %v1426_v32  ;;  %410 = vst [vmem:[#allocation2 + $0x8] sm:$0xff] (!%p1170_p12), %v1426_v32 }
  0x3c   : > { %408 = sbr.rel (%p1170_p12) target bundleno = 75 (0x4b), region = 81  ;;  %411 = vst [vmem:[#allocation2 + $0x10] sm:$0xff] (!%p1170_p12), %v1426_v32  ;;  %412 = vst [vmem:[#allocation2 + $0x18] sm:$0xff] (!%p1170_p12), %v1426_v32 }
  0x3d   : > { %413 = vst [vmem:[#allocation2 + $0x20] sm:$0xff] (!%p1170_p12), %v1426_v32  ;;  %414 = vst [vmem:[#allocation2 + $0x28] sm:$0xff] (!%p1170_p12), %v1426_v32 }
  0x3e   : > { %415 = vst [vmem:[#allocation2 + $0x30] sm:$0xff] (!%p1170_p12), %v1426_v32  ;;  %416 = vst [vmem:[#allocation2 + $0x38] sm:$0xff] (!%p1170_p12), %v1426_v32 }
  0x3f   : > { %417 = vst [vmem:[#allocation2 + $0x40] sm:$0xff] (!%p1170_p12), %v1426_v32  ;;  %418 = vst [vmem:[#allocation2 + $0x48] sm:$0xff] (!%p1170_p12), %v1426_v32 }
  0x40   : > { %419 = vst [vmem:[#allocation2 + $0x50] sm:$0xff] (!%p1170_p12), %v1426_v32  ;;  %420 = vst [vmem:[#allocation2 + $0x58] sm:$0xff] (!%p1170_p12), %v1426_v32 }
  0x41   : > { %421 = vst [vmem:[#allocation2 + $0x60] sm:$0xff] (!%p1170_p12), %v1426_v32  ;;  %422 = vst [vmem:[#allocation2 + $0x68] sm:$0xff] (!%p1170_p12), %v1426_v32 }
  0x42   : > { %423 = vst [vmem:[#allocation2 + $0x70] sm:$0xff] (!%p1170_p12), %v1426_v32  ;;  %424 = vst [vmem:[#allocation2 + $0x78] sm:$0xff] (!%p1170_p12), %v1426_v32 }
  0x43   : > { %425 = vst [vmem:[#allocation2 + $0x80] sm:$0xff] %v1426_v32  ;;  %426 = vst [vmem:[#allocation2 + $0x88] sm:$0xff] %v1426_v32 }
  0x44   : > { %427 = vst [vmem:[#allocation2 + $0x90] sm:$0xff] %v1426_v32  ;;  %428 = vst [vmem:[#allocation2 + $0x98] sm:$0xff] %v1426_v32 }
  0x45   : > { %429 = vst [vmem:[#allocation2 + $0xa0] sm:$0xff] %v1426_v32  ;;  %430 = vst [vmem:[#allocation2 + $0xa8] sm:$0xff] %v1426_v32 }
  0x46   : > { %431 = vst [vmem:[#allocation2 + $0xb0] sm:$0xff] %v1426_v32  ;;  %432 = vst [vmem:[#allocation2 + $0xb8] sm:$0xff] %v1426_v32 }
  0x47   : > { %433 = vst [vmem:[#allocation2 + $0xc0] sm:$0xff] %v1426_v32  ;;  %434 = vst [vmem:[#allocation2 + $0xc8] sm:$0xff] %v1426_v32 }
  0x48   : > { %435 = vst [vmem:[#allocation2 + $0xd0] sm:$0xff] %v1426_v32  ;;  %436 = vst [vmem:[#allocation2 + $0xd8] sm:$0xff] %v1426_v32 }
  0x49   : > { %437 = vst [vmem:[#allocation2 + $0xe0] sm:$0xff] %v1426_v32  ;;  %438 = vst [vmem:[#allocation2 + $0xe8] sm:$0xff] %v1426_v32 }
  0x4a   : > { %439 = vst [vmem:[#allocation2 + $0xf0] sm:$0xff] %v1426_v32  ;;  %440 = vst [vmem:[#allocation2 + $0xf8] sm:$0xff] %v1426_v32 }
  0x4b PF: > { %v1346_v33 = vld [vmem:[%s1588_s29] sm:$0xff]   ;;  %v1347_v34 = vld [vmem:[%s1588_s29 + $0x8] sm:$0xff]   ;;  %v1348_v35 = vld [vmem:[%s1588_s29 + $0x10] sm:$0xff]   ;;  %p1195_p13 = scmp.ne.s32.totalorder %s1408_s17, 4 }
  0x4c   : > { %1224 = vmatprep.subr.bf16.mxu0 %v1346_v33  ;;  %1272 = vmatprep.subr.bf16.mxu1 %v1346_v33  ;;  %v1349_v36 = vld [vmem:[%s1588_s29 + $0x18] sm:$0xff]   ;;  %v1354_v37 = vld [vmem:[%s1595_s15] sm:$0xff]   ;;  %v1351_v40 = vld [vmem:[%s1588_s29 + $0x28] sm:$0xff]  }
  0x4d   : > { %1225 = vmatpush3.bf16.msra.mxu0 %v1346_v33  ;;  %1280 = vmatpush3.bf16.msra.mxu1 %v1346_v33  ;;  %v1355_v38 = vld [vmem:[%s1595_s15 + $0x40] sm:$0xff]   ;;  %v1352_v41 = vld [vmem:[%s1588_s29 + $0x30] sm:$0xff]   ;;  %v1353_v42 = vld [vmem:[%s1588_s29 + $0x38] sm:$0xff]  }
  0x4e   : > { %1226 = vmatprep.subr.bf16.mxu0 %v1347_v34  ;;  %1273 = vmatprep.subr.bf16.mxu1 %v1347_v34  ;;  %v1350_v39 = vld [vmem:[%s1588_s29 + $0x20] sm:$0xff]   ;;  %v1356_v43 = vld [vmem:[%s1595_s15 + $0x8] sm:$0xff]   ;;  %v1358_v45 = vld [vmem:[%s1595_s15 + $0x10] sm:$0xff]  }
  0x4f   : > { %1240 = vmatprep.mubr.bf16.mxu0 %v1354_v37  ;;  %1256 = vmatprep.mubr.bf16.mxu1 %v1355_v38  ;;  %v1357_v44 = vld [vmem:[%s1595_s15 + $0x48] sm:$0xff]   ;;  %v1359_v46 = vld [vmem:[%s1595_s15 + $0x50] sm:$0xff]   ;;  %v1360_v47 = vld [vmem:[%s1595_s15 + $0x18] sm:$0xff]  }
  0x50   : > { %v1361_v48 = vld [vmem:[%s1595_s15 + $0x58] sm:$0xff]   ;;  %v1362_v49 = vld [vmem:[%s1595_s15 + $0x20] sm:$0xff]   ;;  %v1364_v51 = vld [vmem:[%s1595_s15 + $0x28] sm:$0xff]  }
  0x51   : > { %1227 = vmatpush3.bf16.msra.mxu0 %v1347_v34  ;;  %1281 = vmatpush3.bf16.msra.mxu1 %v1347_v34  ;;  %v1363_v50 = vld [vmem:[%s1595_s15 + $0x60] sm:$0xff]   ;;  %v1365_v52 = vld [vmem:[%s1595_s15 + $0x68] sm:$0xff]   ;;  %v1366_v53 = vld [vmem:[%s1595_s15 + $0x30] sm:$0xff]  }
  0x52   : > { %1228 = vmatprep.subr.bf16.mxu0 %v1348_v35  ;;  %1274 = vmatprep.subr.bf16.mxu1 %v1348_v35  ;;  %v1367_v54 = vld [vmem:[%s1595_s15 + $0x70] sm:$0xff]   ;;  %v1368_v55 = vld [vmem:[%s1595_s15 + $0x38] sm:$0xff]   ;;  %v441_v59 = vld [vmem:[#allocation2] sm:$0xff] }
  0x53   : > { %v1369_v56 = vld [vmem:[%s1595_s15 + $0x78] sm:$0xff]   ;;  %v443_v57 = vld [vmem:[#allocation2 + $0x10] sm:$0xff]  ;;  %v457_v60 = vld [vmem:[#allocation2 + $0x80] sm:$0xff] }
  0x54   : > { %v459_v58 = vld [vmem:[#allocation2 + $0x90] sm:$0xff]  ;;  %v444_v63 = vld [vmem:[#allocation2 + $0x18] sm:$0xff]  ;;  %v442_v5 = vld [vmem:[#allocation2 + $0x8] sm:$0xff] }
  0x55   : > { %1229 = vmatpush3.bf16.msra.mxu0 %v1348_v35  ;;  %1282 = vmatpush3.bf16.msra.mxu1 %v1348_v35  ;;  %v460_v0 = vld [vmem:[#allocation2 + $0x98] sm:$0xff]  ;;  %v458_v6 = vld [vmem:[#allocation2 + $0x88] sm:$0xff]  ;;  %v447_v17 = vld [vmem:[#allocation2 + $0x30] sm:$0xff] }
  0x56   : > { %1230 = vmatprep.subr.bf16.mxu0 %v1349_v36  ;;  %1275 = vmatprep.subr.bf16.mxu1 %v1349_v36  ;;  %v463_v18 = vld [vmem:[#allocation2 + $0xb0] sm:$0xff]  ;;  %v445_v19 = vld [vmem:[#allocation2 + $0x20] sm:$0xff]  ;;  %v448_v23 = vld [vmem:[#allocation2 + $0x38] sm:$0xff] }
  0x57   : > { %v461_v20 = vld [vmem:[#allocation2 + $0xa0] sm:$0xff]  ;;  %v464_v24 = vld [vmem:[#allocation2 + $0xb8] sm:$0xff]  ;;  %v446_v29 = vld [vmem:[#allocation2 + $0x28] sm:$0xff] }
  0x58   : > { %v462_v30 = vld [vmem:[#allocation2 + $0xa8] sm:$0xff] }
  0x59   : > { %1231 = vmatpush3.bf16.msra.mxu0 %v1349_v36  ;;  %1283 = vmatpush3.bf16.msra.mxu1 %v1349_v36 }
  0x5a   : > { %1232 = vmatprep.subr.bf16.mxu0 %v1350_v39  ;;  %1276 = vmatprep.subr.bf16.mxu1 %v1350_v39 }
  0x5d   : > { %1233 = vmatpush3.bf16.msra.mxu0 %v1350_v39  ;;  %1284 = vmatpush3.bf16.msra.mxu1 %v1350_v39 }
  0x5e   : > { %1234 = vmatprep.subr.bf16.mxu0 %v1351_v40  ;;  %1277 = vmatprep.subr.bf16.mxu1 %v1351_v40 }
  0x61   : > { %1235 = vmatpush3.bf16.msra.mxu0 %v1351_v40  ;;  %1285 = vmatpush3.bf16.msra.mxu1 %v1351_v40 }
  0x62   : > { %1236 = vmatprep.subr.bf16.mxu0 %v1352_v41  ;;  %1278 = vmatprep.subr.bf16.mxu1 %v1352_v41 }
  0x65   : > { %1237 = vmatpush3.bf16.msra.mxu0 %v1352_v41  ;;  %1286 = vmatpush3.bf16.msra.mxu1 %v1352_v41  ;;  %v451_v41 = vld [vmem:[#allocation2 + $0x50] sm:$0xff] }
  0x66   : > { %1238 = vmatprep.subr.bf16.mxu0 %v1353_v42  ;;  %1279 = vmatprep.subr.bf16.mxu1 %v1353_v42 }
  0x69   : > { %1239 = vmatpush3.bf16.msra.mxu0 %v1353_v42  ;;  %1287 = vmatpush3.bf16.msra.mxu1 %v1353_v42  ;;  %v467_v42 = vld [vmem:[#allocation2 + $0xd0] sm:$0xff] }
  0x6c   : > { %1241 = vmatmul.mubr.bf16.vlgmr.msra.gmra.mrb[0].mxu0 %v1356_v43  ;;  %1257 = vmatmul.mubr.bf16.vlgmr.msra.gmra.mrb[0].mxu1 %v1357_v44  ;;  %v449_v43 = vld [vmem:[#allocation2 + $0x40] sm:$0xff] }
  0x6d   : > { %1244 = vmatprep.mubr.bf16.mxu0 %v1358_v45  ;;  %1260 = vmatprep.mubr.bf16.mxu1 %v1359_v46  ;;  %v465_v44 = vld [vmem:[#allocation2 + $0xc0] sm:$0xff] }
  0x74   : > { %1245 = vmatmul.mubr.bf16.gmra.mrb[4].mxu0 %v1360_v47  ;;  %1261 = vmatmul.mubr.bf16.gmra.mrb[4].mxu1 %v1361_v48  ;;  %v452_v47 = vld [vmem:[#allocation2 + $0x58] sm:$0xff] }
  0x75   : > { %1248 = vmatprep.mubr.bf16.mxu0 %v1362_v49  ;;  %1264 = vmatprep.mubr.bf16.mxu1 %v1363_v50  ;;  %v468_v48 = vld [vmem:[#allocation2 + $0xd8] sm:$0xff] }
  0x7c   : > { %1249 = vmatmul.mubr.bf16.gmra.mrb[8].mxu0 %v1364_v51  ;;  %1265 = vmatmul.mubr.bf16.gmra.mrb[8].mxu1 %v1365_v52 }
  0x7d   : > { %1252 = vmatprep.mubr.bf16.mxu0 %v1366_v53  ;;  %1268 = vmatprep.mubr.bf16.mxu1 %v1367_v54  ;;  %v450_v53 = vld [vmem:[#allocation2 + $0x48] sm:$0xff] }
  0x7e   : > { %v466_v54 = vld [vmem:[#allocation2 + $0xc8] sm:$0xff] }
  0x84   : > { %1253 = vmatmul.mubr.bf16.gmra.mrb[12].mxu0 %v1368_v55  ;;  %1269 = vmatmul.mubr.bf16.gmra.mrb[12].mxu1 %v1369_v56 }
 0x13f   : > { %v1242_v61 = vpop.f32.mrb[0].mxu0  ;;  %v1258_v62 = vpop.f32.mrb[0].mxu1 }
 0x140   : > { %v828_v1 = vadd.f32 %v1242_v61, %v443_v57  ;;  %v844_v2 = vadd.f32 %v1258_v62, %v459_v58  ;;  %v699_v3 = vpop.f32.mrb[1].mxu0  ;;  %v763_v4 = vpop.f32.mrb[1].mxu1 }
 0x141   : > { %v826_v7 = vadd.f32 %v699_v3, %v441_v59  ;;  %v842_v8 = vadd.f32 %v763_v4, %v457_v60  ;;  %v1243_v9 = vpop.f32.mrb[2].mxu0  ;;  %v1259_v10 = vpop.f32.mrb[2].mxu1  ;;  %v453_v3 = vld [vmem:[#allocation2 + $0x60] sm:$0xff] }
 0x142   : > { %860 = vst [vmem:[#allocation2 + $0x10] sm:$0xff] %v828_v1  ;;  %876 = vst [vmem:[#allocation2 + $0x90] sm:$0xff] %v844_v2  ;;  %v829_v11 = vadd.f32 %v1243_v9, %v444_v63  ;;  %v845_v12 = vadd.f32 %v1259_v10, %v460_v0  ;;  %v702_v13 = vpop.f32.mrb[3].mxu0  ;;  %v766_v14 = vpop.f32.mrb[3].mxu1  ;;  %v455_v1 = vld [vmem:[#allocation2 + $0x70] sm:$0xff]  ;;  %v469_v4 = vld [vmem:[#allocation2 + $0xe0] sm:$0xff] }
 0x143   : > { %858 = vst [vmem:[#allocation2] sm:$0xff] %v826_v7  ;;  %874 = vst [vmem:[#allocation2 + $0x80] sm:$0xff] %v842_v8  ;;  %v827_v15 = vadd.f32 %v702_v13, %v442_v5  ;;  %v843_v16 = vadd.f32 %v766_v14, %v458_v6  ;;  %v471_v2 = vld [vmem:[#allocation2 + $0xf0] sm:$0xff]  ;;  %v456_v7 = vld [vmem:[#allocation2 + $0x78] sm:$0xff] }
 0x144   : > { %861 = vst [vmem:[#allocation2 + $0x18] sm:$0xff] %v829_v11  ;;  %877 = vst [vmem:[#allocation2 + $0x98] sm:$0xff] %v845_v12  ;;  %v472_v8 = vld [vmem:[#allocation2 + $0xf8] sm:$0xff]  ;;  %v454_v13 = vld [vmem:[#allocation2 + $0x68] sm:$0xff] }
 0x145   : > { %859 = vst [vmem:[#allocation2 + $0x8] sm:$0xff] %v827_v15  ;;  %875 = vst [vmem:[#allocation2 + $0x88] sm:$0xff] %v843_v16  ;;  %v470_v14 = vld [vmem:[#allocation2 + $0xe8] sm:$0xff] }
 0x147   : > { %v1246_v21 = vpop.f32.mrb[4].mxu0  ;;  %v1262_v22 = vpop.f32.mrb[4].mxu1 }
 0x148   : > { %v832_v25 = vadd.f32 %v1246_v21, %v447_v17  ;;  %v848_v26 = vadd.f32 %v1262_v22, %v463_v18  ;;  %v715_v27 = vpop.f32.mrb[5].mxu0  ;;  %v779_v28 = vpop.f32.mrb[5].mxu1 }
 0x149   : > { %v830_v31 = vadd.f32 %v715_v27, %v445_v19  ;;  %v846_v32 = vadd.f32 %v779_v28, %v461_v20  ;;  %v1247_v33 = vpop.f32.mrb[6].mxu0  ;;  %v1263_v34 = vpop.f32.mrb[6].mxu1  ;;  %v1631_v27 = vld [vmem:[%s1753_s3] ss:$0 sm:$0xff] (!%p1195_p13) }
 0x14a   : > { %864 = vst [vmem:[#allocation2 + $0x30] sm:$0xff] %v832_v25  ;;  %880 = vst [vmem:[#allocation2 + $0xb0] sm:$0xff] %v848_v26  ;;  %v833_v35 = vadd.f32 %v1247_v33, %v448_v23  ;;  %v849_v36 = vadd.f32 %v1263_v34, %v464_v24  ;;  %v718_v37 = vpop.f32.mrb[7].mxu0  ;;  %v782_v38 = vpop.f32.mrb[7].mxu1  ;;  %v894_v25 = vld [vmem:[#allocation2] sm:$0xff] (!%p1195_p13) }
 0x14b   : > { %862 = vst [vmem:[#allocation2 + $0x20] sm:$0xff] %v830_v31  ;;  %878 = vst [vmem:[#allocation2 + $0xa0] sm:$0xff] %v846_v32  ;;  %v831_v39 = vadd.f32 %v718_v37, %v446_v29  ;;  %v847_v40 = vadd.f32 %v782_v38, %v462_v30  ;;  %v1626_v26 = vld [vmem:[%s1752_s2] ss:$0 sm:$0xff] (!%p1195_p13)  ;;  %v896_v30 = vld [vmem:[#allocation2 + $0x10] sm:$0xff] (!%p1195_p13) }
 0x14c   : > { %865 = vst [vmem:[#allocation2 + $0x38] sm:$0xff] %v833_v35  ;;  %881 = vst [vmem:[#allocation2 + $0xb8] sm:$0xff] %v849_v36  ;;  %v933_v28 = vmul.f32 (!%p1195_p13), %v1626_v26, %v894_v25  ;;  %v895_v29 = vld [vmem:[#allocation2 + $0x8] sm:$0xff] (!%p1195_p13)  ;;  %v897_v31 = vld [vmem:[#allocation2 + $0x18] sm:$0xff] (!%p1195_p13)  ;;  %v935_v33 = vmul.f32 (!%p1195_p13), %v1626_v26, %v896_v30 }
 0x14d   : > { %863 = vst [vmem:[#allocation2 + $0x28] sm:$0xff] %v831_v39  ;;  %879 = vst [vmem:[#allocation2 + $0xa8] sm:$0xff] %v847_v40  ;;  %v934_v32 = vmul.f32 (!%p1195_p13), %v1626_v26, %v895_v29  ;;  %v936_v34 = vmul.f32 (!%p1195_p13), %v1626_v26, %v897_v31 }
 0x14e   : > { %v972_v38 = vadd.f32 (!%p1195_p13), %v1631_v27, %v933_v28 }
 0x14f   : > { %v1250_v45 = vpop.f32.mrb[8].mxu0  ;;  %v1266_v46 = vpop.f32.mrb[8].mxu1 }
 0x150   : > { %v836_v49 = vadd.f32 %v1250_v45, %v451_v41  ;;  %v852_v50 = vadd.f32 %v1266_v46, %v467_v42  ;;  %v731_v51 = vpop.f32.mrb[9].mxu0  ;;  %v795_v52 = vpop.f32.mrb[9].mxu1  ;;  %v975_v45 = vadd.f32 (!%p1195_p13), %v1631_v27, %v936_v34 }
 0x151   : > { %v834_v55 = vadd.f32 %v731_v51, %v449_v43  ;;  %v850_v56 = vadd.f32 %v795_v52, %v465_v44  ;;  %v1251_v57 = vpop.f32.mrb[10].mxu0  ;;  %v1267_v58 = vpop.f32.mrb[10].mxu1  ;;  %v900_v37 = vld [vmem:[#allocation2 + $0x30] sm:$0xff] (!%p1195_p13)  ;;  %v973_v43 = vadd.f32 (!%p1195_p13), %v1631_v27, %v934_v32  ;;  %v974_v44 = vadd.f32 (!%p1195_p13), %v1631_v27, %v935_v33 }
 0x152   : > { %868 = vst [vmem:[#allocation2 + $0x50] sm:$0xff] %v836_v49  ;;  %884 = vst [vmem:[#allocation2 + $0xd0] sm:$0xff] %v852_v50  ;;  %v837_v59 = vadd.f32 %v1251_v57, %v452_v47  ;;  %v853_v60 = vadd.f32 %v1267_v58, %v468_v48  ;;  %v734_v61 = vpop.f32.mrb[11].mxu0  ;;  %v798_v62 = vpop.f32.mrb[11].mxu1  ;;  %v898_v35 = vld [vmem:[#allocation2 + $0x20] sm:$0xff] (!%p1195_p13)  ;;  %v939_v41 = vmul.f32 (!%p1195_p13), %v1626_v26, %v900_v37  ;;  %v1004_v48 = vmax.f32 (!%p1195_p13), %v972_v38, 0.0 }
 0x153   : > { %866 = vst [vmem:[#allocation2 + $0x40] sm:$0xff] %v834_v55  ;;  %882 = vst [vmem:[#allocation2 + $0xc0] sm:$0xff] %v850_v56  ;;  %v835_v63 = vadd.f32 %v734_v61, %v450_v53  ;;  %v851_v0 = vadd.f32 %v798_v62, %v466_v54  ;;  %v937_v39 = vmul.f32 (!%p1195_p13), %v1626_v26, %v898_v35  ;;  %v901_v42 = vld [vmem:[#allocation2 + $0x38] sm:$0xff] (!%p1195_p13)  ;;  %v1005_v55 = vmax.f32 (!%p1195_p13), %v973_v43, 0.0  ;;  %v914_v29 = vld [vmem:[#allocation2 + $0xa0] sm:$0xff] (!%p1195_p13) }
 0x154   : > { %869 = vst [vmem:[#allocation2 + $0x58] sm:$0xff] %v837_v59  ;;  %885 = vst [vmem:[#allocation2 + $0xd8] sm:$0xff] %v853_v60  ;;  %v899_v36 = vld [vmem:[#allocation2 + $0x28] sm:$0xff] (!%p1195_p13)  ;;  %v940_v46 = vmul.f32 (!%p1195_p13), %v1626_v26, %v901_v42  ;;  %v978_v51 = vadd.f32 (!%p1195_p13), %v1631_v27, %v939_v41  ;;  %v1006_v56 = vmax.f32 (!%p1195_p13), %v974_v44, 0.0  ;;  %v1007_v57 = vmax.f32 (!%p1195_p13), %v975_v45, 0.0  ;;  %v916_v31 = vld [vmem:[#allocation2 + $0xb0] sm:$0xff] (!%p1195_p13) }
 0x155   : > { %867 = vst [vmem:[#allocation2 + $0x48] sm:$0xff] %v835_v63  ;;  %883 = vst [vmem:[#allocation2 + $0xc8] sm:$0xff] %v851_v0  ;;  %v938_v40 = vmul.f32 (!%p1195_p13), %v1626_v26, %v899_v36  ;;  %v976_v49 = vadd.f32 (!%p1195_p13), %v1631_v27, %v937_v39  ;;  %v915_v30 = vld [vmem:[#allocation2 + $0xa8] sm:$0xff] (!%p1195_p13)  ;;  %v917_v36 = vld [vmem:[#allocation2 + $0xb8] sm:$0xff] (!%p1195_p13)  ;;  %v953_v42 = vmul.f32 (!%p1195_p13), %v1626_v26, %v914_v29 }
 0x156   : > { %v979_v58 = vadd.f32 (!%p1195_p13), %v1631_v27, %v940_v46  ;;  %1036 = vst [vmem:[%s1593_s7] sm:$0xff] (!%p1195_p13), %v1004_v48  ;;  %v1010_v0 = vmax.f32 (!%p1195_p13), %v978_v51, 0.0  ;;  %1037 = vst [vmem:[%s1593_s7 + $0x8] sm:$0xff] (!%p1195_p13), %v1005_v55  ;;  %v954_v43 = vmul.f32 (!%p1195_p13), %v1626_v26, %v915_v30  ;;  %v955_v44 = vmul.f32 (!%p1195_p13), %v1626_v26, %v916_v31 }
 0x157   : > { %v1254_v5 = vpop.f32.mrb[12].mxu0  ;;  %v1270_v6 = vpop.f32.mrb[12].mxu1  ;;  %893 = sbr.rel (%p1195_p13) target bundleno = 368 (0x170), region = 85  ;;  %v977_v50 = vadd.f32 (!%p1195_p13), %v1631_v27, %v938_v40  ;;  %v1008_v62 = vmax.f32 (!%p1195_p13), %v976_v49, 0.0  ;;  %1038 = vst [vmem:[%s1593_s7 + $0x10] sm:$0xff] (!%p1195_p13), %v1006_v56  ;;  %1039 = vst [vmem:[%s1593_s7 + $0x18] sm:$0xff] (!%p1195_p13), %v1007_v57  ;;  %v956_v48 = vmul.f32 (!%p1195_p13), %v1626_v26, %v917_v36  ;;  %v992_v51 = vadd.f32 (!%p1195_p13), %v1631_v27, %v953_v42 }
 0x158   : > { %v840_v9 = vadd.f32 %v1254_v5, %v455_v1  ;;  %v856_v10 = vadd.f32 %v1270_v6, %v471_v2  ;;  %v747_v11 = vpop.f32.mrb[13].mxu0  ;;  %v811_v12 = vpop.f32.mrb[13].mxu1  ;;  %1042 = vst [vmem:[%s1593_s7 + $0x30] sm:$0xff] (!%p1195_p13), %v1010_v0 }
 0x159   : > { %v838_v15 = vadd.f32 %v747_v11, %v453_v3  ;;  %v854_v16 = vadd.f32 %v811_v12, %v469_v4  ;;  %v1255_v17 = vpop.f32.mrb[14].mxu0  ;;  %v1271_v18 = vpop.f32.mrb[14].mxu1  ;;  %v904_v53 = vld [vmem:[#allocation2 + $0x50] sm:$0xff] (!%p1195_p13)  ;;  %v1009_v63 = vmax.f32 (!%p1195_p13), %v977_v50, 0.0  ;;  %v1011_v3 = vmax.f32 (!%p1195_p13), %v979_v58, 0.0  ;;  %1040 = vst [vmem:[%s1593_s7 + $0x20] sm:$0xff] (!%p1195_p13), %v1008_v62 }
 0x15a   : > { %872 = vst [vmem:[#allocation2 + $0x70] sm:$0xff] %v840_v9  ;;  %888 = vst [vmem:[#allocation2 + $0xf0] sm:$0xff] %v856_v10  ;;  %v841_v19 = vadd.f32 %v1255_v17, %v456_v7  ;;  %v857_v20 = vadd.f32 %v1271_v18, %v472_v8  ;;  %v750_v21 = vpop.f32.mrb[15].mxu0  ;;  %v814_v22 = vpop.f32.mrb[15].mxu1  ;;  %v902_v47 = vld [vmem:[#allocation2 + $0x40] sm:$0xff] (!%p1195_p13)  ;;  %v943_v5 = vmul.f32 (!%p1195_p13), %v1626_v26, %v904_v53  ;;  %v920_v55 = vld [vmem:[#allocation2 + $0xd0] sm:$0xff] (!%p1195_p13) }
 0x15b   : > { %870 = vst [vmem:[#allocation2 + $0x60] sm:$0xff] %v838_v15  ;;  %886 = vst [vmem:[#allocation2 + $0xe0] sm:$0xff] %v854_v16  ;;  %v839_v23 = vadd.f32 %v750_v21, %v454_v13  ;;  %v855_v24 = vadd.f32 %v814_v22, %v470_v14  ;;  %v905_v54 = vld [vmem:[#allocation2 + $0x58] sm:$0xff] (!%p1195_p13)  ;;  %v941_v1 = vmul.f32 (!%p1195_p13), %v1626_v26, %v902_v47  ;;  %v910_v15 = vld [vmem:[#allocation2 + $0x80] sm:$0xff] (!%p1195_p13)  ;;  %v1024_v0 = vmax.f32 (!%p1195_p13), %v992_v51, 0.0 }
 0x15c   : > { %873 = vst [vmem:[#allocation2 + $0x78] sm:$0xff] %v841_v19  ;;  %889 = vst [vmem:[#allocation2 + $0xf8] sm:$0xff] %v857_v20  ;;  %v903_v52 = vld [vmem:[#allocation2 + $0x48] sm:$0xff] (!%p1195_p13)  ;;  %v944_v6 = vmul.f32 (!%p1195_p13), %v1626_v26, %v905_v54  ;;  %v982_v12 = vadd.f32 (!%p1195_p13), %v1631_v27, %v943_v5  ;;  %v912_v21 = vld [vmem:[#allocation2 + $0x90] sm:$0xff] (!%p1195_p13)  ;;  %v949_v35 = vmul.f32 (!%p1195_p13), %v1626_v26, %v910_v15 }
 0x15d   : > { %871 = vst [vmem:[#allocation2 + $0x68] sm:$0xff] %v839_v23  ;;  %887 = vst [vmem:[#allocation2 + $0xe8] sm:$0xff] %v855_v24  ;;  %v942_v4 = vmul.f32 (!%p1195_p13), %v1626_v26, %v903_v52  ;;  %v980_v7 = vadd.f32 (!%p1195_p13), %v1631_v27, %v941_v1  ;;  %v911_v20 = vld [vmem:[#allocation2 + $0x88] sm:$0xff] (!%p1195_p13)  ;;  %v913_v22 = vld [vmem:[#allocation2 + $0x98] sm:$0xff] (!%p1195_p13)  ;;  %v951_v39 = vmul.f32 (!%p1195_p13), %v1626_v26, %v912_v21 }
 0x15e   : > { %1041 = vst [vmem:[%s1593_s7 + $0x28] sm:$0xff] %v1009_v63  ;;  %1043 = vst [vmem:[%s1593_s7 + $0x38] sm:$0xff] %v1011_v3  ;;  %v983_v13 = vadd.f32 %v1631_v27, %v944_v6  ;;  %v1014_v24 = vmax.f32 %v982_v12, 0.0  ;;  %v950_v38 = vmul.f32 %v1626_v26, %v911_v20  ;;  %v952_v40 = vmul.f32 %v1626_v26, %v913_v22  ;;  %v918_v49 = vld [vmem:[#allocation2 + $0xc0] sm:$0xff]  ;;  %v919_v54 = vld [vmem:[#allocation2 + $0xc8] sm:$0xff] }
 0x15f   : > { %v981_v11 = vadd.f32 %v1631_v27, %v942_v4  ;;  %v1012_v16 = vmax.f32 %v980_v7, 0.0  ;;  %v988_v41 = vadd.f32 %v1631_v27, %v949_v35  ;;  %v990_v46 = vadd.f32 %v1631_v27, %v951_v39  ;;  %v921_v56 = vld [vmem:[#allocation2 + $0xd8] sm:$0xff]  ;;  %1056 = vst [vmem:[%s1593_s7 + $0xa0] sm:$0xff] %v1024_v0 }
 0x160   : > { %v1015_v25 = vmax.f32 %v983_v13, 0.0  ;;  %1046 = vst [vmem:[%s1593_s7 + $0x50] sm:$0xff] %v1014_v24  ;;  %v989_v45 = vadd.f32 %v1631_v27, %v950_v38  ;;  %v991_v47 = vadd.f32 %v1631_v27, %v952_v40  ;;  %v993_v52 = vadd.f32 %v1631_v27, %v954_v43 }
 0x161   : > { %v908_v61 = vld [vmem:[#allocation2 + $0x70] sm:$0xff]  ;;  %v1013_v23 = vmax.f32 %v981_v11, 0.0  ;;  %1044 = vst [vmem:[%s1593_s7 + $0x40] sm:$0xff] %v1012_v16  ;;  %v1020_v50 = vmax.f32 %v988_v41, 0.0  ;;  %v994_v53 = vadd.f32 %v1631_v27, %v955_v44  ;;  %v1022_v58 = vmax.f32 %v990_v46, 0.0 }
 0x162   : > { %v906_v59 = vld [vmem:[#allocation2 + $0x60] sm:$0xff]  ;;  %v947_v10 = vmul.f32 %v1626_v26, %v908_v61  ;;  %1047 = vst [vmem:[%s1593_s7 + $0x58] sm:$0xff] %v1015_v25  ;;  %v1021_v57 = vmax.f32 %v989_v45, 0.0  ;;  %v924_v63 = vld [vmem:[#allocation2 + $0xf0] sm:$0xff]  ;;  %v1025_v1 = vmax.f32 %v993_v52, 0.0  ;;  %v957_v3 = vmul.f32 %v1626_v26, %v918_v49 }
 0x163   : > { %v909_v2 = vld [vmem:[#allocation2 + $0x78] sm:$0xff]  ;;  %v945_v8 = vmul.f32 %v1626_v26, %v906_v59  ;;  %1045 = vst [vmem:[%s1593_s7 + $0x48] sm:$0xff] %v1013_v23  ;;  %v1023_v59 = vmax.f32 %v991_v47, 0.0  ;;  %v922_v61 = vld [vmem:[#allocation2 + $0xe0] sm:$0xff]  ;;  %1052 = vst [vmem:[%s1593_s7 + $0x80] sm:$0xff] %v1020_v50  ;;  %v958_v6 = vmul.f32 %v1626_v26, %v919_v54  ;;  %v959_v7 = vmul.f32 %v1626_v26, %v920_v55 }
 0x164   : > { %v907_v60 = vld [vmem:[#allocation2 + $0x68] sm:$0xff]  ;;  %v948_v14 = vmul.f32 %v1626_v26, %v909_v2  ;;  %v986_v19 = vadd.f32 %v1631_v27, %v947_v10  ;;  %v1026_v2 = vmax.f32 %v994_v53, 0.0  ;;  %v925_v4 = vld [vmem:[#allocation2 + $0xf8] sm:$0xff]  ;;  %1053 = vst [vmem:[%s1593_s7 + $0x88] sm:$0xff] %v1021_v57  ;;  %1054 = vst [vmem:[%s1593_s7 + $0x90] sm:$0xff] %v1022_v58  ;;  %v961_v10 = vmul.f32 %v1626_v26, %v922_v61 }
 0x165   : > { %v946_v9 = vmul.f32 %v1626_v26, %v907_v60  ;;  %v984_v17 = vadd.f32 %v1631_v27, %v945_v8  ;;  %v995_v60 = vadd.f32 %v1631_v27, %v956_v48  ;;  %v923_v62 = vld [vmem:[#allocation2 + $0xe8] sm:$0xff]  ;;  %1055 = vst [vmem:[%s1593_s7 + $0x98] sm:$0xff] %v1023_v59  ;;  %v960_v8 = vmul.f32 %v1626_v26, %v921_v56 }
 0x166   : > { %v987_v28 = vadd.f32 %v1631_v27, %v948_v14  ;;  %v1018_v34 = vmax.f32 %v986_v19, 0.0  ;;  %1057 = vst [vmem:[%s1593_s7 + $0xa8] sm:$0xff] %v1025_v1  ;;  %1058 = vst [vmem:[%s1593_s7 + $0xb0] sm:$0xff] %v1026_v2  ;;  %v962_v11 = vmul.f32 %v1626_v26, %v923_v62  ;;  %v963_v12 = vmul.f32 %v1626_v26, %v924_v63 }
 0x167   : > { %v985_v18 = vadd.f32 %v1631_v27, %v946_v9  ;;  %v1016_v32 = vmax.f32 %v984_v17, 0.0  ;;  %v1027_v5 = vmax.f32 %v995_v60, 0.0  ;;  %v996_v9 = vadd.f32 %v1631_v27, %v957_v3 }
 0x168   : > { %v1019_v37 = vmax.f32 %v987_v28, 0.0  ;;  %1050 = vst [vmem:[%s1593_s7 + $0x70] sm:$0xff] %v1018_v34  ;;  %v997_v13 = vadd.f32 %v1631_v27, %v958_v6  ;;  %v998_v14 = vadd.f32 %v1631_v27, %v959_v7  ;;  %v999_v15 = vadd.f32 %v1631_v27, %v960_v8 }
 0x169   : > { %v1017_v33 = vmax.f32 %v985_v18, 0.0  ;;  %1048 = vst [vmem:[%s1593_s7 + $0x60] sm:$0xff] %v1016_v32  ;;  %1059 = vst [vmem:[%s1593_s7 + $0xb8] sm:$0xff] %v1027_v5  ;;  %v964_v16 = vmul.f32 %v1626_v26, %v925_v4  ;;  %v1028_v17 = vmax.f32 %v996_v9, 0.0  ;;  %v1000_v18 = vadd.f32 %v1631_v27, %v961_v10 }
 0x16a   : > { %1051 = vst [vmem:[%s1593_s7 + $0x78] sm:$0xff] %v1019_v37  ;;  %v1001_v19 = vadd.f32 %v1631_v27, %v962_v11  ;;  %v1002_v20 = vadd.f32 %v1631_v27, %v963_v12  ;;  %v1029_v21 = vmax.f32 %v997_v13, 0.0  ;;  %v1030_v22 = vmax.f32 %v998_v14, 0.0 }
 0x16b   : > { %1049 = vst [vmem:[%s1593_s7 + $0x68] sm:$0xff] %v1017_v33  ;;  %v1031_v23 = vmax.f32 %v999_v15, 0.0  ;;  %v1003_v24 = vadd.f32 %v1631_v27, %v964_v16  ;;  %1060 = vst [vmem:[%s1593_s7 + $0xc0] sm:$0xff] %v1028_v17  ;;  %v1032_v25 = vmax.f32 %v1000_v18, 0.0 }
 0x16c   : > { %v1033_v28 = vmax.f32 %v1001_v19, 0.0  ;;  %v1034_v26 = vmax.f32 %v1002_v20, 0.0  ;;  %1061 = vst [vmem:[%s1593_s7 + $0xc8] sm:$0xff] %v1029_v21  ;;  %1062 = vst [vmem:[%s1593_s7 + $0xd0] sm:$0xff] %v1030_v22 }
 0x16d   : > { %1063 = vst [vmem:[%s1593_s7 + $0xd8] sm:$0xff] %v1031_v23  ;;  %v1035_v29 = vmax.f32 %v1003_v24, 0.0  ;;  %1064 = vst [vmem:[%s1593_s7 + $0xe0] sm:$0xff] %v1032_v25 }
 0x16e   : > { %1065 = vst [vmem:[%s1593_s7 + $0xe8] sm:$0xff] %v1033_v28  ;;  %1066 = vst [vmem:[%s1593_s7 + $0xf0] sm:$0xff] %v1034_v26 }
 0x16f   : > { %1067 = vst [vmem:[%s1593_s7 + $0xf8] sm:$0xff] %v1035_v29 }
 0x170 PF: > { %s14_s21 = sadd.s32 1, %s1424_s21   ;;  %s1755_s15 = smov %s1404_s16 }
 0x171   : > { %p11_p0 = scmp.ge.s32.totalorder %s14_s21, 12   ;;  %s1756_s16 = smov %s1503_s28 }
 0x172   : > { %s1757_s17 = smov %s1416_s19  ;;  %s1758_s18 = smov %s1420_s20 }
 0x173   : > { %s1759_s19 = smov %s1762_s22  ;;  %s1760_s20 = smov %s1766_s23 }
 0x174   :  { %13 = sbr.rel (!%p11_p0) target bundleno = 4 (0x4), region = 123 }

// kernel: basic_residual_se_block.10
= control target key start
LH: loop header
LB: loop body
LE: loop exit
PB: predicated region body
PF: predicated region fallthrough
CT: control target
= control target key end

     0   :  { %v381_v0 = vmov 0.0|0.0   ;;  %vm382_vm0 = vmmov 0   ;;  %v383_v4 = vmov 0.0   ;;  %s538_s1 = inlined_call_operand.vmem [shape: f32[128,128], index: 1, kind: input, shape index: {}]   ;;  %s539_s3 = inlined_call_operand.vmem [shape: f32[128,128], index: 3, kind: input, shape index: {}]   ;;  %s540_s0 = inlined_call_operand.vmem [shape: f32[2,128], index: 0, kind: input, shape index: {}]   ;;  %s541_s2 = inlined_call_operand.vmem [shape: f32[1,128], index: 2, kind: input, shape index: {}]   ;;  %s542_s4 = inlined_call_operand.vmem [shape: f32[1,128], index: 4, kind: input, shape index: {}]   ;;  %s543_s5 = inlined_call_operand.vmem [shape: f32[2,128], index: 5, kind: output, shape index: {}]  }
   0x1   :  { %326 = vmatprep.subr.bf16.mxu0 %v381_v0  ;;  %v21_v1 = vld [vmem:[%s538_s1] sm:$0xff]  ;;  %v22_v2 = vld [vmem:[%s538_s1 + $0x8] sm:$0xff]  ;;  %v23_v3 = vld [vmem:[%s538_s1 + $0x10] sm:$0xff]  ;;  %288 = vmatprep.mubr.msk.f32.mxu0 %vm382_vm0, %v383_v4 }
   0x2   :  { %v327_v5 = vpack.c.bf16 %v22_v2, %v21_v1  ;;  %v24_v6 = vld [vmem:[%s538_s1 + $0x18] sm:$0xff]  ;;  %350 = vmatprep.subr.bf16.mxu1 %v381_v0  ;;  %323 = vmatprep.mubr.msk.f32.mxu1 %vm382_vm0, %v383_v4  ;;  %v25_v8 = vld [vmem:[%s538_s1 + $0x20] sm:$0xff]  ;;  %v26_v9 = vld [vmem:[%s538_s1 + $0x28] sm:$0xff] }
   0x3   :  { %v330_v7 = vpack.c.bf16 %v24_v6, %v23_v3  ;;  %v115_v10 = vld [vmem:[%s539_s3] sm:$0xff]  ;;  %v116_v11 = vld [vmem:[%s539_s3 + $0x8] sm:$0xff]  ;;  %v117_v12 = vld [vmem:[%s539_s3 + $0x10] sm:$0xff]  ;;  %v333_v14 = vpack.c.bf16 %v26_v9, %v25_v8 }
   0x4   :  { %328 = vmatpush3.bf16.msra.mxu0 %v327_v5  ;;  %v118_v13 = vld [vmem:[%s539_s3 + $0x18] sm:$0xff]  ;;  %v351_v15 = vpack.c.bf16 %v116_v11, %v115_v10  ;;  %v27_v16 = vld [vmem:[%s538_s1 + $0x30] sm:$0xff]  ;;  %v119_v19 = vld [vmem:[%s539_s3 + $0x20] sm:$0xff] }
   0x5   :  { %329 = vmatprep.subr.bf16.mxu0 %v381_v0  ;;  %v28_v17 = vld [vmem:[%s538_s1 + $0x38] sm:$0xff]  ;;  %v354_v18 = vpack.c.bf16 %v118_v13, %v117_v12  ;;  %v120_v20 = vld [vmem:[%s539_s3 + $0x28] sm:$0xff]  ;;  %v29_v22 = vld [vmem:[%s538_s1 + $0x40] sm:$0xff] }
   0x6   :  { %352 = vmatpush3.bf16.msra.mxu1 %v351_v15  ;;  %v336_v21 = vpack.c.bf16 %v28_v17, %v27_v16  ;;  %v30_v23 = vld [vmem:[%s538_s1 + $0x48] sm:$0xff]  ;;  %v357_v24 = vpack.c.bf16 %v120_v20, %v119_v19  ;;  %v121_v25 = vld [vmem:[%s539_s3 + $0x30] sm:$0xff]  ;;  %v122_v26 = vld [vmem:[%s539_s3 + $0x38] sm:$0xff] }
   0x7   :  { %353 = vmatprep.subr.bf16.mxu1 %v381_v0  ;;  %v339_v27 = vpack.c.bf16 %v30_v23, %v29_v22  ;;  %v31_v28 = vld [vmem:[%s538_s1 + $0x50] sm:$0xff]  ;;  %v32_v29 = vld [vmem:[%s538_s1 + $0x58] sm:$0xff]  ;;  %v360_v30 = vpack.c.bf16 %v122_v26, %v121_v25  ;;  %v123_v31 = vld [vmem:[%s539_s3 + $0x40] sm:$0xff] }
   0x8   :  { %331 = vmatpush3.bf16.msra.mxu0 %v330_v7  ;;  %v124_v32 = vld [vmem:[%s539_s3 + $0x48] sm:$0xff]  ;;  %v342_v33 = vpack.c.bf16 %v32_v29, %v31_v28  ;;  %v33_v34 = vld [vmem:[%s538_s1 + $0x60] sm:$0xff]  ;;  %v125_v37 = vld [vmem:[%s539_s3 + $0x50] sm:$0xff] }
   0x9   :  { %332 = vmatprep.subr.bf16.mxu0 %v381_v0  ;;  %v34_v35 = vld [vmem:[%s538_s1 + $0x68] sm:$0xff]  ;;  %v363_v36 = vpack.c.bf16 %v124_v32, %v123_v31  ;;  %v126_v38 = vld [vmem:[%s539_s3 + $0x58] sm:$0xff]  ;;  %v35_v40 = vld [vmem:[%s538_s1 + $0x70] sm:$0xff] }
   0xa   :  { %355 = vmatpush3.bf16.msra.mxu1 %v354_v18  ;;  %v345_v39 = vpack.c.bf16 %v34_v35, %v33_v34  ;;  %v36_v41 = vld [vmem:[%s538_s1 + $0x78] sm:$0xff]  ;;  %v366_v42 = vpack.c.bf16 %v126_v38, %v125_v37  ;;  %v127_v43 = vld [vmem:[%s539_s3 + $0x60] sm:$0xff]  ;;  %v128_v44 = vld [vmem:[%s539_s3 + $0x68] sm:$0xff] }
   0xb   :  { %356 = vmatprep.subr.bf16.mxu1 %v381_v0  ;;  %v348_v45 = vpack.c.bf16 %v36_v41, %v35_v40  ;;  %v369_v46 = vpack.c.bf16 %v128_v44, %v127_v43  ;;  %v20_v47 = vld [vmem:[%s540_s0] sm:$0x3]  ;;  %v129_v48 = vld [vmem:[%s539_s3 + $0x70] sm:$0xff]  ;;  %v130_v49 = vld [vmem:[%s539_s3 + $0x78] sm:$0xff] }
   0xc   :  { %334 = vmatpush3.bf16.msra.mxu0 %v333_v14  ;;  %v372_v50 = vpack.c.bf16 %v130_v49, %v129_v48  ;;  %v219_v51 = vld [vmem:[%s541_s2] ss:$0 sm:$0xff] }
   0xd   :  { %335 = vmatprep.subr.bf16.mxu0 %v381_v0  ;;  %v220_v56 = vld [vmem:[%s542_s4] ss:$0 sm:$0xff] }
   0xe   :  { %358 = vmatpush3.bf16.msra.mxu1 %v357_v24 }
   0xf   :  { %359 = vmatprep.subr.bf16.mxu1 %v381_v0 }
  0x10   :  { %337 = vmatpush3.bf16.msra.mxu0 %v336_v21 }
  0x11   :  { %338 = vmatprep.subr.bf16.mxu0 %v381_v0 }
  0x12   :  { %361 = vmatpush3.bf16.msra.mxu1 %v360_v30 }
  0x13   :  { %362 = vmatprep.subr.bf16.mxu1 %v381_v0 }
  0x14   :  { %340 = vmatpush3.bf16.msra.mxu0 %v339_v27 }
  0x15   :  { %341 = vmatprep.subr.bf16.mxu0 %v381_v0 }
  0x16   :  { %364 = vmatpush3.bf16.msra.mxu1 %v363_v36 }
  0x17   :  { %365 = vmatprep.subr.bf16.mxu1 %v381_v0 }
  0x18   :  { %343 = vmatpush3.bf16.msra.mxu0 %v342_v33 }
  0x19   :  { %344 = vmatprep.subr.bf16.mxu0 %v381_v0 }
  0x1a   :  { %367 = vmatpush3.bf16.msra.mxu1 %v366_v42 }
  0x1b   :  { %368 = vmatprep.subr.bf16.mxu1 %v381_v0 }
  0x1c   :  { %346 = vmatpush3.bf16.msra.mxu0 %v345_v39 }
  0x1d   :  { %347 = vmatprep.subr.bf16.mxu0 %v381_v0 }
  0x1e   :  { %370 = vmatpush3.bf16.msra.mxu1 %v369_v46 }
  0x1f   :  { %371 = vmatprep.subr.bf16.mxu1 %v381_v0 }
  0x20   :  { %349 = vmatpush3.bf16.msra.mxu0 %v348_v45 }
  0x22   :  { %373 = vmatpush3.bf16.msra.mxu1 %v372_v50 }
  0x23   :  { %289 = vmatmul.mubr.f32.vlgmr.msra.gmra.mrb[0].mxu0 %v20_v47 }
  0xf6   :  { %v110_v52 = vpop.f32.mrb[0].mxu0 }
  0xf7   :  { %v111_v53 = vadd.f32 %v219_v51, %v110_v52  ;;  %v290_v54 = vpop.f32.mrb[1].mxu0 }
  0xf9   :  { %v114_v55 = vmax.f32 %v111_v53, 0.0 }
  0xfb   :  { %324 = vmatmul.mubr.f32.vlgmr.msra.gmra.mrb[0].mxu1 %v114_v55 }
 0x1ce   :  { %v204_v57 = vpop.f32.mrb[0].mxu1 }
 0x1cf   :  { %v205_v58 = vadd.f32 %v220_v56, %v204_v57  ;;  %v325_v59 = vpop.f32.mrb[1].mxu1 }
 0x1d1   :  { %v221_v60 = vmul.f32 -1.442695, %v205_v58 }
 0x1d3   :  { %377 = vpow2.f32 %v221_v60 }
 0x1dd   :  { %v378_v61 = vpop.eup %377 }
 0x1de   :  { %v211_v62 = vadd.f32 1.0, %v378_v61 }
 0x1e0   :  { %379 = vrcp.f32 %v211_v62 }
 0x1ea   :  { %v380_v63 = vpop.eup %379 }
 0x1eb   :  { %214 = vst [vmem:[%s543_s5] sm:$0x3] %v380_v63 }

// kernel: basic_residual_se_block.11
= control target key start
LH: loop header
LB: loop body
LE: loop exit
PB: predicated region body
PF: predicated region fallthrough
CT: control target
= control target key end

     0   :  { %8 = vsyncpa [#allocation5], 0  ;;  %s1398_s0 = inlined_call_operand.vmem [shape: f32[2,256,128], index: 0, kind: input, shape index: {}]   ;;  %s1399_s1 = inlined_call_operand.vmem [shape: f32[2,256,128], index: 1, kind: input, shape index: {}]   ;;  %s1400_s2 = inlined_call_operand.vmem [shape: f32[2,128], index: 2, kind: input, shape index: {}]   ;;  %s1401_s3 = inlined_call_operand.hbm [shape: f32[2,256,128], index: 3, kind: output, shape index: {}]  }
   0x1   :  { %10 = vsyncpa [#allocation5 + $0x1], 0  ;;  %s1004_s12 = smov 0   ;;  %s1006_s13 = smov 0  }
   0x2   :  { %s1008_s14 = smov 0   ;;  %s1010_s15 = smov 0  }
   0x3 LB: > { %s864_s16 = sadd.s32 4294967295, %s974_s15   ;;  %s865_s17 = sadd.s32 4294967294, %s974_s15   ;;  %s974_s15 = sphi %s1010_s15, %s1408_s15   ;;  %s970_s14 = sphi %s1008_s14, %s1407_s14   ;;  %s966_s13 = sphi %s1006_s13, %s1406_s13   ;;  %s962_s12 = sphi %s1004_s12, %s1405_s12  }
   0x4   : > { %s1027_s18 = sadd.s32 1, %s974_s15   ;;  %s23_s19 = sadd.s32 1, %s970_s14 }
   0x5   : > { %s20_s20 = ssub.s32 %s974_s15, %s1027_s18  ;;  %p30_p0 = scmp.ne.s32.totalorder %s970_s14, %s966_s13 }
   0x6   : > { %p21_p1 = scmp.eq.s32.totalorder %s20_s20, 0  ;;  %p31_p2 = scmp.eq.s32.totalorder %s974_s15, 0 }
   0x7   : > { %p107_p3 = scmp.eq.s32.totalorder %s864_s16, 1  ;;  %p112_p4 = scmp.ne.s32.totalorder %s966_s13, %s962_s12 }
   0x8   : > { %s1040_s21 = scalar_select %p21_p1, %s970_s14, %s23_s19  }
   0x9   : > { %p1042_p5 = por %p31_p2, %p30_p0  ;;  %p1046_p6 = por %p107_p3, %p30_p0 }
   0xa   : > { %p113_p7 = scmp.eq.s32.totalorder %s865_s17, 1  ;;  %p867_p9 = scmp.ge.s32.totalorder %s974_s15, 2 }
   0xc   : > { %p1050_p8 = por %p113_p7, %p112_p4  ;;  %132 = sbr.rel (%p867_p9) target bundleno = 59 (0x3b), region = 20 }
  0x13   : > { %135 = sbr.rel (!%p1042_p5) target bundleno = 39 (0x27), region = 24  ;;  %s137_s25 = sand.u32 (%p1042_p5), 1, %s970_s14  }
  0x14   : > { %s884_s26 = sshll.u32 (%p1042_p5), %s974_s15, 7  ;;  %s868_s27 = sshll.u32 (%p1042_p5), %s137_s25, 8 }
  0x15   : > { %s1064_s30 = scalar_lea.vmem (%p1042_p5), %s1398_s0, %s884_s26  ;;  %s1069_s4 = scalar_lea.vmem (%p1042_p5), [#allocation2], %s868_s27 }
  0x16   : > { %v232_v0 = vld [vmem:[%s1064_s30] sm:$0xff] (%p1042_p5)  ;;  %v234_v1 = vld [vmem:[%s1064_s30 + $0x8] sm:$0xff] (%p1042_p5)  ;;  %v236_v2 = vld [vmem:[%s1064_s30 + $0x10] sm:$0xff] (%p1042_p5) }
  0x17   : > { %233 = vst [vmem:[%s1069_s4] sm:$0xff] (%p1042_p5), %v232_v0  ;;  %235 = vst [vmem:[%s1069_s4 + $0x8] sm:$0xff] (%p1042_p5), %v234_v1  ;;  %v238_v3 = vld [vmem:[%s1064_s30 + $0x18] sm:$0xff] (%p1042_p5)  ;;  %v240_v4 = vld [vmem:[%s1064_s30 + $0x20] sm:$0xff] (%p1042_p5) }
  0x18   : > { %237 = vst [vmem:[%s1069_s4 + $0x10] sm:$0xff] (%p1042_p5), %v236_v2  ;;  %v242_v5 = vld [vmem:[%s1064_s30 + $0x28] sm:$0xff] (%p1042_p5)  ;;  %239 = vst [vmem:[%s1069_s4 + $0x18] sm:$0xff] (%p1042_p5), %v238_v3  ;;  %v244_v6 = vld [vmem:[%s1064_s30 + $0x30] sm:$0xff] (%p1042_p5) }
  0x19   : > { %241 = vst [vmem:[%s1069_s4 + $0x20] sm:$0xff] (%p1042_p5), %v240_v4  ;;  %243 = vst [vmem:[%s1069_s4 + $0x28] sm:$0xff] (%p1042_p5), %v242_v5  ;;  %v246_v7 = vld [vmem:[%s1064_s30 + $0x38] sm:$0xff] (%p1042_p5)  ;;  %v248_v8 = vld [vmem:[%s1064_s30 + $0x40] sm:$0xff] (%p1042_p5) }
  0x1a   : > { %245 = vst [vmem:[%s1069_s4 + $0x30] sm:$0xff] %v244_v6  ;;  %247 = vst [vmem:[%s1069_s4 + $0x38] sm:$0xff] %v246_v7  ;;  %v250_v9 = vld [vmem:[%s1064_s30 + $0x48] sm:$0xff]  ;;  %v252_v10 = vld [vmem:[%s1064_s30 + $0x50] sm:$0xff] }
  0x1b   : > { %249 = vst [vmem:[%s1069_s4 + $0x40] sm:$0xff] %v248_v8  ;;  %v254_v11 = vld [vmem:[%s1064_s30 + $0x58] sm:$0xff]  ;;  %251 = vst [vmem:[%s1069_s4 + $0x48] sm:$0xff] %v250_v9  ;;  %v256_v12 = vld [vmem:[%s1064_s30 + $0x60] sm:$0xff] }
  0x1c   : > { %253 = vst [vmem:[%s1069_s4 + $0x50] sm:$0xff] %v252_v10  ;;  %255 = vst [vmem:[%s1069_s4 + $0x58] sm:$0xff] %v254_v11  ;;  %v258_v13 = vld [vmem:[%s1064_s30 + $0x68] sm:$0xff]  ;;  %v260_v14 = vld [vmem:[%s1064_s30 + $0x70] sm:$0xff] }
  0x1d   : > { %257 = vst [vmem:[%s1069_s4 + $0x60] sm:$0xff] %v256_v12  ;;  %259 = vst [vmem:[%s1069_s4 + $0x68] sm:$0xff] %v258_v13  ;;  %v262_v15 = vld [vmem:[%s1064_s30 + $0x78] sm:$0xff]  ;;  %v264_v16 = vld [vmem:[%s1064_s30 + $0x100] sm:$0xff] }
  0x1e   : > { %261 = vst [vmem:[%s1069_s4 + $0x70] sm:$0xff] %v260_v14  ;;  %v266_v17 = vld [vmem:[%s1064_s30 + $0x108] sm:$0xff]  ;;  %263 = vst [vmem:[%s1069_s4 + $0x78] sm:$0xff] %v262_v15  ;;  %v268_v18 = vld [vmem:[%s1064_s30 + $0x110] sm:$0xff] }
  0x1f   : > { %265 = vst [vmem:[%s1069_s4 + $0x80] sm:$0xff] %v264_v16  ;;  %267 = vst [vmem:[%s1069_s4 + $0x88] sm:$0xff] %v266_v17  ;;  %v270_v19 = vld [vmem:[%s1064_s30 + $0x118] sm:$0xff]  ;;  %v272_v20 = vld [vmem:[%s1064_s30 + $0x120] sm:$0xff] }
  0x20   : > { %269 = vst [vmem:[%s1069_s4 + $0x90] sm:$0xff] %v268_v18  ;;  %271 = vst [vmem:[%s1069_s4 + $0x98] sm:$0xff] %v270_v19  ;;  %v274_v21 = vld [vmem:[%s1064_s30 + $0x128] sm:$0xff]  ;;  %v276_v22 = vld [vmem:[%s1064_s30 + $0x130] sm:$0xff] }
  0x21   : > { %273 = vst [vmem:[%s1069_s4 + $0xa0] sm:$0xff] %v272_v20  ;;  %v278_v23 = vld [vmem:[%s1064_s30 + $0x138] sm:$0xff]  ;;  %275 = vst [vmem:[%s1069_s4 + $0xa8] sm:$0xff] %v274_v21  ;;  %v280_v24 = vld [vmem:[%s1064_s30 + $0x140] sm:$0xff] }
  0x22   : > { %277 = vst [vmem:[%s1069_s4 + $0xb0] sm:$0xff] %v276_v22  ;;  %279 = vst [vmem:[%s1069_s4 + $0xb8] sm:$0xff] %v278_v23  ;;  %v282_v25 = vld [vmem:[%s1064_s30 + $0x148] sm:$0xff]  ;;  %v284_v26 = vld [vmem:[%s1064_s30 + $0x150] sm:$0xff] }
  0x23   : > { %281 = vst [vmem:[%s1069_s4 + $0xc0] sm:$0xff] %v280_v24  ;;  %283 = vst [vmem:[%s1069_s4 + $0xc8] sm:$0xff] %v282_v25  ;;  %v286_v27 = vld [vmem:[%s1064_s30 + $0x158] sm:$0xff]  ;;  %v288_v28 = vld [vmem:[%s1064_s30 + $0x160] sm:$0xff] }
  0x24   : > { %285 = vst [vmem:[%s1069_s4 + $0xd0] sm:$0xff] %v284_v26  ;;  %v290_v29 = vld [vmem:[%s1064_s30 + $0x168] sm:$0xff]  ;;  %287 = vst [vmem:[%s1069_s4 + $0xd8] sm:$0xff] %v286_v27  ;;  %v292_v30 = vld [vmem:[%s1064_s30 + $0x170] sm:$0xff] }
  0x25   : > { %289 = vst [vmem:[%s1069_s4 + $0xe0] sm:$0xff] %v288_v28  ;;  %291 = vst [vmem:[%s1069_s4 + $0xe8] sm:$0xff] %v290_v29  ;;  %v294_v31 = vld [vmem:[%s1064_s30 + $0x178] sm:$0xff] }
  0x26   : > { %293 = vst [vmem:[%s1069_s4 + $0xf0] sm:$0xff] %v292_v30  ;;  %295 = vst [vmem:[%s1069_s4 + $0xf8] sm:$0xff] %v294_v31 }
  0x27 PF: > { %301 = sbr.rel (!%p1042_p5) target bundleno = 59 (0x3b), region = 62  ;;  %s303_s5 = sand.u32 (%p1042_p5), 1, %s970_s14  }
  0x28   : > { %s885_s6 = sshll.u32 (%p1042_p5), %s974_s15, 7  ;;  %s871_s7 = sshll.u32 (%p1042_p5), %s303_s5, 8 }
  0x29   : > { %s1139_s10 = scalar_lea.vmem (%p1042_p5), %s1399_s1, %s885_s6  ;;  %s1144_s11 = scalar_lea.vmem (%p1042_p5), [#allocation3], %s871_s7 }
  0x2a   : > { %v398_v32 = vld [vmem:[%s1139_s10] sm:$0xff] (%p1042_p5)  ;;  %v400_v33 = vld [vmem:[%s1139_s10 + $0x8] sm:$0xff] (%p1042_p5)  ;;  %v402_v34 = vld [vmem:[%s1139_s10 + $0x10] sm:$0xff] (%p1042_p5) }
  0x2b   : > { %399 = vst [vmem:[%s1144_s11] sm:$0xff] (%p1042_p5), %v398_v32  ;;  %401 = vst [vmem:[%s1144_s11 + $0x8] sm:$0xff] (%p1042_p5), %v400_v33  ;;  %v404_v35 = vld [vmem:[%s1139_s10 + $0x18] sm:$0xff] (%p1042_p5)  ;;  %v406_v36 = vld [vmem:[%s1139_s10 + $0x20] sm:$0xff] (%p1042_p5) }
  0x2c   : > { %403 = vst [vmem:[%s1144_s11 + $0x10] sm:$0xff] (%p1042_p5), %v402_v34  ;;  %v408_v37 = vld [vmem:[%s1139_s10 + $0x28] sm:$0xff] (%p1042_p5)  ;;  %405 = vst [vmem:[%s1144_s11 + $0x18] sm:$0xff] (%p1042_p5), %v404_v35  ;;  %v410_v38 = vld [vmem:[%s1139_s10 + $0x30] sm:$0xff] (%p1042_p5) }
  0x2d   : > { %407 = vst [vmem:[%s1144_s11 + $0x20] sm:$0xff] (%p1042_p5), %v406_v36  ;;  %409 = vst [vmem:[%s1144_s11 + $0x28] sm:$0xff] (%p1042_p5), %v408_v37  ;;  %v412_v39 = vld [vmem:[%s1139_s10 + $0x38] sm:$0xff] (%p1042_p5)  ;;  %v414_v40 = vld [vmem:[%s1139_s10 + $0x40] sm:$0xff] (%p1042_p5) }
  0x2e   : > { %411 = vst [vmem:[%s1144_s11 + $0x30] sm:$0xff] %v410_v38  ;;  %413 = vst [vmem:[%s1144_s11 + $0x38] sm:$0xff] %v412_v39  ;;  %v416_v41 = vld [vmem:[%s1139_s10 + $0x48] sm:$0xff]  ;;  %v418_v42 = vld [vmem:[%s1139_s10 + $0x50] sm:$0xff] }
  0x2f   : > { %415 = vst [vmem:[%s1144_s11 + $0x40] sm:$0xff] %v414_v40  ;;  %v420_v43 = vld [vmem:[%s1139_s10 + $0x58] sm:$0xff]  ;;  %417 = vst [vmem:[%s1144_s11 + $0x48] sm:$0xff] %v416_v41  ;;  %v422_v44 = vld [vmem:[%s1139_s10 + $0x60] sm:$0xff] }
  0x30   : > { %419 = vst [vmem:[%s1144_s11 + $0x50] sm:$0xff] %v418_v42  ;;  %421 = vst [vmem:[%s1144_s11 + $0x58] sm:$0xff] %v420_v43  ;;  %v424_v45 = vld [vmem:[%s1139_s10 + $0x68] sm:$0xff]  ;;  %v426_v46 = vld [vmem:[%s1139_s10 + $0x70] sm:$0xff] }
  0x31   : > { %423 = vst [vmem:[%s1144_s11 + $0x60] sm:$0xff] %v422_v44  ;;  %425 = vst [vmem:[%s1144_s11 + $0x68] sm:$0xff] %v424_v45  ;;  %v428_v47 = vld [vmem:[%s1139_s10 + $0x78] sm:$0xff]  ;;  %v430_v48 = vld [vmem:[%s1139_s10 + $0x100] sm:$0xff] }
  0x32   : > { %427 = vst [vmem:[%s1144_s11 + $0x70] sm:$0xff] %v426_v46  ;;  %v432_v49 = vld [vmem:[%s1139_s10 + $0x108] sm:$0xff]  ;;  %429 = vst [vmem:[%s1144_s11 + $0x78] sm:$0xff] %v428_v47  ;;  %v434_v50 = vld [vmem:[%s1139_s10 + $0x110] sm:$0xff] }
  0x33   : > { %431 = vst [vmem:[%s1144_s11 + $0x80] sm:$0xff] %v430_v48  ;;  %433 = vst [vmem:[%s1144_s11 + $0x88] sm:$0xff] %v432_v49  ;;  %v436_v51 = vld [vmem:[%s1139_s10 + $0x118] sm:$0xff]  ;;  %v438_v52 = vld [vmem:[%s1139_s10 + $0x120] sm:$0xff] }
  0x34   : > { %435 = vst [vmem:[%s1144_s11 + $0x90] sm:$0xff] %v434_v50  ;;  %437 = vst [vmem:[%s1144_s11 + $0x98] sm:$0xff] %v436_v51  ;;  %v440_v53 = vld [vmem:[%s1139_s10 + $0x128] sm:$0xff]  ;;  %v442_v54 = vld [vmem:[%s1139_s10 + $0x130] sm:$0xff] }
  0x35   : > { %439 = vst [vmem:[%s1144_s11 + $0xa0] sm:$0xff] %v438_v52  ;;  %v444_v55 = vld [vmem:[%s1139_s10 + $0x138] sm:$0xff]  ;;  %441 = vst [vmem:[%s1144_s11 + $0xa8] sm:$0xff] %v440_v53  ;;  %v446_v56 = vld [vmem:[%s1139_s10 + $0x140] sm:$0xff] }
  0x36   : > { %443 = vst [vmem:[%s1144_s11 + $0xb0] sm:$0xff] %v442_v54  ;;  %445 = vst [vmem:[%s1144_s11 + $0xb8] sm:$0xff] %v444_v55  ;;  %v448_v57 = vld [vmem:[%s1139_s10 + $0x148] sm:$0xff]  ;;  %v450_v58 = vld [vmem:[%s1139_s10 + $0x150] sm:$0xff] }
  0x37   : > { %447 = vst [vmem:[%s1144_s11 + $0xc0] sm:$0xff] %v446_v56  ;;  %449 = vst [vmem:[%s1144_s11 + $0xc8] sm:$0xff] %v448_v57  ;;  %v452_v59 = vld [vmem:[%s1139_s10 + $0x158] sm:$0xff]  ;;  %v454_v60 = vld [vmem:[%s1139_s10 + $0x160] sm:$0xff] }
  0x38   : > { %451 = vst [vmem:[%s1144_s11 + $0xd0] sm:$0xff] %v450_v58  ;;  %v456_v61 = vld [vmem:[%s1139_s10 + $0x168] sm:$0xff]  ;;  %453 = vst [vmem:[%s1144_s11 + $0xd8] sm:$0xff] %v452_v59  ;;  %v458_v62 = vld [vmem:[%s1139_s10 + $0x170] sm:$0xff] }
  0x39   : > { %455 = vst [vmem:[%s1144_s11 + $0xe0] sm:$0xff] %v454_v60  ;;  %457 = vst [vmem:[%s1144_s11 + $0xe8] sm:$0xff] %v456_v61  ;;  %v460_v63 = vld [vmem:[%s1139_s10 + $0x178] sm:$0xff] }
  0x3a   : > { %459 = vst [vmem:[%s1144_s11 + $0xf0] sm:$0xff] %v458_v62  ;;  %461 = vst [vmem:[%s1144_s11 + $0xf8] sm:$0xff] %v460_v63 }
  0x3b PF: > { %p874_p10 = scmp.ge.s32.totalorder %s974_s15, 1  ;;  %p466_p11 = scmp.lt.s32.totalorder %s974_s15, 3 }
  0x3d   : > { %p467_p12 = pnand %p874_p10, %p466_p11 }
  0x3e   : > { %s473_s17 = sand.u32 (!%p467_p12), 1, %s966_s13   ;;  %v878_v0 = vld.sshfl [vmem:[%s1400_s2] sm:$0x11 pattern:$0x75316420] (!%p467_p12)  ;;  %v523_v1 = vlaneseq (!%p467_p12) }
  0x3f   : > { %470 = sbr.rel (%p467_p12) target bundleno = 114 (0x72), region = 100  ;;  %s1215_s22 = sshll.u32 (!%p467_p12), %s473_s17, 8  ;;  %v976_v2 = vmov (!%p467_p12), 1966171168   ;;  %v519_v6 = vcombine.high (!%p467_p12), %v878_v0, %v878_v0 }
  0x40   : > { %v521_v3 = vunpack.c.l.s4 (!%p467_p12), %v976_v2  ;;  %v524_v4 = vshrl.u32 (!%p467_p12), %v523_v1, 7  ;;  %s1218_s25 = scalar_lea.vmem (!%p467_p12), [#allocation2], %s1215_s22  ;;  %s1223_s26 = scalar_lea.vmem (!%p467_p12), [#allocation3], %s1215_s22 }
  0x41   : > { %v534_v10 = vld [vmem:[%s1218_s25] sm:$0xff] (!%p467_p12)  ;;  %v535_v11 = vld [vmem:[%s1218_s25 + $0x8] sm:$0xff] (!%p467_p12)  ;;  %v536_v15 = vld [vmem:[%s1218_s25 + $0x10] sm:$0xff] (!%p467_p12)  ;;  %s1265_s27 = scalar_lea.vmem (!%p467_p12), [#allocation4], %s1215_s22  ;;  %s737_s28 = scalar_lea.sflag (!%p467_p12), [#allocation5], %s473_s17 }
  0x42   : > { %v522_v5 = vunpack.c.0.s8 (!%p467_p12), %v521_v3  ;;  %v568_v8 = vsub.s32 (!%p467_p12), 0, %v524_v4  ;;  %v608_v13 = vld [vmem:[%s1223_s26] sm:$0xff] (!%p467_p12)  ;;  %v609_v14 = vld [vmem:[%s1223_s26 + $0x8] sm:$0xff] (!%p467_p12)  ;;  %v537_v16 = vld [vmem:[%s1218_s25 + $0x18] sm:$0xff] (!%p467_p12) }
  0x43   : > { %v538_v17 = vld [vmem:[%s1218_s25 + $0x20] sm:$0xff] (!%p467_p12)  ;;  %v539_v19 = vld [vmem:[%s1218_s25 + $0x28] sm:$0xff] (!%p467_p12)  ;;  %v540_v20 = vld [vmem:[%s1218_s25 + $0x30] sm:$0xff] (!%p467_p12) }
  0x44   : > { %v525_v7 = vsub.s32 (!%p467_p12), %v522_v5, %v524_v4  ;;  %v541_v21 = vld [vmem:[%s1218_s25 + $0x38] sm:$0xff] (!%p467_p12)  ;;  %v610_v22 = vld [vmem:[%s1223_s26 + $0x10] sm:$0xff] (!%p467_p12)  ;;  %v612_v24 = vld [vmem:[%s1223_s26 + $0x20] sm:$0xff] (!%p467_p12) }
  0x45   : > { %v611_v23 = vld [vmem:[%s1223_s26 + $0x18] sm:$0xff] (!%p467_p12)  ;;  %v613_v30 = vld [vmem:[%s1223_s26 + $0x28] sm:$0xff] (!%p467_p12)  ;;  %v614_v31 = vld [vmem:[%s1223_s26 + $0x30] sm:$0xff] (!%p467_p12) }
  0x46   : > { %v526_v9 = vrot.slane %v878_v0, %v525_v7  ;;  %v533_v12 = vrot.slane %v519_v6, %v525_v7  ;;  %v615_v32 = vld [vmem:[%s1223_s26 + $0x38] sm:$0xff]  ;;  %v542_v41 = vld [vmem:[%s1218_s25 + $0x40] sm:$0xff]  ;;  %v543_v42 = vld [vmem:[%s1218_s25 + $0x48] sm:$0xff] }
  0x47   : > { %v544_v43 = vld [vmem:[%s1218_s25 + $0x50] sm:$0xff]  ;;  %v616_v48 = vld [vmem:[%s1223_s26 + $0x40] sm:$0xff]  ;;  %v617_v49 = vld [vmem:[%s1223_s26 + $0x48] sm:$0xff] }
  0x48   : > { %v1230_v18 = vrot.slane %v526_v9, %v568_v8  ;;  %v1238_v25 = vrot.slane %v533_v12, %v568_v8  ;;  %v618_v50 = vld [vmem:[%s1223_s26 + $0x50] sm:$0xff]  ;;  %v545_v51 = vld [vmem:[%s1218_s25 + $0x58] sm:$0xff]  ;;  %v546_v52 = vld [vmem:[%s1218_s25 + $0x60] sm:$0xff] }
  0x49   : > { %v547_v53 = vld [vmem:[%s1218_s25 + $0x68] sm:$0xff]  ;;  %v548_v58 = vld [vmem:[%s1218_s25 + $0x70] sm:$0xff]  ;;  %v549_v59 = vld [vmem:[%s1218_s25 + $0x78] sm:$0xff] }
  0x4a   : > { %v576_v26 = vmul.f32 %v1230_v18, %v534_v10  ;;  %v577_v27 = vmul.f32 %v1230_v18, %v535_v11  ;;  %v578_v28 = vmul.f32 %v1230_v18, %v536_v15  ;;  %v579_v29 = vmul.f32 %v1230_v18, %v537_v16  ;;  %v619_v0 = vld [vmem:[%s1223_s26 + $0x58] sm:$0xff]  ;;  %v620_v1 = vld [vmem:[%s1223_s26 + $0x60] sm:$0xff]  ;;  %v621_v6 = vld [vmem:[%s1223_s26 + $0x68] sm:$0xff] }
  0x4b   : > { %v580_v33 = vmul.f32 %v1230_v18, %v538_v17  ;;  %v581_v34 = vmul.f32 %v1230_v18, %v539_v19  ;;  %v582_v35 = vmul.f32 %v1230_v18, %v540_v20  ;;  %v583_v36 = vmul.f32 %v1230_v18, %v541_v21  ;;  %v622_v7 = vld [vmem:[%s1223_s26 + $0x70] sm:$0xff]  ;;  %v623_v8 = vld [vmem:[%s1223_s26 + $0x78] sm:$0xff]  ;;  %v550_v17 = vld [vmem:[%s1218_s25 + $0x80] sm:$0xff] }
  0x4c   : > { %v640_v37 = vadd.f32 %v608_v13, %v576_v26  ;;  %v641_v38 = vadd.f32 %v609_v14, %v577_v27  ;;  %v642_v39 = vadd.f32 %v610_v22, %v578_v28  ;;  %v643_v40 = vadd.f32 %v611_v23, %v579_v29  ;;  %v551_v19 = vld [vmem:[%s1218_s25 + $0x88] sm:$0xff]  ;;  %v552_v20 = vld [vmem:[%s1218_s25 + $0x90] sm:$0xff]  ;;  %v624_v26 = vld [vmem:[%s1223_s26 + $0x80] sm:$0xff] }
  0x4d   : > { %v644_v44 = vadd.f32 %v612_v24, %v580_v33  ;;  %v645_v45 = vadd.f32 %v613_v30, %v581_v34  ;;  %v646_v46 = vadd.f32 %v614_v31, %v582_v35  ;;  %v647_v47 = vadd.f32 %v615_v32, %v583_v36  ;;  %v625_v27 = vld [vmem:[%s1223_s26 + $0x88] sm:$0xff]  ;;  %v553_v28 = vld [vmem:[%s1218_s25 + $0x98] sm:$0xff]  ;;  %v554_v29 = vld [vmem:[%s1218_s25 + $0xa0] sm:$0xff] }
  0x4e   : > { %v672_v54 = vmax.f32 %v640_v37, 0.0  ;;  %v673_v55 = vmax.f32 %v641_v38, 0.0  ;;  %v674_v56 = vmax.f32 %v642_v39, 0.0  ;;  %v675_v57 = vmax.f32 %v643_v40, 0.0  ;;  %v555_v30 = vld [vmem:[%s1218_s25 + $0xa8] sm:$0xff]  ;;  %v556_v35 = vld [vmem:[%s1218_s25 + $0xb0] sm:$0xff] }
  0x4f   : > { %v676_v60 = vmax.f32 %v644_v44, 0.0  ;;  %v677_v61 = vmax.f32 %v645_v45, 0.0  ;;  %v678_v62 = vmax.f32 %v646_v46, 0.0  ;;  %v679_v63 = vmax.f32 %v647_v47, 0.0  ;;  %v557_v36 = vld [vmem:[%s1218_s25 + $0xb8] sm:$0xff]  ;;  %v629_v47 = vld [vmem:[%s1223_s26 + $0xa8] sm:$0xff] }
  0x50   : > { %704 = vst [vmem:[%s1265_s27] sm:$0xff] %v672_v54  ;;  %705 = vst [vmem:[%s1265_s27 + $0x8] sm:$0xff] %v673_v55  ;;  %v584_v2 = vmul.f32 %v1230_v18, %v542_v41  ;;  %v585_v3 = vmul.f32 %v1230_v18, %v543_v42  ;;  %v586_v4 = vmul.f32 %v1230_v18, %v544_v43  ;;  %v627_v41 = vld [vmem:[%s1223_s26 + $0x98] sm:$0xff]  ;;  %v628_v42 = vld [vmem:[%s1223_s26 + $0xa0] sm:$0xff] }
  0x51   : > { %706 = vst [vmem:[%s1265_s27 + $0x10] sm:$0xff] %v674_v56  ;;  %707 = vst [vmem:[%s1265_s27 + $0x18] sm:$0xff] %v675_v57  ;;  %v587_v5 = vmul.f32 %v1230_v18, %v545_v51  ;;  %v588_v9 = vmul.f32 %v1230_v18, %v546_v52  ;;  %v589_v10 = vmul.f32 %v1230_v18, %v547_v53 }
  0x52   : > { %708 = vst [vmem:[%s1265_s27 + $0x20] sm:$0xff] %v676_v60  ;;  %709 = vst [vmem:[%s1265_s27 + $0x28] sm:$0xff] %v677_v61  ;;  %v590_v11 = vmul.f32 %v1230_v18, %v548_v58  ;;  %v591_v12 = vmul.f32 %v1230_v18, %v549_v59  ;;  %v648_v13 = vadd.f32 %v616_v48, %v584_v2  ;;  %v626_v18 = vld [vmem:[%s1223_s26 + $0x90] sm:$0xff]  ;;  %v558_v58 = vld [vmem:[%s1218_s25 + $0xc0] sm:$0xff] }
  0x53   : > { %710 = vst [vmem:[%s1265_s27 + $0x30] sm:$0xff] %v678_v62  ;;  %711 = vst [vmem:[%s1265_s27 + $0x38] sm:$0xff] %v679_v63  ;;  %v649_v14 = vadd.f32 %v617_v49, %v585_v3  ;;  %v650_v15 = vadd.f32 %v618_v50, %v586_v4  ;;  %v651_v16 = vadd.f32 %v619_v0, %v587_v5  ;;  %v630_v48 = vld [vmem:[%s1223_s26 + $0xb0] sm:$0xff]  ;;  %v631_v49 = vld [vmem:[%s1223_s26 + $0xb8] sm:$0xff] }
  0x54   : > { %v652_v21 = vadd.f32 %v620_v1, %v588_v9  ;;  %v653_v22 = vadd.f32 %v621_v6, %v589_v10  ;;  %v654_v23 = vadd.f32 %v622_v7, %v590_v11  ;;  %v655_v24 = vadd.f32 %v623_v8, %v591_v12  ;;  %v559_v59 = vld [vmem:[%s1218_s25 + $0xc8] sm:$0xff]  ;;  %v560_v60 = vld [vmem:[%s1218_s25 + $0xd0] sm:$0xff]  ;;  %v632_v1 = vld [vmem:[%s1223_s26 + $0xc0] sm:$0xff] }
  0x55   : > { %v680_v31 = vmax.f32 %v648_v13, 0.0  ;;  %v681_v32 = vmax.f32 %v649_v14, 0.0  ;;  %v682_v33 = vmax.f32 %v650_v15, 0.0  ;;  %v683_v34 = vmax.f32 %v651_v16, 0.0  ;;  %v633_v2 = vld [vmem:[%s1223_s26 + $0xc8] sm:$0xff]  ;;  %v634_v3 = vld [vmem:[%s1223_s26 + $0xd0] sm:$0xff] }
  0x56   : > { %v684_v37 = vmax.f32 %v652_v21, 0.0  ;;  %v685_v38 = vmax.f32 %v653_v22, 0.0  ;;  %v686_v39 = vmax.f32 %v654_v23, 0.0  ;;  %v687_v40 = vmax.f32 %v655_v24, 0.0  ;;  %v561_v4 = vld [vmem:[%s1218_s25 + $0xd8] sm:$0xff]  ;;  %v562_v5 = vld [vmem:[%s1218_s25 + $0xe0] sm:$0xff] }
  0x57   : > { %712 = vst [vmem:[%s1265_s27 + $0x40] sm:$0xff] %v680_v31  ;;  %713 = vst [vmem:[%s1265_s27 + $0x48] sm:$0xff] %v681_v32  ;;  %v592_v43 = vmul.f32 %v1238_v25, %v550_v17  ;;  %v593_v44 = vmul.f32 %v1238_v25, %v551_v19  ;;  %v594_v45 = vmul.f32 %v1238_v25, %v552_v20  ;;  %v563_v6 = vld [vmem:[%s1218_s25 + $0xe8] sm:$0xff]  ;;  %v564_v11 = vld [vmem:[%s1218_s25 + $0xf0] sm:$0xff] }
  0x58   : > { %714 = vst [vmem:[%s1265_s27 + $0x50] sm:$0xff] %v682_v33  ;;  %715 = vst [vmem:[%s1265_s27 + $0x58] sm:$0xff] %v683_v34  ;;  %v595_v46 = vmul.f32 %v1238_v25, %v553_v28  ;;  %v596_v50 = vmul.f32 %v1238_v25, %v554_v29  ;;  %v597_v51 = vmul.f32 %v1238_v25, %v555_v30  ;;  %v565_v12 = vld [vmem:[%s1218_s25 + $0xf8] sm:$0xff]  ;;  %v636_v19 = vld [vmem:[%s1223_s26 + $0xe0] sm:$0xff] }
  0x59   : > { %716 = vst [vmem:[%s1265_s27 + $0x60] sm:$0xff] %v684_v37  ;;  %717 = vst [vmem:[%s1265_s27 + $0x68] sm:$0xff] %v685_v38  ;;  %v598_v52 = vmul.f32 %v1238_v25, %v556_v35  ;;  %v599_v53 = vmul.f32 %v1238_v25, %v557_v36  ;;  %v656_v54 = vadd.f32 %v624_v26, %v592_v43  ;;  %v635_v17 = vld [vmem:[%s1223_s26 + $0xd8] sm:$0xff]  ;;  %v637_v24 = vld [vmem:[%s1223_s26 + $0xe8] sm:$0xff] }
  0x5a   : > { %718 = vst [vmem:[%s1265_s27 + $0x70] sm:$0xff] %v686_v39  ;;  %719 = vst [vmem:[%s1265_s27 + $0x78] sm:$0xff] %v687_v40  ;;  %v657_v55 = vadd.f32 %v625_v27, %v593_v44  ;;  %v658_v56 = vadd.f32 %v626_v18, %v594_v45  ;;  %v659_v57 = vadd.f32 %v627_v41, %v595_v46  ;;  %v638_v26 = vld [vmem:[%s1223_s26 + $0xf0] sm:$0xff]  ;;  %v639_v27 = vld [vmem:[%s1223_s26 + $0xf8] sm:$0xff] }
  0x5b   : > { %v660_v61 = vadd.f32 %v628_v42, %v596_v50  ;;  %v661_v62 = vadd.f32 %v629_v47, %v597_v51  ;;  %v662_v63 = vadd.f32 %v630_v48, %v598_v52  ;;  %v663_v0 = vadd.f32 %v631_v49, %v599_v53 }
  0x5c   : > { %v688_v7 = vmax.f32 %v656_v54, 0.0  ;;  %v689_v8 = vmax.f32 %v657_v55, 0.0  ;;  %v690_v9 = vmax.f32 %v658_v56, 0.0  ;;  %v691_v10 = vmax.f32 %v659_v57, 0.0 }
  0x5d   : > { %v692_v13 = vmax.f32 %v660_v61, 0.0  ;;  %v693_v14 = vmax.f32 %v661_v62, 0.0  ;;  %v694_v15 = vmax.f32 %v662_v63, 0.0  ;;  %v695_v16 = vmax.f32 %v663_v0, 0.0 }
  0x5e   : > { %720 = vst [vmem:[%s1265_s27 + $0x80] sm:$0xff] %v688_v7  ;;  %721 = vst [vmem:[%s1265_s27 + $0x88] sm:$0xff] %v689_v8  ;;  %v600_v20 = vmul.f32 %v1238_v25, %v558_v58  ;;  %v601_v21 = vmul.f32 %v1238_v25, %v559_v59  ;;  %v602_v22 = vmul.f32 %v1238_v25, %v560_v60 }
  0x5f   : > { %722 = vst [vmem:[%s1265_s27 + $0x90] sm:$0xff] %v690_v9  ;;  %723 = vst [vmem:[%s1265_s27 + $0x98] sm:$0xff] %v691_v10  ;;  %v603_v23 = vmul.f32 %v1238_v25, %v561_v4  ;;  %v604_v18 = vmul.f32 %v1238_v25, %v562_v5  ;;  %v605_v28 = vmul.f32 %v1238_v25, %v563_v6 }
  0x60   : > { %724 = vst [vmem:[%s1265_s27 + $0xa0] sm:$0xff] %v692_v13  ;;  %725 = vst [vmem:[%s1265_s27 + $0xa8] sm:$0xff] %v693_v14  ;;  %v606_v29 = vmul.f32 %v1238_v25, %v564_v11  ;;  %v607_v30 = vmul.f32 %v1238_v25, %v565_v12  ;;  %v664_v31 = vadd.f32 %v632_v1, %v600_v20 }
  0x61   : > { %726 = vst [vmem:[%s1265_s27 + $0xb0] sm:$0xff] %v694_v15  ;;  %727 = vst [vmem:[%s1265_s27 + $0xb8] sm:$0xff] %v695_v16  ;;  %v665_v32 = vadd.f32 %v633_v2, %v601_v21  ;;  %v666_v33 = vadd.f32 %v634_v3, %v602_v22  ;;  %v667_v34 = vadd.f32 %v635_v17, %v603_v23 }
  0x62   : > { %v668_v35 = vadd.f32 %v636_v19, %v604_v18  ;;  %v669_v36 = vadd.f32 %v637_v24, %v605_v28  ;;  %v670_v37 = vadd.f32 %v638_v26, %v606_v29  ;;  %v671_v38 = vadd.f32 %v639_v27, %v607_v30 }
  0x63   : > { %v696_v39 = vmax.f32 %v664_v31, 0.0  ;;  %v697_v40 = vmax.f32 %v665_v32, 0.0  ;;  %v698_v25 = vmax.f32 %v666_v33, 0.0  ;;  %v699_v41 = vmax.f32 %v667_v34, 0.0 }
  0x64   : > { %v700_v42 = vmax.f32 %v668_v35, 0.0  ;;  %v701_v43 = vmax.f32 %v669_v36, 0.0  ;;  %v702_v44 = vmax.f32 %v670_v37, 0.0  ;;  %v703_v45 = vmax.f32 %v671_v38, 0.0 }
  0x65   : > { %728 = vst [vmem:[%s1265_s27 + $0xc0] sm:$0xff] %v696_v39  ;;  %729 = vst [vmem:[%s1265_s27 + $0xc8] sm:$0xff] %v697_v40 }
  0x66   : > { %730 = vst [vmem:[%s1265_s27 + $0xd0] sm:$0xff] %v698_v25  ;;  %731 = vst [vmem:[%s1265_s27 + $0xd8] sm:$0xff] %v699_v41 }
  0x67   : > { %732 = vst [vmem:[%s1265_s27 + $0xe0] sm:$0xff] %v700_v42  ;;  %733 = vst [vmem:[%s1265_s27 + $0xe8] sm:$0xff] %v701_v43 }
  0x68   : > { %734 = vst [vmem:[%s1265_s27 + $0xf0] sm:$0xff] %v702_v44  ;;  %735 = vst [vmem:[%s1265_s27 + $0xf8] sm:$0xff] %v703_v45 }
  0x69   : > { %s886_s29 = sshll.u32 %s864_s16, 11  ;;  %s766_s30 = sshll.u32 %s1265_s27, 4  ;;  %s767_s30 = int_to_ptr.vmem [resolvable:$true] %s766_s30 }
  0x6a   : > { %s749_s6 = scalar_lea.hbm %s1401_s3, %s886_s29  ;;  %s977_s7 = smov 2048  }
  0x6b   : > { %887 = sst [smem:[#allocation7]] (%p1046_p6), %s977_s7  ;;  %s978_s8 = smov 4096  }
  0x6c   : > { %888 = sst [smem:[#allocation7 + $0x1]] (%p1046_p6), %s978_s8  ;;  %s979_s9 = smov 16  }
  0x6d   : > { %889 = sst [smem:[#allocation7 + $0x2]] (%p1046_p6), %s979_s9  ;;  %s980_s10 = smov 128  }
  0x6e   : > { %890 = sst [smem:[#allocation7 + $0x3]] (%p1046_p6), %s980_s10  ;;  %s981_s16 = smov 8  }
  0x6f   : > { %891 = sst [smem:[#allocation7 + $0x4]] (%p1046_p6), %s980_s10  ;;  %s982_s11 = smov [#allocation6]  }
  0x70   : > { %892 = sst [smem:[#allocation7 + $0x5]] (%p1046_p6), %s981_s16  ;;  %s983_s17 = smov 0  }
  0x71   : > { %893 = dma.general (%p1046_p6), %s767_s30, 4096, %s749_s6, %s737_s28, %s982_s11, [#allocation7], %s983_s17, 0  }
  0x72 PF: > { %s794_s19 = sand.u32 1, %s962_s12   ;;  %p896_p13 = pnand %p867_p9, %p1050_p8 }
  0x73   : > { %s795_s20 = scalar_lea.sflag [#allocation5], %s794_s19 }
  0x74   : > { %957 = dma.done.wait (!%p896_p13), %s795_s20, 4096  }
  0x75   : > { %959 = vsyncadd (!%p896_p13), %s795_s20, 4294963200  ;;  %p13_p0 = scmp.ge.s32.totalorder %s1027_s18, 4   ;;  %s1405_s12 = smov %s966_s13 }
  0x76   : > { %s1406_s13 = smov %s970_s14  ;;  %s1407_s14 = smov %s1040_s21 }
  0x77   : > { %s1408_s15 = smov %s1027_s18  ;;  %15 = sbr.rel (!%p13_p0) target bundleno = 3 (0x3), region = 161 }
  0x7e   :  { %800 = vsyncpa [#allocation5], 1 }
  0x7f   :  { %802 = vsyncpa [#allocation5 + $0x1], 1 }

// kernel: basic_residual_se_block.8
= control target key start
LH: loop header
LB: loop body
LE: loop exit
PB: predicated region body
PF: predicated region fallthrough
CT: control target
= control target key end

     0   :  { %s1183_s15 = smov 0   ;;  %s1185_s16 = smov 0   ;;  %s1370_s0 = inlined_call_operand.vmem [shape: bf16[512,128], index: 0, kind: input, shape index: {}]   ;;  %s1371_s1 = inlined_call_operand.vmem [shape: bf16[128,128], index: 1, kind: input, shape index: {}]   ;;  %s1372_s2 = inlined_call_operand.vmem [shape: f32[1,128], index: 2, kind: input, shape index: {}]   ;;  %s1373_s3 = inlined_call_operand.vmem [shape: f32[1,128], index: 3, kind: input, shape index: {}]   ;;  %s1374_s4 = inlined_call_operand.vmem [shape: f32[512,128], index: 4, kind: output, shape index: {}]  }
   0x1   :  { %s1187_s17 = smov 0  }
   0x2 LB: > { %s26_s18 = sadd.s32 1, %s1152_s16  ;;  %p965_p0 = scmp.ge.s32.totalorder %s1156_s17, 1  ;;  %s1156_s17 = sphi %s1187_s17, %s14_s17   ;;  %s1152_s16 = sphi %s1185_s16, %s1376_s16   ;;  %s1148_s15 = sphi %s1183_s15, %s1375_s15  }
   0x3   : > { %p28_p1 = scmp.ge.s32.totalorder %s26_s18, 2  ;;  %p191_p2 = scmp.lt.s32.totalorder %s1156_s17, 3 }
   0x5   : > { %s1378_s18 = smov (%p28_p1, %s26_s18), 0  ;;  %p192_p3 = pnand %p965_p0, %p191_p2 }
   0x6   : > { %v1110_v0 = vld [vmem:[%s1371_s1] sm:$0xff] (!%p192_p3)   ;;  %s966_s21 = sshll.u32 (!%p192_p3), %s1148_s15, 5  ;;  %v1111_v1 = vld [vmem:[%s1371_s1 + $0x8] sm:$0xff] (!%p192_p3)   ;;  %v1112_v2 = vld [vmem:[%s1371_s1 + $0x10] sm:$0xff] (!%p192_p3)  }
   0x7   : > { %195 = sbr.rel (%p192_p3) target bundleno = 283 (0x11b), region = 36  ;;  %p226_p4 = scmp.lt.s32.totalorder (!%p192_p3), %s966_s21, 63  ;;  %1022 = vmatprep.subr.bf16.mxu0 (!%p192_p3), %v1110_v0  ;;  %1070 = vmatprep.subr.bf16.mxu1 (!%p192_p3), %v1110_v0  ;;  %v1113_v3 = vld [vmem:[%s1371_s1 + $0x18] sm:$0xff] (!%p192_p3)   ;;  %v1114_v6 = vld [vmem:[%s1371_s1 + $0x20] sm:$0xff] (!%p192_p3)   ;;  %v1115_v7 = vld [vmem:[%s1371_s1 + $0x28] sm:$0xff] (!%p192_p3)  }
   0x8   : > { %1023 = vmatpush3.bf16.msra.mxu0 (!%p192_p3), %v1110_v0  ;;  %1078 = vmatpush3.bf16.msra.mxu1 (!%p192_p3), %v1110_v0  ;;  %v1116_v8 = vld [vmem:[%s1371_s1 + $0x30] sm:$0xff] (!%p192_p3)   ;;  %v1117_v9 = vld [vmem:[%s1371_s1 + $0x38] sm:$0xff] (!%p192_p3)   ;;  %v1252_v24 = vld [vmem:[%s1372_s2] ss:$0 sm:$0xff] (!%p192_p3) }
   0x9   : > { %1024 = vmatprep.subr.bf16.mxu0 (!%p192_p3), %v1111_v1  ;;  %1071 = vmatprep.subr.bf16.mxu1 (!%p192_p3), %v1111_v1  ;;  %v1258_v26 = vld [vmem:[%s1373_s3] ss:$0 sm:$0xff] (!%p192_p3) }
   0xc   : > { %1025 = vmatpush3.bf16.msra.mxu0 (!%p192_p3), %v1111_v1  ;;  %1079 = vmatpush3.bf16.msra.mxu1 (!%p192_p3), %v1111_v1 }
   0xd   : > { %1026 = vmatprep.subr.bf16.mxu0 (!%p192_p3), %v1112_v2  ;;  %1072 = vmatprep.subr.bf16.mxu1 (!%p192_p3), %v1112_v2 }
   0xe   : > { %s1380_s21 = smov (!%p226_p4, %s966_s21), 63 }
   0xf   : > { %s967_s26 = sshll.u32 %s1380_s21, 2  ;;  %s969_s19 = sshll.u32 %s1380_s21, 3 }
  0x10   : > { %s1216_s29 = scalar_lea.vmem %s1370_s0, %s967_s26  ;;  %1027 = vmatpush3.bf16.msra.mxu0 %v1112_v2  ;;  %1080 = vmatpush3.bf16.msra.mxu1 %v1112_v2  ;;  %s1265_s25 = scalar_lea.vmem %s1374_s4, %s969_s19 }
  0x11   : > { %v1118_v4 = vld [vmem:[%s1216_s29] sm:$0xff]   ;;  %1028 = vmatprep.subr.bf16.mxu0 %v1113_v3  ;;  %1073 = vmatprep.subr.bf16.mxu1 %v1113_v3  ;;  %v1120_v10 = vld [vmem:[%s1216_s29 + $0x8] sm:$0xff]   ;;  %v1122_v12 = vld [vmem:[%s1216_s29 + $0x10] sm:$0xff]  }
  0x12   : > { %v1119_v5 = vld [vmem:[%s1216_s29 + $0x40] sm:$0xff]   ;;  %1038 = vmatprep.mubr.bf16.mxu0 %v1118_v4  ;;  %v1121_v11 = vld [vmem:[%s1216_s29 + $0x48] sm:$0xff]   ;;  %v1123_v13 = vld [vmem:[%s1216_s29 + $0x50] sm:$0xff]  }
  0x13   : > { %1054 = vmatprep.mubr.bf16.mxu1 %v1119_v5  ;;  %v1124_v14 = vld [vmem:[%s1216_s29 + $0x18] sm:$0xff]   ;;  %v1126_v16 = vld [vmem:[%s1216_s29 + $0x20] sm:$0xff]   ;;  %v1128_v18 = vld [vmem:[%s1216_s29 + $0x28] sm:$0xff]  }
  0x14   : > { %1029 = vmatpush3.bf16.msra.mxu0 %v1113_v3  ;;  %1081 = vmatpush3.bf16.msra.mxu1 %v1113_v3  ;;  %v1125_v15 = vld [vmem:[%s1216_s29 + $0x58] sm:$0xff]   ;;  %v1127_v17 = vld [vmem:[%s1216_s29 + $0x60] sm:$0xff]   ;;  %v1129_v19 = vld [vmem:[%s1216_s29 + $0x68] sm:$0xff]  }
  0x15   : > { %1030 = vmatprep.subr.bf16.mxu0 %v1114_v6  ;;  %1074 = vmatprep.subr.bf16.mxu1 %v1114_v6  ;;  %v1130_v20 = vld [vmem:[%s1216_s29 + $0x30] sm:$0xff]   ;;  %v1132_v22 = vld [vmem:[%s1216_s29 + $0x38] sm:$0xff]  }
  0x16   : > { %v1131_v21 = vld [vmem:[%s1216_s29 + $0x70] sm:$0xff]   ;;  %v1133_v23 = vld [vmem:[%s1216_s29 + $0x78] sm:$0xff]  }
  0x18   : > { %1031 = vmatpush3.bf16.msra.mxu0 %v1114_v6  ;;  %1082 = vmatpush3.bf16.msra.mxu1 %v1114_v6 }
  0x19   : > { %1032 = vmatprep.subr.bf16.mxu0 %v1115_v7  ;;  %1075 = vmatprep.subr.bf16.mxu1 %v1115_v7 }
  0x1c   : > { %1033 = vmatpush3.bf16.msra.mxu0 %v1115_v7  ;;  %1083 = vmatpush3.bf16.msra.mxu1 %v1115_v7 }
  0x1d   : > { %1034 = vmatprep.subr.bf16.mxu0 %v1116_v8  ;;  %1076 = vmatprep.subr.bf16.mxu1 %v1116_v8 }
  0x20   : > { %1035 = vmatpush3.bf16.msra.mxu0 %v1116_v8  ;;  %1084 = vmatpush3.bf16.msra.mxu1 %v1116_v8 }
  0x21   : > { %1036 = vmatprep.subr.bf16.mxu0 %v1117_v9  ;;  %1077 = vmatprep.subr.bf16.mxu1 %v1117_v9 }
  0x24   : > { %1037 = vmatpush3.bf16.msra.mxu0 %v1117_v9  ;;  %1085 = vmatpush3.bf16.msra.mxu1 %v1117_v9 }
  0x27   : > { %1039 = vmatmul.mubr.bf16.vlgmr.msra.gmra.mrb[0].mxu0 %v1120_v10  ;;  %1055 = vmatmul.mubr.bf16.vlgmr.msra.gmra.mrb[0].mxu1 %v1121_v11 }
  0x28   : > { %1042 = vmatprep.mubr.bf16.mxu0 %v1122_v12  ;;  %1058 = vmatprep.mubr.bf16.mxu1 %v1123_v13 }
  0x2f   : > { %1043 = vmatmul.mubr.bf16.gmra.mrb[4].mxu0 %v1124_v14  ;;  %1059 = vmatmul.mubr.bf16.gmra.mrb[4].mxu1 %v1125_v15 }
  0x30   : > { %1046 = vmatprep.mubr.bf16.mxu0 %v1126_v16  ;;  %1062 = vmatprep.mubr.bf16.mxu1 %v1127_v17 }
  0x37   : > { %1047 = vmatmul.mubr.bf16.gmra.mrb[8].mxu0 %v1128_v18  ;;  %1063 = vmatmul.mubr.bf16.gmra.mrb[8].mxu1 %v1129_v19 }
  0x38   : > { %1050 = vmatprep.mubr.bf16.mxu0 %v1130_v20  ;;  %1066 = vmatprep.mubr.bf16.mxu1 %v1131_v21 }
  0x3f   : > { %1051 = vmatmul.mubr.bf16.gmra.mrb[12].mxu0 %v1132_v22  ;;  %1067 = vmatmul.mubr.bf16.gmra.mrb[12].mxu1 %v1133_v23 }
  0xfa   : > { %v1040_v25 = vpop.f32.mrb[0].mxu0  ;;  %v1056_v27 = vpop.f32.mrb[0].mxu1 }
  0xfb   : > { %v776_v28 = vmul.f32 %v1040_v25, %v1252_v24  ;;  %v792_v29 = vmul.f32 %v1056_v27, %v1252_v24  ;;  %v541_v30 = vpop.f32.mrb[1].mxu0  ;;  %v605_v31 = vpop.f32.mrb[1].mxu1 }
  0xfc   : > { %v774_v32 = vmul.f32 %v1252_v24, %v541_v30  ;;  %v790_v33 = vmul.f32 %v1252_v24, %v605_v31  ;;  %v1041_v34 = vpop.f32.mrb[2].mxu0  ;;  %v1057_v35 = vpop.f32.mrb[2].mxu1 }
  0xfd   : > { %v815_v36 = vadd.f32 %v1258_v26, %v776_v28  ;;  %v831_v37 = vadd.f32 %v1258_v26, %v792_v29  ;;  %v777_v38 = vmul.f32 %v1041_v34, %v1252_v24  ;;  %v793_v39 = vmul.f32 %v1057_v35, %v1252_v24  ;;  %v544_v40 = vpop.f32.mrb[3].mxu0  ;;  %v608_v41 = vpop.f32.mrb[3].mxu1 }
  0xfe   : > { %v813_v42 = vadd.f32 %v1258_v26, %v774_v32  ;;  %v829_v43 = vadd.f32 %v1258_v26, %v790_v33  ;;  %v775_v44 = vmul.f32 %v1252_v24, %v544_v40  ;;  %v791_v45 = vmul.f32 %v1252_v24, %v608_v41 }
  0xff   : > { %847 = vst [vmem:[%s1265_s25 + $0x10] sm:$0xff] %v815_v36  ;;  %863 = vst [vmem:[%s1265_s25 + $0x90] sm:$0xff] %v831_v37  ;;  %v816_v46 = vadd.f32 %v1258_v26, %v777_v38  ;;  %v832_v47 = vadd.f32 %v1258_v26, %v793_v39 }
 0x100   : > { %845 = vst [vmem:[%s1265_s25] sm:$0xff] %v813_v42  ;;  %861 = vst [vmem:[%s1265_s25 + $0x80] sm:$0xff] %v829_v43  ;;  %v814_v48 = vadd.f32 %v1258_v26, %v775_v44  ;;  %v830_v49 = vadd.f32 %v1258_v26, %v791_v45 }
 0x101   : > { %848 = vst [vmem:[%s1265_s25 + $0x18] sm:$0xff] %v816_v46  ;;  %864 = vst [vmem:[%s1265_s25 + $0x98] sm:$0xff] %v832_v47 }
 0x102   : > { %846 = vst [vmem:[%s1265_s25 + $0x8] sm:$0xff] %v814_v48  ;;  %862 = vst [vmem:[%s1265_s25 + $0x88] sm:$0xff] %v830_v49  ;;  %v1044_v50 = vpop.f32.mrb[4].mxu0  ;;  %v1060_v51 = vpop.f32.mrb[4].mxu1 }
 0x103   : > { %v780_v52 = vmul.f32 %v1044_v50, %v1252_v24  ;;  %v796_v53 = vmul.f32 %v1060_v51, %v1252_v24  ;;  %v557_v54 = vpop.f32.mrb[5].mxu0  ;;  %v621_v55 = vpop.f32.mrb[5].mxu1 }
 0x104   : > { %v778_v56 = vmul.f32 %v1252_v24, %v557_v54  ;;  %v794_v57 = vmul.f32 %v1252_v24, %v621_v55  ;;  %v1045_v58 = vpop.f32.mrb[6].mxu0  ;;  %v1061_v59 = vpop.f32.mrb[6].mxu1 }
 0x105   : > { %v819_v60 = vadd.f32 %v1258_v26, %v780_v52  ;;  %v835_v61 = vadd.f32 %v1258_v26, %v796_v53  ;;  %v781_v62 = vmul.f32 %v1045_v58, %v1252_v24  ;;  %v797_v63 = vmul.f32 %v1061_v59, %v1252_v24  ;;  %v560_v0 = vpop.f32.mrb[7].mxu0  ;;  %v624_v1 = vpop.f32.mrb[7].mxu1 }
 0x106   : > { %v817_v2 = vadd.f32 %v1258_v26, %v778_v56  ;;  %v833_v3 = vadd.f32 %v1258_v26, %v794_v57  ;;  %v779_v4 = vmul.f32 %v1252_v24, %v560_v0  ;;  %v795_v5 = vmul.f32 %v1252_v24, %v624_v1 }
 0x107   : > { %851 = vst [vmem:[%s1265_s25 + $0x30] sm:$0xff] %v819_v60  ;;  %867 = vst [vmem:[%s1265_s25 + $0xb0] sm:$0xff] %v835_v61  ;;  %v820_v6 = vadd.f32 %v1258_v26, %v781_v62  ;;  %v836_v7 = vadd.f32 %v1258_v26, %v797_v63 }
 0x108   : > { %849 = vst [vmem:[%s1265_s25 + $0x20] sm:$0xff] %v817_v2  ;;  %865 = vst [vmem:[%s1265_s25 + $0xa0] sm:$0xff] %v833_v3  ;;  %v818_v8 = vadd.f32 %v1258_v26, %v779_v4  ;;  %v834_v9 = vadd.f32 %v1258_v26, %v795_v5 }
 0x109   : > { %852 = vst [vmem:[%s1265_s25 + $0x38] sm:$0xff] %v820_v6  ;;  %868 = vst [vmem:[%s1265_s25 + $0xb8] sm:$0xff] %v836_v7 }
 0x10a   : > { %850 = vst [vmem:[%s1265_s25 + $0x28] sm:$0xff] %v818_v8  ;;  %866 = vst [vmem:[%s1265_s25 + $0xa8] sm:$0xff] %v834_v9  ;;  %v1048_v10 = vpop.f32.mrb[8].mxu0  ;;  %v1064_v11 = vpop.f32.mrb[8].mxu1 }
 0x10b   : > { %v784_v12 = vmul.f32 %v1048_v10, %v1252_v24  ;;  %v800_v13 = vmul.f32 %v1064_v11, %v1252_v24  ;;  %v573_v14 = vpop.f32.mrb[9].mxu0  ;;  %v637_v15 = vpop.f32.mrb[9].mxu1 }
 0x10c   : > { %v782_v16 = vmul.f32 %v1252_v24, %v573_v14  ;;  %v798_v17 = vmul.f32 %v1252_v24, %v637_v15  ;;  %v1049_v18 = vpop.f32.mrb[10].mxu0  ;;  %v1065_v19 = vpop.f32.mrb[10].mxu1 }
 0x10d   : > { %v823_v20 = vadd.f32 %v1258_v26, %v784_v12  ;;  %v839_v21 = vadd.f32 %v1258_v26, %v800_v13  ;;  %v785_v22 = vmul.f32 %v1049_v18, %v1252_v24  ;;  %v801_v23 = vmul.f32 %v1065_v19, %v1252_v24  ;;  %v576_v25 = vpop.f32.mrb[11].mxu0  ;;  %v640_v27 = vpop.f32.mrb[11].mxu1 }
 0x10e   : > { %v821_v28 = vadd.f32 %v1258_v26, %v782_v16  ;;  %v837_v29 = vadd.f32 %v1258_v26, %v798_v17  ;;  %v783_v30 = vmul.f32 %v1252_v24, %v576_v25  ;;  %v799_v31 = vmul.f32 %v1252_v24, %v640_v27 }
 0x10f   : > { %855 = vst [vmem:[%s1265_s25 + $0x50] sm:$0xff] %v823_v20  ;;  %871 = vst [vmem:[%s1265_s25 + $0xd0] sm:$0xff] %v839_v21  ;;  %v824_v32 = vadd.f32 %v1258_v26, %v785_v22  ;;  %v840_v33 = vadd.f32 %v1258_v26, %v801_v23 }
 0x110   : > { %853 = vst [vmem:[%s1265_s25 + $0x40] sm:$0xff] %v821_v28  ;;  %869 = vst [vmem:[%s1265_s25 + $0xc0] sm:$0xff] %v837_v29  ;;  %v822_v34 = vadd.f32 %v1258_v26, %v783_v30  ;;  %v838_v35 = vadd.f32 %v1258_v26, %v799_v31 }
 0x111   : > { %856 = vst [vmem:[%s1265_s25 + $0x58] sm:$0xff] %v824_v32  ;;  %872 = vst [vmem:[%s1265_s25 + $0xd8] sm:$0xff] %v840_v33 }
 0x112   : > { %854 = vst [vmem:[%s1265_s25 + $0x48] sm:$0xff] %v822_v34  ;;  %870 = vst [vmem:[%s1265_s25 + $0xc8] sm:$0xff] %v838_v35  ;;  %v1052_v36 = vpop.f32.mrb[12].mxu0  ;;  %v1068_v37 = vpop.f32.mrb[12].mxu1 }
 0x113   : > { %v788_v38 = vmul.f32 %v1052_v36, %v1252_v24  ;;  %v804_v39 = vmul.f32 %v1068_v37, %v1252_v24  ;;  %v589_v40 = vpop.f32.mrb[13].mxu0  ;;  %v653_v41 = vpop.f32.mrb[13].mxu1 }
 0x114   : > { %v786_v42 = vmul.f32 %v1252_v24, %v589_v40  ;;  %v802_v43 = vmul.f32 %v1252_v24, %v653_v41  ;;  %v1053_v44 = vpop.f32.mrb[14].mxu0  ;;  %v1069_v45 = vpop.f32.mrb[14].mxu1 }
 0x115   : > { %v827_v46 = vadd.f32 %v1258_v26, %v788_v38  ;;  %v843_v47 = vadd.f32 %v1258_v26, %v804_v39  ;;  %v789_v48 = vmul.f32 %v1053_v44, %v1252_v24  ;;  %v805_v49 = vmul.f32 %v1069_v45, %v1252_v24  ;;  %v592_v50 = vpop.f32.mrb[15].mxu0  ;;  %v656_v51 = vpop.f32.mrb[15].mxu1 }
 0x116   : > { %v825_v52 = vadd.f32 %v1258_v26, %v786_v42  ;;  %v841_v53 = vadd.f32 %v1258_v26, %v802_v43  ;;  %v787_v54 = vmul.f32 %v1252_v24, %v592_v50  ;;  %v803_v55 = vmul.f32 %v1252_v24, %v656_v51 }
 0x117   : > { %859 = vst [vmem:[%s1265_s25 + $0x70] sm:$0xff] %v827_v46  ;;  %875 = vst [vmem:[%s1265_s25 + $0xf0] sm:$0xff] %v843_v47  ;;  %v828_v56 = vadd.f32 %v1258_v26, %v789_v48  ;;  %v844_v57 = vadd.f32 %v1258_v26, %v805_v49 }
 0x118   : > { %857 = vst [vmem:[%s1265_s25 + $0x60] sm:$0xff] %v825_v52  ;;  %873 = vst [vmem:[%s1265_s25 + $0xe0] sm:$0xff] %v841_v53  ;;  %v826_v58 = vadd.f32 %v1258_v26, %v787_v54  ;;  %v842_v59 = vadd.f32 %v1258_v26, %v803_v55 }
 0x119   : > { %860 = vst [vmem:[%s1265_s25 + $0x78] sm:$0xff] %v828_v56  ;;  %876 = vst [vmem:[%s1265_s25 + $0xf8] sm:$0xff] %v844_v57 }
 0x11a   : > { %858 = vst [vmem:[%s1265_s25 + $0x68] sm:$0xff] %v826_v58  ;;  %874 = vst [vmem:[%s1265_s25 + $0xe8] sm:$0xff] %v842_v59 }
 0x11b PF: > { %s14_s17 = sadd.s32 1, %s1156_s17   ;;  %s1375_s15 = smov %s1152_s16 }
 0x11c   : > { %p11_p5 = scmp.ge.s32.totalorder %s14_s17, 4   ;;  %s1376_s16 = smov %s1378_s18 }
 0x11e   :  { %13 = sbr.rel (!%p11_p5) target bundleno = 2 (0x2), region = 77 }

</bundles_post_ra>
